<compile_context>
chip_gen: v6e
topology: v6e:2x2x1
jax: 0.10.0
libtpu: 0.0.40
codegen_flags: <defaults>
</compile_context>

<pallas_src>
import math
import functools

import jax
import jax.numpy as jnp
from jax import lax
from jax.experimental import pallas as pl
from jax.experimental.pallas import tpu as pltpu


def _dwconv_kernel(x_ref, w_ref, b_ref, o_ref, *, K, R):
    """Depthwise KxK conv over one (Bt, H, W, Ct) NHWC block.

    x_ref/o_ref: (Bt, H, W, Ct); w_ref: (K, K, Ct); b_ref: (1, Ct).
    Channels sit on lanes, W on sublanes.  The KxK window is realized as
    K aligned row-slices (major axis) x K-1 sublane rotations (pltpu.roll,
    on the otherwise-idle XLU) plus boundary masks -- no padded scratch,
    no misaligned tap loads, no extra VMEM traffic.
    """
    Bt, H, W, Ct = x_ref.shape
    p = K // 2

    # Hoisted constants: f32 taps, bias block, W-axis validity masks.
    w_f32 = w_ref[...].astype(jnp.float32)                       # (K, K, Ct)
    taps = [[w_f32[i, j, :].reshape(1, 1, Ct) for j in range(K)]
            for i in range(K)]
    bias_row = b_ref[...].astype(jnp.float32).reshape(1, 1, Ct)
    bias_blk = jnp.broadcast_to(bias_row, (R, W, Ct))

    w_iota = lax.broadcasted_iota(jnp.int32, (1, W, 1), 1)
    valid = {}
    for j in range(K):
        dj = j - p
        if dj > 0:
            valid[dj] = w_iota < (W - dj)
        elif dj < 0:
            valid[dj] = w_iota >= (-dj)

    n_chunks = -(-H // R)
    for b in range(Bt):                        # static unroll (Bt is small)
        for ci in range(n_chunks):             # static unroll over H-row chunks
            h0 = ci * R
            rows = min(R, H - h0)              # last chunk may be short
            lo, hi = h0 - p, h0 + rows + p
            lo_c, hi_c = max(lo, 0), min(hi, H)
            chunk = x_ref[b, pl.ds(lo_c, hi_c - lo_c), :, :].astype(jnp.float32)
            if lo_c > lo:                      # top halo rows (first chunk only)
                chunk = jnp.concatenate(
                    [jnp.zeros((lo_c - lo, W, Ct), jnp.float32), chunk], axis=0)
            if hi_c < hi:                      # bottom halo rows (last chunk only)
                chunk = jnp.concatenate(
                    [chunk, jnp.zeros((hi - hi_c, W, Ct), jnp.float32)], axis=0)
            # chunk[r, w, c] == x[b, h0 - p + r, w, c]  (0 outside the image).

            acc = bias_blk if rows == R else jnp.broadcast_to(
                bias_row, (rows, W, Ct))
            for j in range(K):
                dj = j - p
                if dj == 0:
                    xs = chunk
                else:
                    # xs[r, w] = chunk[r, w + dj]; wrapped columns masked to 0.
                    xs = pltpu.roll(chunk, shift=(-dj) % W, axis=1)
                    xs = jnp.where(valid[dj], xs, 0.0)
                for i in range(K):
                    acc = acc + xs[i:i + rows] * taps[i][j]
            o_ref[b, pl.ds(h0, rows), :, :] = acc.astype(o_ref.dtype)


def _vmem_budget():
    """Returns (scoped-vmem cap, per-block target bytes) derived from the chip."""
    try:
        phys = pltpu.get_tpu_info().vmem_capacity_bytes
    except Exception:
        phys = 64 * 1024 * 1024            # conservative: assume v7x-sized VMEM
    cap = (phys * 3) // 4                  # headroom for compiler-internal scratch
    target = 6 * 1024 * 1024 if phys >= 96 * 1024 * 1024 else 3 * 1024 * 1024
    return cap, target


def _choose_channel_tile(C, H, W, itemsize, target_bytes):
    """Largest 128-multiple channel tile dividing C with one image block under
    budget; falls back to full C when C is not a multiple of 128."""
    if C % 128 != 0:
        return C                           # lane-masked stores, but correct
    mults = [ct for ct in range(128, C + 1, 128) if C % ct == 0]
    fitting = [ct for ct in mults if H * W * ct * itemsize <= target_bytes]
    return max(fitting) if fitting else 128


def _choose_batch_tile(B, per_image_bytes, n_ctiles, target_bytes, min_steps=8):
    """Pack several batch images per grid step (amortize the ~0.35us step
    overhead, bigger DMAs) while trying to keep >= min_steps grid steps so
    v7x's two TensorCores both get pipelined work."""
    divs = [bt for bt in range(1, B + 1)
            if B % bt == 0 and bt * per_image_bytes <= target_bytes]
    if not divs:
        return 1
    good = [bt for bt in divs if n_ctiles * (B // bt) >= min_steps]
    return max(good) if good else max(divs)


def _choose_rows_per_chunk(H, W, Ct, p):
    """Rows per in-kernel chunk so chunk + rolled copy + accumulator stay well
    inside the 64-vreg file (avoid spills fighting for vld/vst slots)."""
    row_vregs = max(1, (W * Ct * 4 + 4095) // 4096)   # f32 vregs per image row
    R = 40 // (3 * row_vregs) - 2 * p
    return max(1, min(R, H))


def _dwconv_nhwc(x_nhwc, weight_kkc, bias, kernel_size,
                 channel_tile=None, batch_tile=None):
    """x_nhwc: (B, H, W, C); weight_kkc: (K, K, C); bias: (C,) -> (B, H, W, C)."""
    B, H, W, C = x_nhwc.shape
    K = kernel_size
    if K % 2 != 1:
        raise ValueError("kernel_size must be odd (padding = K//2 keeps H, W)")
    p = K // 2
    itemsize = jnp.dtype(x_nhwc.dtype).itemsize
    cap, target_bytes = _vmem_budget()

    Ct = channel_tile if channel_tile is not None else _choose_channel_tile(
        C, H, W, itemsize, target_bytes)
    if C % Ct != 0:
        raise ValueError(f"channel tile {Ct} must divide C={C}")
    n_ctiles = C // Ct

    per_image = H * W * Ct * itemsize
    Bt = batch_tile if batch_tile is not None else _choose_batch_tile(
        B, per_image, n_ctiles, target_bytes)
    if B % Bt != 0:
        raise ValueError(f"batch tile {Bt} must divide B={B}")

    R = _choose_rows_per_chunk(H, W, Ct, p)
    kernel = functools.partial(_dwconv_kernel, K=K, R=R)
    bias2d = bias.reshape(1, C)

    blk = Bt * per_image
    w_bytes = K * K * Ct * jnp.dtype(weight_kkc.dtype).itemsize
    est = (2 * 2 * blk                       # double-buffered in + out blocks
           + 2 * (w_bytes + Ct * 4)          # weights + bias
           + 4 * (R + 2 * p) * W * Ct * 4    # headroom for f32 temporaries
           + (8 << 20))                      # compiler-internal margin
    vmem_limit = int(min(cap, max(est, 32 << 20)))

    # Channels outermost so the (K,K,Ct)/(1,Ct) weight/bias block index is
    # constant across the inner batch axis -> Pallas skips their re-DMA.
    # (If profiling shows exposed DMA at larger shapes, add
    #  pipeline_mode=pl.Buffered(3) on the x spec and sweep.)
    return pl.pallas_call(
        kernel,
        out_shape=jax.ShapeDtypeStruct((B, H, W, C), x_nhwc.dtype),
        grid_spec=pltpu.PrefetchScalarGridSpec(
            num_scalar_prefetch=0,
            grid=(n_ctiles, B // Bt),
            in_specs=[
                pl.BlockSpec((Bt, H, W, Ct), lambda c, b: (b, 0, 0, c)),
                pl.BlockSpec((K, K, Ct), lambda c, b: (0, 0, c)),
                pl.BlockSpec((1, Ct), lambda c, b: (0, c)),
            ],
            out_specs=pl.BlockSpec((Bt, H, W, Ct), lambda c, b: (b, 0, 0, c)),
        ),
        compiler_params=pltpu.CompilerParams(
            dimension_semantics=("parallel", "parallel"),
            vmem_limit_bytes=vmem_limit),
    )(x_nhwc, weight_kkc, bias2d)


class DWConvPallas:
    """JAX/Pallas equivalent of openmixup DWConv (depthwise conv for FFN)."""

    def __init__(self, embed_dims=768, kernel_size=3, key=None, dtype=jnp.float32):
        self.embed_dims = embed_dims
        self.kernel_size = kernel_size
        if key is None:
            key = jax.random.PRNGKey(0)
        kw, kb = jax.random.split(key)
        # PyTorch Conv2d(groups=C) weight shape: (C, 1, K, K).
        fan_in = kernel_size * kernel_size  # per-group in_channels = 1
        bound = 1.0 / math.sqrt(fan_in)
        w_torch_layout = jax.random.uniform(
            kw, (embed_dims, 1, kernel_size, kernel_size),
            minval=-bound, maxval=bound, dtype=dtype)
        self.bias = jax.random.uniform(
            kb, (embed_dims,), minval=-bound, maxval=bound, dtype=dtype)
        # (K, K, C) layout for the NHWC kernel; keep torch layout for the ref.
        self.weight_kkc = jnp.transpose(w_torch_layout[:, 0, :, :], (1, 2, 0))
        self.weight_torch = w_torch_layout

    def __call__(self, x, channel_tile=None, batch_tile=None):
        if x.ndim == 3:
            B, N, C = x.shape
            H = W = int(math.isqrt(N))
            if H * W != N:
                raise ValueError(f"token count N={N} must be a perfect square")
            # (B, N, C) token layout: x[b, h*W + w, c] == NHWC[b, h, w, c]
            # (pure reshape -> no HBM layout pass; this is the preferred path).
            x_nhwc = x.reshape(B, H, W, C)
            y_nhwc = _dwconv_nhwc(x_nhwc, self.weight_kkc, self.bias,
                                  self.kernel_size, channel_tile, batch_tile)
            return y_nhwc.reshape(B, N, C)
        elif x.ndim == 4:
            # NCHW in, NCHW out (matches PyTorch).
            # TODO(synk): keep the surrounding model NHWC end-to-end so these
            # two transposes (extra HBM passes on a bandwidth-bound op) vanish;
            # a native NCHW kernel would put W (small) on lanes and be worse.
            x_nhwc = jnp.transpose(x, (0, 2, 3, 1))
            y_nhwc = _dwconv_nhwc(x_nhwc, self.weight_kkc, self.bias,
                                  self.kernel_size, channel_tile, batch_tile)
            return jnp.transpose(y_nhwc, (0, 3, 1, 2))
        else:
            raise ValueError("DWConv expects 3-D (B,N,C) or 4-D (B,C,H,W) input")


def _reference_dwconv_nchw(x_nchw, weight_torch, bias, kernel_size):
    """Pure-JAX reference: grouped conv via lax.conv_general_dilated."""
    C = x_nchw.shape[1]
    p = kernel_size // 2
    y = lax.conv_general_dilated(
        x_nchw.astype(jnp.float32), weight_torch.astype(jnp.float32),
        window_strides=(1, 1), padding=((p, p), (p, p)),
        dimension_numbers=("NCHW", "OIHW", "NCHW"),
        feature_group_count=C)
    return y + bias.reshape(1, C, 1, 1)


if __name__ == "__main__":
    key = jax.random.PRNGKey(0)
    k_mod, k_x3, k_x4 = jax.random.split(key, 3)

    embed_dims = 256          # multiple of 128 -> exercises channel tiling
    kernel_size = 3
    B, H, W = 2, 16, 16
    N = H * W

    mod = DWConvPallas(embed_dims=embed_dims, kernel_size=kernel_size, key=k_mod)

    # 3-D token path (primary FFN path). Force Ct=128 to exercise the
    # channel-tiled index maps and the batch-packing logic.
    x3 = jax.random.normal(k_x3, (B, N, embed_dims), dtype=jnp.float32)
    y3 = jax.block_until_ready(mod(x3, channel_tile=128))

    # 4-D NCHW path with auto-chosen channel/batch tiles (Ct == C here).
    x4 = jax.random.normal(k_x4, (B, embed_dims, H, W), dtype=jnp.float32)
    y4 = jax.block_until_ready(mod(x4))

    # Correctness check against a pure-JAX grouped-conv reference.
    ref4 = _reference_dwconv_nchw(x4, mod.weight_torch, mod.bias, kernel_size)
    x3_nchw = jnp.transpose(x3.reshape(B, H, W, embed_dims), (0, 3, 1, 2))
    ref3_nchw = _reference_dwconv_nchw(x3_nchw, mod.weight_torch, mod.bias,
                                       kernel_size)
    ref3 = jnp.transpose(ref3_nchw, (0, 2, 3, 1)).reshape(B, N, embed_dims)

    assert y3.shape == (B, N, embed_dims)
    assert y4.shape == (B, embed_dims, H, W)
    assert jnp.allclose(y3, ref3, atol=1e-5, rtol=1e-5)
    assert jnp.allclose(y4, ref4, atol=1e-5, rtol=1e-5)

    print("KERNEL_OK")
</pallas_src>

<mosaic_0001>
module attributes {stable_mosaic.version = 11 : i64} {
  func.func @_dwconv_kernel(%arg0: i32, %arg1: i32, %arg2: memref<2x16x16x128xf32, #tpu.memory_space<vmem>>, %arg3: memref<3x3x128xf32, #tpu.memory_space<vmem>>, %arg4: memref<1x128xf32, #tpu.memory_space<vmem>>, %arg5: memref<2x16x16x128xf32, #tpu.memory_space<vmem>>) attributes {dimension_semantics = [#tpu.dimension_semantics<parallel>, #tpu.dimension_semantics<parallel>], iteration_bounds = array<i64: 2, 1>, scalar_prefetch = 0 : i64, scratch_operands = 0 : i64, tpu.core_type = #tpu.core_type<tc>, window_params = [{transform_indices = @transform_0, window_bounds = array<i64: 2, 16, 16, 128>}, {transform_indices = @transform_1, window_bounds = array<i64: 3, 3, 128>}, {transform_indices = @transform_2, window_bounds = array<i64: 1, 128>}, {transform_indices = @transform_3, window_bounds = array<i64: 2, 16, 16, 128>}]} {
    %c0 = arith.constant 0 : index
    %c0_0 = arith.constant 0 : index
    %c0_1 = arith.constant 0 : index
    %0 = vector.load %arg3[%c0, %c0_0, %c0_1] : memref<3x3x128xf32, #tpu.memory_space<vmem>>, vector<3x3x128xf32>
    %1 = vector.extract_strided_slice %0 {offsets = [0, 0, 0], sizes = [1, 1, 128], strides = [1, 1, 1]} : vector<3x3x128xf32> to vector<1x1x128xf32>
    %2 = vector.shape_cast %1 : vector<1x1x128xf32> to vector<128xf32>
    %3 = vector.shape_cast %2 : vector<128xf32> to vector<1x1x128xf32>
    %4 = vector.extract_strided_slice %0 {offsets = [0, 1, 0], sizes = [1, 1, 128], strides = [1, 1, 1]} : vector<3x3x128xf32> to vector<1x1x128xf32>
    %5 = vector.shape_cast %4 : vector<1x1x128xf32> to vector<128xf32>
    %6 = vector.shape_cast %5 : vector<128xf32> to vector<1x1x128xf32>
    %7 = vector.extract_strided_slice %0 {offsets = [0, 2, 0], sizes = [1, 1, 128], strides = [1, 1, 1]} : vector<3x3x128xf32> to vector<1x1x128xf32>
    %8 = vector.shape_cast %7 : vector<1x1x128xf32> to vector<128xf32>
    %9 = vector.shape_cast %8 : vector<128xf32> to vector<1x1x128xf32>
    %10 = vector.extract_strided_slice %0 {offsets = [1, 0, 0], sizes = [1, 1, 128], strides = [1, 1, 1]} : vector<3x3x128xf32> to vector<1x1x128xf32>
    %11 = vector.shape_cast %10 : vector<1x1x128xf32> to vector<128xf32>
    %12 = vector.shape_cast %11 : vector<128xf32> to vector<1x1x128xf32>
    %13 = vector.extract_strided_slice %0 {offsets = [1, 1, 0], sizes = [1, 1, 128], strides = [1, 1, 1]} : vector<3x3x128xf32> to vector<1x1x128xf32>
    %14 = vector.shape_cast %13 : vector<1x1x128xf32> to vector<128xf32>
    %15 = vector.shape_cast %14 : vector<128xf32> to vector<1x1x128xf32>
    %16 = vector.extract_strided_slice %0 {offsets = [1, 2, 0], sizes = [1, 1, 128], strides = [1, 1, 1]} : vector<3x3x128xf32> to vector<1x1x128xf32>
    %17 = vector.shape_cast %16 : vector<1x1x128xf32> to vector<128xf32>
    %18 = vector.shape_cast %17 : vector<128xf32> to vector<1x1x128xf32>
    %19 = vector.extract_strided_slice %0 {offsets = [2, 0, 0], sizes = [1, 1, 128], strides = [1, 1, 1]} : vector<3x3x128xf32> to vector<1x1x128xf32>
    %20 = vector.shape_cast %19 : vector<1x1x128xf32> to vector<128xf32>
    %21 = vector.shape_cast %20 : vector<128xf32> to vector<1x1x128xf32>
    %22 = vector.extract_strided_slice %0 {offsets = [2, 1, 0], sizes = [1, 1, 128], strides = [1, 1, 1]} : vector<3x3x128xf32> to vector<1x1x128xf32>
    %23 = vector.shape_cast %22 : vector<1x1x128xf32> to vector<128xf32>
    %24 = vector.shape_cast %23 : vector<128xf32> to vector<1x1x128xf32>
    %25 = vector.extract_strided_slice %0 {offsets = [2, 2, 0], sizes = [1, 1, 128], strides = [1, 1, 1]} : vector<3x3x128xf32> to vector<1x1x128xf32>
    %26 = vector.shape_cast %25 : vector<1x1x128xf32> to vector<128xf32>
    %27 = vector.shape_cast %26 : vector<128xf32> to vector<1x1x128xf32>
    %c0_2 = arith.constant 0 : index
    %c0_3 = arith.constant 0 : index
    %28 = vector.load %arg4[%c0_2, %c0_3] : memref<1x128xf32, #tpu.memory_space<vmem>>, vector<1x128xf32>
    %29 = vector.shape_cast %28 : vector<1x128xf32> to vector<1x1x128xf32>
    %30 = vector.shape_cast %29 : vector<1x1x128xf32> to vector<1x1x128xf32>
    %31 = vector.broadcast %30 : vector<1x1x128xf32> to vector<4x16x128xf32>
    %32 = tpu.iota {dimensions = array<i32: 1>} : vector<1x16x1xi32>
    %c1_i32 = arith.constant 1 : i32
    %33 = vector.broadcast %c1_i32 : i32 to vector<1x16x1xi32>
    %34 = arith.cmpi sge, %32, %33 : vector<1x16x1xi32>
    %c15_i32 = arith.constant 15 : i32
    %35 = vector.broadcast %c15_i32 : i32 to vector<1x16x1xi32>
    %36 = arith.cmpi slt, %32, %35 : vector<1x16x1xi32>
    %c0_4 = arith.constant 0 : index
    %c0_5 = arith.constant 0 : index
    %c0_6 = arith.constant 0 : index
    %c0_7 = arith.constant 0 : index
    %37 = vector.load %arg2[%c0_4, %c0_5, %c0_6, %c0_7] : memref<2x16x16x128xf32, #tpu.memory_space<vmem>>, vector<1x5x16x128xf32>
    %38 = vector.shape_cast %37 : vector<1x5x16x128xf32> to vector<5x16x128xf32>
    %cst = arith.constant 0.000000e+00 : f32
    %39 = vector.broadcast %cst : f32 to vector<1x16x128xf32>
    %40 = tpu.concatenate %39, %38 in 0 : vector<1x16x128xf32>, vector<5x16x128xf32> -> vector<6x16x128xf32>
    %c1_i32_8 = arith.constant 1 : i32
    %41 = tpu.dynamic_rotate %40 by %c1_i32_8 dim 1 : vector<6x16x128xf32>, i32 -> vector<6x16x128xf32>
    %cst_9 = arith.constant 0.000000e+00 : f32
    %42 = vector.shape_cast %34 : vector<1x16x1xi1> to vector<1x16x1xi1>
    %43 = vector.broadcast %42 : vector<1x16x1xi1> to vector<6x16x128xi1>
    %44 = vector.broadcast %cst_9 : f32 to vector<6x16x128xf32>
    %45 = arith.select %43, %41, %44 : vector<6x16x128xi1>, vector<6x16x128xf32>
    %46 = vector.extract_strided_slice %45 {offsets = [0, 0, 0], sizes = [4, 16, 128], strides = [1, 1, 1]} : vector<6x16x128xf32> to vector<4x16x128xf32>
    %47 = vector.broadcast %3 : vector<1x1x128xf32> to vector<4x16x128xf32>
    %48 = arith.mulf %46, %47 : vector<4x16x128xf32>
    %49 = arith.addf %31, %48 : vector<4x16x128xf32>
    %50 = vector.extract_strided_slice %45 {offsets = [1, 0, 0], sizes = [4, 16, 128], strides = [1, 1, 1]} : vector<6x16x128xf32> to vector<4x16x128xf32>
    %51 = vector.broadcast %12 : vector<1x1x128xf32> to vector<4x16x128xf32>
    %52 = arith.mulf %50, %51 : vector<4x16x128xf32>
    %53 = arith.addf %49, %52 : vector<4x16x128xf32>
    %54 = vector.extract_strided_slice %45 {offsets = [2, 0, 0], sizes = [4, 16, 128], strides = [1, 1, 1]} : vector<6x16x128xf32> to vector<4x16x128xf32>
    %55 = vector.broadcast %21 : vector<1x1x128xf32> to vector<4x16x128xf32>
    %56 = arith.mulf %54, %55 : vector<4x16x128xf32>
    %57 = arith.addf %53, %56 : vector<4x16x128xf32>
    %58 = vector.extract_strided_slice %40 {offsets = [0, 0, 0], sizes = [4, 16, 128], strides = [1, 1, 1]} : vector<6x16x128xf32> to vector<4x16x128xf32>
    %59 = vector.broadcast %6 : vector<1x1x128xf32> to vector<4x16x128xf32>
    %60 = arith.mulf %58, %59 : vector<4x16x128xf32>
    %61 = arith.addf %57, %60 : vector<4x16x128xf32>
    %62 = vector.extract_strided_slice %40 {offsets = [1, 0, 0], sizes = [4, 16, 128], strides = [1, 1, 1]} : vector<6x16x128xf32> to vector<4x16x128xf32>
    %63 = vector.broadcast %15 : vector<1x1x128xf32> to vector<4x16x128xf32>
    %64 = arith.mulf %62, %63 : vector<4x16x128xf32>
    %65 = arith.addf %61, %64 : vector<4x16x128xf32>
    %66 = vector.extract_strided_slice %40 {offsets = [2, 0, 0], sizes = [4, 16, 128], strides = [1, 1, 1]} : vector<6x16x128xf32> to vector<4x16x128xf32>
    %67 = vector.broadcast %24 : vector<1x1x128xf32> to vector<4x16x128xf32>
    %68 = arith.mulf %66, %67 : vector<4x16x128xf32>
    %69 = arith.addf %65, %68 : vector<4x16x128xf32>
    %c15_i32_10 = arith.constant 15 : i32
    %70 = tpu.dynamic_rotate %40 by %c15_i32_10 dim 1 : vector<6x16x128xf32>, i32 -> vector<6x16x128xf32>
    %cst_11 = arith.constant 0.000000e+00 : f32
    %71 = vector.shape_cast %36 : vector<1x16x1xi1> to vector<1x16x1xi1>
    %72 = vector.broadcast %71 : vector<1x16x1xi1> to vector<6x16x128xi1>
    %73 = vector.broadcast %cst_11 : f32 to vector<6x16x128xf32>
    %74 = arith.select %72, %70, %73 : vector<6x16x128xi1>, vector<6x16x128xf32>
    %75 = vector.extract_strided_slice %74 {offsets = [0, 0, 0], sizes = [4, 16, 128], strides = [1, 1, 1]} : vector<6x16x128xf32> to vector<4x16x128xf32>
    %76 = vector.broadcast %9 : vector<1x1x128xf32> to vector<4x16x128xf32>
    %77 = arith.mulf %75, %76 : vector<4x16x128xf32>
    %78 = arith.addf %69, %77 : vector<4x16x128xf32>
    %79 = vector.extract_strided_slice %74 {offsets = [1, 0, 0], sizes = [4, 16, 128], strides = [1, 1, 1]} : vector<6x16x128xf32> to vector<4x16x128xf32>
    %80 = vector.broadcast %18 : vector<1x1x128xf32> to vector<4x16x128xf32>
    %81 = arith.mulf %79, %80 : vector<4x16x128xf32>
    %82 = arith.addf %78, %81 : vector<4x16x128xf32>
    %83 = vector.extract_strided_slice %74 {offsets = [2, 0, 0], sizes = [4, 16, 128], strides = [1, 1, 1]} : vector<6x16x128xf32> to vector<4x16x128xf32>
    %84 = vector.broadcast %27 : vector<1x1x128xf32> to vector<4x16x128xf32>
    %85 = arith.mulf %83, %84 : vector<4x16x128xf32>
    %86 = arith.addf %82, %85 : vector<4x16x128xf32>
    %c0_12 = arith.constant 0 : index
    %c0_13 = arith.constant 0 : index
    %c0_14 = arith.constant 0 : index
    %c0_15 = arith.constant 0 : index
    %87 = vector.load %arg5[%c0_12, %c0_13, %c0_14, %c0_15] : memref<2x16x16x128xf32, #tpu.memory_space<vmem>>, vector<1x4x16x128xf32>
    %88 = vector.shape_cast %87 : vector<1x4x16x128xf32> to vector<4x16x128xf32>
    %89 = vector.shape_cast %86 : vector<4x16x128xf32> to vector<1x4x16x128xf32>
    tpu.vector_store %arg5[%c0_12, %c0_13, %c0_14, %c0_15], %89 {strides = array<i32>} : memref<2x16x16x128xf32, #tpu.memory_space<vmem>>, vector<1x4x16x128xf32>,
    %c0_16 = arith.constant 0 : index
    %c3 = arith.constant 3 : index
    %c0_17 = arith.constant 0 : index
    %c0_18 = arith.constant 0 : index
    %90 = vector.load %arg2[%c0_16, %c3, %c0_17, %c0_18] : memref<2x16x16x128xf32, #tpu.memory_space<vmem>>, vector<1x6x16x128xf32>
    %91 = vector.shape_cast %90 : vector<1x6x16x128xf32> to vector<6x16x128xf32>
    %c1_i32_19 = arith.constant 1 : i32
    %92 = tpu.dynamic_rotate %91 by %c1_i32_19 dim 1 : vector<6x16x128xf32>, i32 -> vector<6x16x128xf32>
    %cst_20 = arith.constant 0.000000e+00 : f32
    %93 = vector.shape_cast %34 : vector<1x16x1xi1> to vector<1x16x1xi1>
    %94 = vector.broadcast %93 : vector<1x16x1xi1> to vector<6x16x128xi1>
    %95 = vector.broadcast %cst_20 : f32 to vector<6x16x128xf32>
    %96 = arith.select %94, %92, %95 : vector<6x16x128xi1>, vector<6x16x128xf32>
    %97 = vector.extract_strided_slice %96 {offsets = [0, 0, 0], sizes = [4, 16, 128], strides = [1, 1, 1]} : vector<6x16x128xf32> to vector<4x16x128xf32>
    %98 = vector.broadcast %3 : vector<1x1x128xf32> to vector<4x16x128xf32>
    %99 = arith.mulf %97, %98 : vector<4x16x128xf32>
    %100 = arith.addf %31, %99 : vector<4x16x128xf32>
    %101 = vector.extract_strided_slice %96 {offsets = [1, 0, 0], sizes = [4, 16, 128], strides = [1, 1, 1]} : vector<6x16x128xf32> to vector<4x16x128xf32>
    %102 = vector.broadcast %12 : vector<1x1x128xf32> to vector<4x16x128xf32>
    %103 = arith.mulf %101, %102 : vector<4x16x128xf32>
    %104 = arith.addf %100, %103 : vector<4x16x128xf32>
    %105 = vector.extract_strided_slice %96 {offsets = [2, 0, 0], sizes = [4, 16, 128], strides = [1, 1, 1]} : vector<6x16x128xf32> to vector<4x16x128xf32>
    %106 = vector.broadcast %21 : vector<1x1x128xf32> to vector<4x16x128xf32>
    %107 = arith.mulf %105, %106 : vector<4x16x128xf32>
    %108 = arith.addf %104, %107 : vector<4x16x128xf32>
    %109 = vector.extract_strided_slice %91 {offsets = [0, 0, 0], sizes = [4, 16, 128], strides = [1, 1, 1]} : vector<6x16x128xf32> to vector<4x16x128xf32>
    %110 = vector.broadcast %6 : vector<1x1x128xf32> to vector<4x16x128xf32>
    %111 = arith.mulf %109, %110 : vector<4x16x128xf32>
    %112 = arith.addf %108, %111 : vector<4x16x128xf32>
    %113 = vector.extract_strided_slice %91 {offsets = [1, 0, 0], sizes = [4, 16, 128], strides = [1, 1, 1]} : vector<6x16x128xf32> to vector<4x16x128xf32>
    %114 = vector.broadcast %15 : vector<1x1x128xf32> to vector<4x16x128xf32>
    %115 = arith.mulf %113, %114 : vector<4x16x128xf32>
    %116 = arith.addf %112, %115 : vector<4x16x128xf32>
    %117 = vector.extract_strided_slice %91 {offsets = [2, 0, 0], sizes = [4, 16, 128], strides = [1, 1, 1]} : vector<6x16x128xf32> to vector<4x16x128xf32>
    %118 = vector.broadcast %24 : vector<1x1x128xf32> to vector<4x16x128xf32>
    %119 = arith.mulf %117, %118 : vector<4x16x128xf32>
    %120 = arith.addf %116, %119 : vector<4x16x128xf32>
    %c15_i32_21 = arith.constant 15 : i32
    %121 = tpu.dynamic_rotate %91 by %c15_i32_21 dim 1 : vector<6x16x128xf32>, i32 -> vector<6x16x128xf32>
    %cst_22 = arith.constant 0.000000e+00 : f32
    %122 = vector.shape_cast %36 : vector<1x16x1xi1> to vector<1x16x1xi1>
    %123 = vector.broadcast %122 : vector<1x16x1xi1> to vector<6x16x128xi1>
    %124 = vector.broadcast %cst_22 : f32 to vector<6x16x128xf32>
    %125 = arith.select %123, %121, %124 : vector<6x16x128xi1>, vector<6x16x128xf32>
    %126 = vector.extract_strided_slice %125 {offsets = [0, 0, 0], sizes = [4, 16, 128], strides = [1, 1, 1]} : vector<6x16x128xf32> to vector<4x16x128xf32>
    %127 = vector.broadcast %9 : vector<1x1x128xf32> to vector<4x16x128xf32>
    %128 = arith.mulf %126, %127 : vector<4x16x128xf32>
    %129 = arith.addf %120, %128 : vector<4x16x128xf32>
    %130 = vector.extract_strided_slice %125 {offsets = [1, 0, 0], sizes = [4, 16, 128], strides = [1, 1, 1]} : vector<6x16x128xf32> to vector<4x16x128xf32>
    %131 = vector.broadcast %18 : vector<1x1x128xf32> to vector<4x16x128xf32>
    %132 = arith.mulf %130, %131 : vector<4x16x128xf32>
    %133 = arith.addf %129, %132 : vector<4x16x128xf32>
    %134 = vector.extract_strided_slice %125 {offsets = [2, 0, 0], sizes = [4, 16, 128], strides = [1, 1, 1]} : vector<6x16x128xf32> to vector<4x16x128xf32>
    %135 = vector.broadcast %27 : vector<1x1x128xf32> to vector<4x16x128xf32>
    %136 = arith.mulf %134, %135 : vector<4x16x128xf32>
    %137 = arith.addf %133, %136 : vector<4x16x128xf32>
    %c0_23 = arith.constant 0 : index
    %c4 = arith.constant 4 : index
    %c0_24 = arith.constant 0 : index
    %c0_25 = arith.constant 0 : index
    %138 = vector.load %arg5[%c0_23, %c4, %c0_24, %c0_25] : memref<2x16x16x128xf32, #tpu.memory_space<vmem>>, vector<1x4x16x128xf32>
    %139 = vector.shape_cast %138 : vector<1x4x16x128xf32> to vector<4x16x128xf32>
    %140 = vector.shape_cast %137 : vector<4x16x128xf32> to vector<1x4x16x128xf32>
    tpu.vector_store %arg5[%c0_23, %c4, %c0_24, %c0_25], %140 {strides = array<i32>} : memref<2x16x16x128xf32, #tpu.memory_space<vmem>>, vector<1x4x16x128xf32>,
    %c0_26 = arith.constant 0 : index
    %c7 = arith.constant 7 : index
    %c0_27 = arith.constant 0 : index
    %c0_28 = arith.constant 0 : index
    %141 = vector.load %arg2[%c0_26, %c7, %c0_27, %c0_28] : memref<2x16x16x128xf32, #tpu.memory_space<vmem>>, vector<1x6x16x128xf32>
    %142 = vector.shape_cast %141 : vector<1x6x16x128xf32> to vector<6x16x128xf32>
    %c1_i32_29 = arith.constant 1 : i32
    %143 = tpu.dynamic_rotate %142 by %c1_i32_29 dim 1 : vector<6x16x128xf32>, i32 -> vector<6x16x128xf32>
    %cst_30 = arith.constant 0.000000e+00 : f32
    %144 = vector.shape_cast %34 : vector<1x16x1xi1> to vector<1x16x1xi1>
    %145 = vector.broadcast %144 : vector<1x16x1xi1> to vector<6x16x128xi1>
    %146 = vector.broadcast %cst_30 : f32 to vector<6x16x128xf32>
    %147 = arith.select %145, %143, %146 : vector<6x16x128xi1>, vector<6x16x128xf32>
    %148 = vector.extract_strided_slice %147 {offsets = [0, 0, 0], sizes = [4, 16, 128], strides = [1, 1, 1]} : vector<6x16x128xf32> to vector<4x16x128xf32>
    %149 = vector.broadcast %3 : vector<1x1x128xf32> to vector<4x16x128xf32>
    %150 = arith.mulf %148, %149 : vector<4x16x128xf32>
    %151 = arith.addf %31, %150 : vector<4x16x128xf32>
    %152 = vector.extract_strided_slice %147 {offsets = [1, 0, 0], sizes = [4, 16, 128], strides = [1, 1, 1]} : vector<6x16x128xf32> to vector<4x16x128xf32>
    %153 = vector.broadcast %12 : vector<1x1x128xf32> to vector<4x16x128xf32>
    %154 = arith.mulf %152, %153 : vector<4x16x128xf32>
    %155 = arith.addf %151, %154 : vector<4x16x128xf32>
    %156 = vector.extract_strided_slice %147 {offsets = [2, 0, 0], sizes = [4, 16, 128], strides = [1, 1, 1]} : vector<6x16x128xf32> to vector<4x16x128xf32>
    %157 = vector.broadcast %21 : vector<1x1x128xf32> to vector<4x16x128xf32>
    %158 = arith.mulf %156, %157 : vector<4x16x128xf32>
    %159 = arith.addf %155, %158 : vector<4x16x128xf32>
    %160 = vector.extract_strided_slice %142 {offsets = [0, 0, 0], sizes = [4, 16, 128], strides = [1, 1, 1]} : vector<6x16x128xf32> to vector<4x16x128xf32>
    %161 = vector.broadcast %6 : vector<1x1x128xf32> to vector<4x16x128xf32>
    %162 = arith.mulf %160, %161 : vector<4x16x128xf32>
    %163 = arith.addf %159, %162 : vector<4x16x128xf32>
    %164 = vector.extract_strided_slice %142 {offsets = [1, 0, 0], sizes = [4, 16, 128], strides = [1, 1, 1]} : vector<6x16x128xf32> to vector<4x16x128xf32>
    %165 = vector.broadcast %15 : vector<1x1x128xf32> to vector<4x16x128xf32>
    %166 = arith.mulf %164, %165 : vector<4x16x128xf32>
    %167 = arith.addf %163, %166 : vector<4x16x128xf32>
    %168 = vector.extract_strided_slice %142 {offsets = [2, 0, 0], sizes = [4, 16, 128], strides = [1, 1, 1]} : vector<6x16x128xf32> to vector<4x16x128xf32>
    %169 = vector.broadcast %24 : vector<1x1x128xf32> to vector<4x16x128xf32>
    %170 = arith.mulf %168, %169 : vector<4x16x128xf32>
    %171 = arith.addf %167, %170 : vector<4x16x128xf32>
    %c15_i32_31 = arith.constant 15 : i32
    %172 = tpu.dynamic_rotate %142 by %c15_i32_31 dim 1 : vector<6x16x128xf32>, i32 -> vector<6x16x128xf32>
    %cst_32 = arith.constant 0.000000e+00 : f32
    %173 = vector.shape_cast %36 : vector<1x16x1xi1> to vector<1x16x1xi1>
    %174 = vector.broadcast %173 : vector<1x16x1xi1> to vector<6x16x128xi1>
    %175 = vector.broadcast %cst_32 : f32 to vector<6x16x128xf32>
    %176 = arith.select %174, %172, %175 : vector<6x16x128xi1>, vector<6x16x128xf32>
    %177 = vector.extract_strided_slice %176 {offsets = [0, 0, 0], sizes = [4, 16, 128], strides = [1, 1, 1]} : vector<6x16x128xf32> to vector<4x16x128xf32>
    %178 = vector.broadcast %9 : vector<1x1x128xf32> to vector<4x16x128xf32>
    %179 = arith.mulf %177, %178 : vector<4x16x128xf32>
    %180 = arith.addf %171, %179 : vector<4x16x128xf32>
    %181 = vector.extract_strided_slice %176 {offsets = [1, 0, 0], sizes = [4, 16, 128], strides = [1, 1, 1]} : vector<6x16x128xf32> to vector<4x16x128xf32>
    %182 = vector.broadcast %18 : vector<1x1x128xf32> to vector<4x16x128xf32>
    %183 = arith.mulf %181, %182 : vector<4x16x128xf32>
    %184 = arith.addf %180, %183 : vector<4x16x128xf32>
    %185 = vector.extract_strided_slice %176 {offsets = [2, 0, 0], sizes = [4, 16, 128], strides = [1, 1, 1]} : vector<6x16x128xf32> to vector<4x16x128xf32>
    %186 = vector.broadcast %27 : vector<1x1x128xf32> to vector<4x16x128xf32>
    %187 = arith.mulf %185, %186 : vector<4x16x128xf32>
    %188 = arith.addf %184, %187 : vector<4x16x128xf32>
    %c0_33 = arith.constant 0 : index
    %c8 = arith.constant 8 : index
    %c0_34 = arith.constant 0 : index
    %c0_35 = arith.constant 0 : index
    %189 = vector.load %arg5[%c0_33, %c8, %c0_34, %c0_35] : memref<2x16x16x128xf32, #tpu.memory_space<vmem>>, vector<1x4x16x128xf32>
    %190 = vector.shape_cast %189 : vector<1x4x16x128xf32> to vector<4x16x128xf32>
    %191 = vector.shape_cast %188 : vector<4x16x128xf32> to vector<1x4x16x128xf32>
    tpu.vector_store %arg5[%c0_33, %c8, %c0_34, %c0_35], %191 {strides = array<i32>} : memref<2x16x16x128xf32, #tpu.memory_space<vmem>>, vector<1x4x16x128xf32>,
    %c0_36 = arith.constant 0 : index
    %c11 = arith.constant 11 : index
    %c0_37 = arith.constant 0 : index
    %c0_38 = arith.constant 0 : index
    %192 = vector.load %arg2[%c0_36, %c11, %c0_37, %c0_38] : memref<2x16x16x128xf32, #tpu.memory_space<vmem>>, vector<1x5x16x128xf32>
    %193 = vector.shape_cast %192 : vector<1x5x16x128xf32> to vector<5x16x128xf32>
    %cst_39 = arith.constant 0.000000e+00 : f32
    %194 = vector.broadcast %cst_39 : f32 to vector<1x16x128xf32>
    %195 = tpu.concatenate %193, %194 in 0 : vector<5x16x128xf32>, vector<1x16x128xf32> -> vector<6x16x128xf32>
    %c1_i32_40 = arith.constant 1 : i32
    %196 = tpu.dynamic_rotate %195 by %c1_i32_40 dim 1 : vector<6x16x128xf32>, i32 -> vector<6x16x128xf32>
    %cst_41 = arith.constant 0.000000e+00 : f32
    %197 = vector.shape_cast %34 : vector<1x16x1xi1> to vector<1x16x1xi1>
    %198 = vector.broadcast %197 : vector<1x16x1xi1> to vector<6x16x128xi1>
    %199 = vector.broadcast %cst_41 : f32 to vector<6x16x128xf32>
    %200 = arith.select %198, %196, %199 : vector<6x16x128xi1>, vector<6x16x128xf32>
    %201 = vector.extract_strided_slice %200 {offsets = [0, 0, 0], sizes = [4, 16, 128], strides = [1, 1, 1]} : vector<6x16x128xf32> to vector<4x16x128xf32>
    %202 = vector.broadcast %3 : vector<1x1x128xf32> to vector<4x16x128xf32>
    %203 = arith.mulf %201, %202 : vector<4x16x128xf32>
    %204 = arith.addf %31, %203 : vector<4x16x128xf32>
    %205 = vector.extract_strided_slice %200 {offsets = [1, 0, 0], sizes = [4, 16, 128], strides = [1, 1, 1]} : vector<6x16x128xf32> to vector<4x16x128xf32>
    %206 = vector.broadcast %12 : vector<1x1x128xf32> to vector<4x16x128xf32>
    %207 = arith.mulf %205, %206 : vector<4x16x128xf32>
    %208 = arith.addf %204, %207 : vector<4x16x128xf32>
    %209 = vector.extract_strided_slice %200 {offsets = [2, 0, 0], sizes = [4, 16, 128], strides = [1, 1, 1]} : vector<6x16x128xf32> to vector<4x16x128xf32>
    %210 = vector.broadcast %21 : vector<1x1x128xf32> to vector<4x16x128xf32>
    %211 = arith.mulf %209, %210 : vector<4x16x128xf32>
    %212 = arith.addf %208, %211 : vector<4x16x128xf32>
    %213 = vector.extract_strided_slice %195 {offsets = [0, 0, 0], sizes = [4, 16, 128], strides = [1, 1, 1]} : vector<6x16x128xf32> to vector<4x16x128xf32>
    %214 = vector.broadcast %6 : vector<1x1x128xf32> to vector<4x16x128xf32>
    %215 = arith.mulf %213, %214 : vector<4x16x128xf32>
    %216 = arith.addf %212, %215 : vector<4x16x128xf32>
    %217 = vector.extract_strided_slice %195 {offsets = [1, 0, 0], sizes = [4, 16, 128], strides = [1, 1, 1]} : vector<6x16x128xf32> to vector<4x16x128xf32>
    %218 = vector.broadcast %15 : vector<1x1x128xf32> to vector<4x16x128xf32>
    %219 = arith.mulf %217, %218 : vector<4x16x128xf32>
    %220 = arith.addf %216, %219 : vector<4x16x128xf32>
    %221 = vector.extract_strided_slice %195 {offsets = [2, 0, 0], sizes = [4, 16, 128], strides = [1, 1, 1]} : vector<6x16x128xf32> to vector<4x16x128xf32>
    %222 = vector.broadcast %24 : vector<1x1x128xf32> to vector<4x16x128xf32>
    %223 = arith.mulf %221, %222 : vector<4x16x128xf32>
    %224 = arith.addf %220, %223 : vector<4x16x128xf32>
    %c15_i32_42 = arith.constant 15 : i32
    %225 = tpu.dynamic_rotate %195 by %c15_i32_42 dim 1 : vector<6x16x128xf32>, i32 -> vector<6x16x128xf32>
    %cst_43 = arith.constant 0.000000e+00 : f32
    %226 = vector.shape_cast %36 : vector<1x16x1xi1> to vector<1x16x1xi1>
    %227 = vector.broadcast %226 : vector<1x16x1xi1> to vector<6x16x128xi1>
    %228 = vector.broadcast %cst_43 : f32 to vector<6x16x128xf32>
    %229 = arith.select %227, %225, %228 : vector<6x16x128xi1>, vector<6x16x128xf32>
    %230 = vector.extract_strided_slice %229 {offsets = [0, 0, 0], sizes = [4, 16, 128], strides = [1, 1, 1]} : vector<6x16x128xf32> to vector<4x16x128xf32>
    %231 = vector.broadcast %9 : vector<1x1x128xf32> to vector<4x16x128xf32>
    %232 = arith.mulf %230, %231 : vector<4x16x128xf32>
    %233 = arith.addf %224, %232 : vector<4x16x128xf32>
    %234 = vector.extract_strided_slice %229 {offsets = [1, 0, 0], sizes = [4, 16, 128], strides = [1, 1, 1]} : vector<6x16x128xf32> to vector<4x16x128xf32>
    %235 = vector.broadcast %18 : vector<1x1x128xf32> to vector<4x16x128xf32>
    %236 = arith.mulf %234, %235 : vector<4x16x128xf32>
    %237 = arith.addf %233, %236 : vector<4x16x128xf32>
    %238 = vector.extract_strided_slice %229 {offsets = [2, 0, 0], sizes = [4, 16, 128], strides = [1, 1, 1]} : vector<6x16x128xf32> to vector<4x16x128xf32>
    %239 = vector.broadcast %27 : vector<1x1x128xf32> to vector<4x16x128xf32>
    %240 = arith.mulf %238, %239 : vector<4x16x128xf32>
    %241 = arith.addf %237, %240 : vector<4x16x128xf32>
    %c0_44 = arith.constant 0 : index
    %c12 = arith.constant 12 : index
    %c0_45 = arith.constant 0 : index
    %c0_46 = arith.constant 0 : index
    %242 = vector.load %arg5[%c0_44, %c12, %c0_45, %c0_46] : memref<2x16x16x128xf32, #tpu.memory_space<vmem>>, vector<1x4x16x128xf32>
    %243 = vector.shape_cast %242 : vector<1x4x16x128xf32> to vector<4x16x128xf32>
    %244 = vector.shape_cast %241 : vector<4x16x128xf32> to vector<1x4x16x128xf32>
    tpu.vector_store %arg5[%c0_44, %c12, %c0_45, %c0_46], %244 {strides = array<i32>} : memref<2x16x16x128xf32, #tpu.memory_space<vmem>>, vector<1x4x16x128xf32>,
    %c1 = arith.constant 1 : index
    %c0_47 = arith.constant 0 : index
    %c0_48 = arith.constant 0 : index
    %c0_49 = arith.constant 0 : index
    %245 = vector.load %arg2[%c1, %c0_47, %c0_48, %c0_49] : memref<2x16x16x128xf32, #tpu.memory_space<vmem>>, vector<1x5x16x128xf32>
    %246 = vector.shape_cast %245 : vector<1x5x16x128xf32> to vector<5x16x128xf32>
    %cst_50 = arith.constant 0.000000e+00 : f32
    %247 = vector.broadcast %cst_50 : f32 to vector<1x16x128xf32>
    %248 = tpu.concatenate %247, %246 in 0 : vector<1x16x128xf32>, vector<5x16x128xf32> -> vector<6x16x128xf32>
    %c1_i32_51 = arith.constant 1 : i32
    %249 = tpu.dynamic_rotate %248 by %c1_i32_51 dim 1 : vector<6x16x128xf32>, i32 -> vector<6x16x128xf32>
    %cst_52 = arith.constant 0.000000e+00 : f32
    %250 = vector.shape_cast %34 : vector<1x16x1xi1> to vector<1x16x1xi1>
    %251 = vector.broadcast %250 : vector<1x16x1xi1> to vector<6x16x128xi1>
    %252 = vector.broadcast %cst_52 : f32 to vector<6x16x128xf32>
    %253 = arith.select %251, %249, %252 : vector<6x16x128xi1>, vector<6x16x128xf32>
    %254 = vector.extract_strided_slice %253 {offsets = [0, 0, 0], sizes = [4, 16, 128], strides = [1, 1, 1]} : vector<6x16x128xf32> to vector<4x16x128xf32>
    %255 = vector.broadcast %3 : vector<1x1x128xf32> to vector<4x16x128xf32>
    %256 = arith.mulf %254, %255 : vector<4x16x128xf32>
    %257 = arith.addf %31, %256 : vector<4x16x128xf32>
    %258 = vector.extract_strided_slice %253 {offsets = [1, 0, 0], sizes = [4, 16, 128], strides = [1, 1, 1]} : vector<6x16x128xf32> to vector<4x16x128xf32>
    %259 = vector.broadcast %12 : vector<1x1x128xf32> to vector<4x16x128xf32>
    %260 = arith.mulf %258, %259 : vector<4x16x128xf32>
    %261 = arith.addf %257, %260 : vector<4x16x128xf32>
    %262 = vector.extract_strided_slice %253 {offsets = [2, 0, 0], sizes = [4, 16, 128], strides = [1, 1, 1]} : vector<6x16x128xf32> to vector<4x16x128xf32>
    %263 = vector.broadcast %21 : vector<1x1x128xf32> to vector<4x16x128xf32>
    %264 = arith.mulf %262, %263 : vector<4x16x128xf32>
    %265 = arith.addf %261, %264 : vector<4x16x128xf32>
    %266 = vector.extract_strided_slice %248 {offsets = [0, 0, 0], sizes = [4, 16, 128], strides = [1, 1, 1]} : vector<6x16x128xf32> to vector<4x16x128xf32>
    %267 = vector.broadcast %6 : vector<1x1x128xf32> to vector<4x16x128xf32>
    %268 = arith.mulf %266, %267 : vector<4x16x128xf32>
    %269 = arith.addf %265, %268 : vector<4x16x128xf32>
    %270 = vector.extract_strided_slice %248 {offsets = [1, 0, 0], sizes = [4, 16, 128], strides = [1, 1, 1]} : vector<6x16x128xf32> to vector<4x16x128xf32>
    %271 = vector.broadcast %15 : vector<1x1x128xf32> to vector<4x16x128xf32>
    %272 = arith.mulf %270, %271 : vector<4x16x128xf32>
    %273 = arith.addf %269, %272 : vector<4x16x128xf32>
    %274 = vector.extract_strided_slice %248 {offsets = [2, 0, 0], sizes = [4, 16, 128], strides = [1, 1, 1]} : vector<6x16x128xf32> to vector<4x16x128xf32>
    %275 = vector.broadcast %24 : vector<1x1x128xf32> to vector<4x16x128xf32>
    %276 = arith.mulf %274, %275 : vector<4x16x128xf32>
    %277 = arith.addf %273, %276 : vector<4x16x128xf32>
    %c15_i32_53 = arith.constant 15 : i32
    %278 = tpu.dynamic_rotate %248 by %c15_i32_53 dim 1 : vector<6x16x128xf32>, i32 -> vector<6x16x128xf32>
    %cst_54 = arith.constant 0.000000e+00 : f32
    %279 = vector.shape_cast %36 : vector<1x16x1xi1> to vector<1x16x1xi1>
    %280 = vector.broadcast %279 : vector<1x16x1xi1> to vector<6x16x128xi1>
    %281 = vector.broadcast %cst_54 : f32 to vector<6x16x128xf32>
    %282 = arith.select %280, %278, %281 : vector<6x16x128xi1>, vector<6x16x128xf32>
    %283 = vector.extract_strided_slice %282 {offsets = [0, 0, 0], sizes = [4, 16, 128], strides = [1, 1, 1]} : vector<6x16x128xf32> to vector<4x16x128xf32>
    %284 = vector.broadcast %9 : vector<1x1x128xf32> to vector<4x16x128xf32>
    %285 = arith.mulf %283, %284 : vector<4x16x128xf32>
    %286 = arith.addf %277, %285 : vector<4x16x128xf32>
    %287 = vector.extract_strided_slice %282 {offsets = [1, 0, 0], sizes = [4, 16, 128], strides = [1, 1, 1]} : vector<6x16x128xf32> to vector<4x16x128xf32>
    %288 = vector.broadcast %18 : vector<1x1x128xf32> to vector<4x16x128xf32>
    %289 = arith.mulf %287, %288 : vector<4x16x128xf32>
    %290 = arith.addf %286, %289 : vector<4x16x128xf32>
    %291 = vector.extract_strided_slice %282 {offsets = [2, 0, 0], sizes = [4, 16, 128], strides = [1, 1, 1]} : vector<6x16x128xf32> to vector<4x16x128xf32>
    %292 = vector.broadcast %27 : vector<1x1x128xf32> to vector<4x16x128xf32>
    %293 = arith.mulf %291, %292 : vector<4x16x128xf32>
    %294 = arith.addf %290, %293 : vector<4x16x128xf32>
    %c1_55 = arith.constant 1 : index
    %c0_56 = arith.constant 0 : index
    %c0_57 = arith.constant 0 : index
    %c0_58 = arith.constant 0 : index
    %295 = vector.load %arg5[%c1_55, %c0_56, %c0_57, %c0_58] : memref<2x16x16x128xf32, #tpu.memory_space<vmem>>, vector<1x4x16x128xf32>
    %296 = vector.shape_cast %295 : vector<1x4x16x128xf32> to vector<4x16x128xf32>
    %297 = vector.shape_cast %294 : vector<4x16x128xf32> to vector<1x4x16x128xf32>
    tpu.vector_store %arg5[%c1_55, %c0_56, %c0_57, %c0_58], %297 {strides = array<i32>} : memref<2x16x16x128xf32, #tpu.memory_space<vmem>>, vector<1x4x16x128xf32>,
    %c1_59 = arith.constant 1 : index
    %c3_60 = arith.constant 3 : index
    %c0_61 = arith.constant 0 : index
    %c0_62 = arith.constant 0 : index
    %298 = vector.load %arg2[%c1_59, %c3_60, %c0_61, %c0_62] : memref<2x16x16x128xf32, #tpu.memory_space<vmem>>, vector<1x6x16x128xf32>
    %299 = vector.shape_cast %298 : vector<1x6x16x128xf32> to vector<6x16x128xf32>
    %c1_i32_63 = arith.constant 1 : i32
    %300 = tpu.dynamic_rotate %299 by %c1_i32_63 dim 1 : vector<6x16x128xf32>, i32 -> vector<6x16x128xf32>
    %cst_64 = arith.constant 0.000000e+00 : f32
    %301 = vector.shape_cast %34 : vector<1x16x1xi1> to vector<1x16x1xi1>
    %302 = vector.broadcast %301 : vector<1x16x1xi1> to vector<6x16x128xi1>
    %303 = vector.broadcast %cst_64 : f32 to vector<6x16x128xf32>
    %304 = arith.select %302, %300, %303 : vector<6x16x128xi1>, vector<6x16x128xf32>
    %305 = vector.extract_strided_slice %304 {offsets = [0, 0, 0], sizes = [4, 16, 128], strides = [1, 1, 1]} : vector<6x16x128xf32> to vector<4x16x128xf32>
    %306 = vector.broadcast %3 : vector<1x1x128xf32> to vector<4x16x128xf32>
    %307 = arith.mulf %305, %306 : vector<4x16x128xf32>
    %308 = arith.addf %31, %307 : vector<4x16x128xf32>
    %309 = vector.extract_strided_slice %304 {offsets = [1, 0, 0], sizes = [4, 16, 128], strides = [1, 1, 1]} : vector<6x16x128xf32> to vector<4x16x128xf32>
    %310 = vector.broadcast %12 : vector<1x1x128xf32> to vector<4x16x128xf32>
    %311 = arith.mulf %309, %310 : vector<4x16x128xf32>
    %312 = arith.addf %308, %311 : vector<4x16x128xf32>
    %313 = vector.extract_strided_slice %304 {offsets = [2, 0, 0], sizes = [4, 16, 128], strides = [1, 1, 1]} : vector<6x16x128xf32> to vector<4x16x128xf32>
    %314 = vector.broadcast %21 : vector<1x1x128xf32> to vector<4x16x128xf32>
    %315 = arith.mulf %313, %314 : vector<4x16x128xf32>
    %316 = arith.addf %312, %315 : vector<4x16x128xf32>
    %317 = vector.extract_strided_slice %299 {offsets = [0, 0, 0], sizes = [4, 16, 128], strides = [1, 1, 1]} : vector<6x16x128xf32> to vector<4x16x128xf32>
    %318 = vector.broadcast %6 : vector<1x1x128xf32> to vector<4x16x128xf32>
    %319 = arith.mulf %317, %318 : vector<4x16x128xf32>
    %320 = arith.addf %316, %319 : vector<4x16x128xf32>
    %321 = vector.extract_strided_slice %299 {offsets = [1, 0, 0], sizes = [4, 16, 128], strides = [1, 1, 1]} : vector<6x16x128xf32> to vector<4x16x128xf32>
    %322 = vector.broadcast %15 : vector<1x1x128xf32> to vector<4x16x128xf32>
    %323 = arith.mulf %321, %322 : vector<4x16x128xf32>
    %324 = arith.addf %320, %323 : vector<4x16x128xf32>
    %325 = vector.extract_strided_slice %299 {offsets = [2, 0, 0], sizes = [4, 16, 128], strides = [1, 1, 1]} : vector<6x16x128xf32> to vector<4x16x128xf32>
    %326 = vector.broadcast %24 : vector<1x1x128xf32> to vector<4x16x128xf32>
    %327 = arith.mulf %325, %326 : vector<4x16x128xf32>
    %328 = arith.addf %324, %327 : vector<4x16x128xf32>
    %c15_i32_65 = arith.constant 15 : i32
    %329 = tpu.dynamic_rotate %299 by %c15_i32_65 dim 1 : vector<6x16x128xf32>, i32 -> vector<6x16x128xf32>
    %cst_66 = arith.constant 0.000000e+00 : f32
    %330 = vector.shape_cast %36 : vector<1x16x1xi1> to vector<1x16x1xi1>
    %331 = vector.broadcast %330 : vector<1x16x1xi1> to vector<6x16x128xi1>
    %332 = vector.broadcast %cst_66 : f32 to vector<6x16x128xf32>
    %333 = arith.select %331, %329, %332 : vector<6x16x128xi1>, vector<6x16x128xf32>
    %334 = vector.extract_strided_slice %333 {offsets = [0, 0, 0], sizes = [4, 16, 128], strides = [1, 1, 1]} : vector<6x16x128xf32> to vector<4x16x128xf32>
    %335 = vector.broadcast %9 : vector<1x1x128xf32> to vector<4x16x128xf32>
    %336 = arith.mulf %334, %335 : vector<4x16x128xf32>
    %337 = arith.addf %328, %336 : vector<4x16x128xf32>
    %338 = vector.extract_strided_slice %333 {offsets = [1, 0, 0], sizes = [4, 16, 128], strides = [1, 1, 1]} : vector<6x16x128xf32> to vector<4x16x128xf32>
    %339 = vector.broadcast %18 : vector<1x1x128xf32> to vector<4x16x128xf32>
    %340 = arith.mulf %338, %339 : vector<4x16x128xf32>
    %341 = arith.addf %337, %340 : vector<4x16x128xf32>
    %342 = vector.extract_strided_slice %333 {offsets = [2, 0, 0], sizes = [4, 16, 128], strides = [1, 1, 1]} : vector<6x16x128xf32> to vector<4x16x128xf32>
    %343 = vector.broadcast %27 : vector<1x1x128xf32> to vector<4x16x128xf32>
    %344 = arith.mulf %342, %343 : vector<4x16x128xf32>
    %345 = arith.addf %341, %344 : vector<4x16x128xf32>
    %c1_67 = arith.constant 1 : index
    %c4_68 = arith.constant 4 : index
    %c0_69 = arith.constant 0 : index
    %c0_70 = arith.constant 0 : index
    %346 = vector.load %arg5[%c1_67, %c4_68, %c0_69, %c0_70] : memref<2x16x16x128xf32, #tpu.memory_space<vmem>>, vector<1x4x16x128xf32>
    %347 = vector.shape_cast %346 : vector<1x4x16x128xf32> to vector<4x16x128xf32>
    %348 = vector.shape_cast %345 : vector<4x16x128xf32> to vector<1x4x16x128xf32>
    tpu.vector_store %arg5[%c1_67, %c4_68, %c0_69, %c0_70], %348 {strides = array<i32>} : memref<2x16x16x128xf32, #tpu.memory_space<vmem>>, vector<1x4x16x128xf32>,
    %c1_71 = arith.constant 1 : index
    %c7_72 = arith.constant 7 : index
    %c0_73 = arith.constant 0 : index
    %c0_74 = arith.constant 0 : index
    %349 = vector.load %arg2[%c1_71, %c7_72, %c0_73, %c0_74] : memref<2x16x16x128xf32, #tpu.memory_space<vmem>>, vector<1x6x16x128xf32>
    %350 = vector.shape_cast %349 : vector<1x6x16x128xf32> to vector<6x16x128xf32>
    %c1_i32_75 = arith.constant 1 : i32
    %351 = tpu.dynamic_rotate %350 by %c1_i32_75 dim 1 : vector<6x16x128xf32>, i32 -> vector<6x16x128xf32>
    %cst_76 = arith.constant 0.000000e+00 : f32
    %352 = vector.shape_cast %34 : vector<1x16x1xi1> to vector<1x16x1xi1>
    %353 = vector.broadcast %352 : vector<1x16x1xi1> to vector<6x16x128xi1>
    %354 = vector.broadcast %cst_76 : f32 to vector<6x16x128xf32>
    %355 = arith.select %353, %351, %354 : vector<6x16x128xi1>, vector<6x16x128xf32>
    %356 = vector.extract_strided_slice %355 {offsets = [0, 0, 0], sizes = [4, 16, 128], strides = [1, 1, 1]} : vector<6x16x128xf32> to vector<4x16x128xf32>
    %357 = vector.broadcast %3 : vector<1x1x128xf32> to vector<4x16x128xf32>
    %358 = arith.mulf %356, %357 : vector<4x16x128xf32>
    %359 = arith.addf %31, %358 : vector<4x16x128xf32>
    %360 = vector.extract_strided_slice %355 {offsets = [1, 0, 0], sizes = [4, 16, 128], strides = [1, 1, 1]} : vector<6x16x128xf32> to vector<4x16x128xf32>
    %361 = vector.broadcast %12 : vector<1x1x128xf32> to vector<4x16x128xf32>
    %362 = arith.mulf %360, %361 : vector<4x16x128xf32>
    %363 = arith.addf %359, %362 : vector<4x16x128xf32>
    %364 = vector.extract_strided_slice %355 {offsets = [2, 0, 0], sizes = [4, 16, 128], strides = [1, 1, 1]} : vector<6x16x128xf32> to vector<4x16x128xf32>
    %365 = vector.broadcast %21 : vector<1x1x128xf32> to vector<4x16x128xf32>
    %366 = arith.mulf %364, %365 : vector<4x16x128xf32>
    %367 = arith.addf %363, %366 : vector<4x16x128xf32>
    %368 = vector.extract_strided_slice %350 {offsets = [0, 0, 0], sizes = [4, 16, 128], strides = [1, 1, 1]} : vector<6x16x128xf32> to vector<4x16x128xf32>
    %369 = vector.broadcast %6 : vector<1x1x128xf32> to vector<4x16x128xf32>
    %370 = arith.mulf %368, %369 : vector<4x16x128xf32>
    %371 = arith.addf %367, %370 : vector<4x16x128xf32>
    %372 = vector.extract_strided_slice %350 {offsets = [1, 0, 0], sizes = [4, 16, 128], strides = [1, 1, 1]} : vector<6x16x128xf32> to vector<4x16x128xf32>
    %373 = vector.broadcast %15 : vector<1x1x128xf32> to vector<4x16x128xf32>
    %374 = arith.mulf %372, %373 : vector<4x16x128xf32>
    %375 = arith.addf %371, %374 : vector<4x16x128xf32>
    %376 = vector.extract_strided_slice %350 {offsets = [2, 0, 0], sizes = [4, 16, 128], strides = [1, 1, 1]} : vector<6x16x128xf32> to vector<4x16x128xf32>
    %377 = vector.broadcast %24 : vector<1x1x128xf32> to vector<4x16x128xf32>
    %378 = arith.mulf %376, %377 : vector<4x16x128xf32>
    %379 = arith.addf %375, %378 : vector<4x16x128xf32>
    %c15_i32_77 = arith.constant 15 : i32
    %380 = tpu.dynamic_rotate %350 by %c15_i32_77 dim 1 : vector<6x16x128xf32>, i32 -> vector<6x16x128xf32>
    %cst_78 = arith.constant 0.000000e+00 : f32
    %381 = vector.shape_cast %36 : vector<1x16x1xi1> to vector<1x16x1xi1>
    %382 = vector.broadcast %381 : vector<1x16x1xi1> to vector<6x16x128xi1>
    %383 = vector.broadcast %cst_78 : f32 to vector<6x16x128xf32>
    %384 = arith.select %382, %380, %383 : vector<6x16x128xi1>, vector<6x16x128xf32>
    %385 = vector.extract_strided_slice %384 {offsets = [0, 0, 0], sizes = [4, 16, 128], strides = [1, 1, 1]} : vector<6x16x128xf32> to vector<4x16x128xf32>
    %386 = vector.broadcast %9 : vector<1x1x128xf32> to vector<4x16x128xf32>
    %387 = arith.mulf %385, %386 : vector<4x16x128xf32>
    %388 = arith.addf %379, %387 : vector<4x16x128xf32>
    %389 = vector.extract_strided_slice %384 {offsets = [1, 0, 0], sizes = [4, 16, 128], strides = [1, 1, 1]} : vector<6x16x128xf32> to vector<4x16x128xf32>
    %390 = vector.broadcast %18 : vector<1x1x128xf32> to vector<4x16x128xf32>
    %391 = arith.mulf %389, %390 : vector<4x16x128xf32>
    %392 = arith.addf %388, %391 : vector<4x16x128xf32>
    %393 = vector.extract_strided_slice %384 {offsets = [2, 0, 0], sizes = [4, 16, 128], strides = [1, 1, 1]} : vector<6x16x128xf32> to vector<4x16x128xf32>
    %394 = vector.broadcast %27 : vector<1x1x128xf32> to vector<4x16x128xf32>
    %395 = arith.mulf %393, %394 : vector<4x16x128xf32>
    %396 = arith.addf %392, %395 : vector<4x16x128xf32>
    %c1_79 = arith.constant 1 : index
    %c8_80 = arith.constant 8 : index
    %c0_81 = arith.constant 0 : index
    %c0_82 = arith.constant 0 : index
    %397 = vector.load %arg5[%c1_79, %c8_80, %c0_81, %c0_82] : memref<2x16x16x128xf32, #tpu.memory_space<vmem>>, vector<1x4x16x128xf32>
    %398 = vector.shape_cast %397 : vector<1x4x16x128xf32> to vector<4x16x128xf32>
    %399 = vector.shape_cast %396 : vector<4x16x128xf32> to vector<1x4x16x128xf32>
    tpu.vector_store %arg5[%c1_79, %c8_80, %c0_81, %c0_82], %399 {strides = array<i32>} : memref<2x16x16x128xf32, #tpu.memory_space<vmem>>, vector<1x4x16x128xf32>,
    %c1_83 = arith.constant 1 : index
    %c11_84 = arith.constant 11 : index
    %c0_85 = arith.constant 0 : index
    %c0_86 = arith.constant 0 : index
    %400 = vector.load %arg2[%c1_83, %c11_84, %c0_85, %c0_86] : memref<2x16x16x128xf32, #tpu.memory_space<vmem>>, vector<1x5x16x128xf32>
    %401 = vector.shape_cast %400 : vector<1x5x16x128xf32> to vector<5x16x128xf32>
    %cst_87 = arith.constant 0.000000e+00 : f32
    %402 = vector.broadcast %cst_87 : f32 to vector<1x16x128xf32>
    %403 = tpu.concatenate %401, %402 in 0 : vector<5x16x128xf32>, vector<1x16x128xf32> -> vector<6x16x128xf32>
    %c1_i32_88 = arith.constant 1 : i32
    %404 = tpu.dynamic_rotate %403 by %c1_i32_88 dim 1 : vector<6x16x128xf32>, i32 -> vector<6x16x128xf32>
    %cst_89 = arith.constant 0.000000e+00 : f32
    %405 = vector.shape_cast %34 : vector<1x16x1xi1> to vector<1x16x1xi1>
    %406 = vector.broadcast %405 : vector<1x16x1xi1> to vector<6x16x128xi1>
    %407 = vector.broadcast %cst_89 : f32 to vector<6x16x128xf32>
    %408 = arith.select %406, %404, %407 : vector<6x16x128xi1>, vector<6x16x128xf32>
    %409 = vector.extract_strided_slice %408 {offsets = [0, 0, 0], sizes = [4, 16, 128], strides = [1, 1, 1]} : vector<6x16x128xf32> to vector<4x16x128xf32>
    %410 = vector.broadcast %3 : vector<1x1x128xf32> to vector<4x16x128xf32>
    %411 = arith.mulf %409, %410 : vector<4x16x128xf32>
    %412 = arith.addf %31, %411 : vector<4x16x128xf32>
    %413 = vector.extract_strided_slice %408 {offsets = [1, 0, 0], sizes = [4, 16, 128], strides = [1, 1, 1]} : vector<6x16x128xf32> to vector<4x16x128xf32>
    %414 = vector.broadcast %12 : vector<1x1x128xf32> to vector<4x16x128xf32>
    %415 = arith.mulf %413, %414 : vector<4x16x128xf32>
    %416 = arith.addf %412, %415 : vector<4x16x128xf32>
    %417 = vector.extract_strided_slice %408 {offsets = [2, 0, 0], sizes = [4, 16, 128], strides = [1, 1, 1]} : vector<6x16x128xf32> to vector<4x16x128xf32>
    %418 = vector.broadcast %21 : vector<1x1x128xf32> to vector<4x16x128xf32>
    %419 = arith.mulf %417, %418 : vector<4x16x128xf32>
    %420 = arith.addf %416, %419 : vector<4x16x128xf32>
    %421 = vector.extract_strided_slice %403 {offsets = [0, 0, 0], sizes = [4, 16, 128], strides = [1, 1, 1]} : vector<6x16x128xf32> to vector<4x16x128xf32>
    %422 = vector.broadcast %6 : vector<1x1x128xf32> to vector<4x16x128xf32>
    %423 = arith.mulf %421, %422 : vector<4x16x128xf32>
    %424 = arith.addf %420, %423 : vector<4x16x128xf32>
    %425 = vector.extract_strided_slice %403 {offsets = [1, 0, 0], sizes = [4, 16, 128], strides = [1, 1, 1]} : vector<6x16x128xf32> to vector<4x16x128xf32>
    %426 = vector.broadcast %15 : vector<1x1x128xf32> to vector<4x16x128xf32>
    %427 = arith.mulf %425, %426 : vector<4x16x128xf32>
    %428 = arith.addf %424, %427 : vector<4x16x128xf32>
    %429 = vector.extract_strided_slice %403 {offsets = [2, 0, 0], sizes = [4, 16, 128], strides = [1, 1, 1]} : vector<6x16x128xf32> to vector<4x16x128xf32>
    %430 = vector.broadcast %24 : vector<1x1x128xf32> to vector<4x16x128xf32>
    %431 = arith.mulf %429, %430 : vector<4x16x128xf32>
    %432 = arith.addf %428, %431 : vector<4x16x128xf32>
    %c15_i32_90 = arith.constant 15 : i32
    %433 = tpu.dynamic_rotate %403 by %c15_i32_90 dim 1 : vector<6x16x128xf32>, i32 -> vector<6x16x128xf32>
    %cst_91 = arith.constant 0.000000e+00 : f32
    %434 = vector.shape_cast %36 : vector<1x16x1xi1> to vector<1x16x1xi1>
    %435 = vector.broadcast %434 : vector<1x16x1xi1> to vector<6x16x128xi1>
    %436 = vector.broadcast %cst_91 : f32 to vector<6x16x128xf32>
    %437 = arith.select %435, %433, %436 : vector<6x16x128xi1>, vector<6x16x128xf32>
    %438 = vector.extract_strided_slice %437 {offsets = [0, 0, 0], sizes = [4, 16, 128], strides = [1, 1, 1]} : vector<6x16x128xf32> to vector<4x16x128xf32>
    %439 = vector.broadcast %9 : vector<1x1x128xf32> to vector<4x16x128xf32>
    %440 = arith.mulf %438, %439 : vector<4x16x128xf32>
    %441 = arith.addf %432, %440 : vector<4x16x128xf32>
    %442 = vector.extract_strided_slice %437 {offsets = [1, 0, 0], sizes = [4, 16, 128], strides = [1, 1, 1]} : vector<6x16x128xf32> to vector<4x16x128xf32>
    %443 = vector.broadcast %18 : vector<1x1x128xf32> to vector<4x16x128xf32>
    %444 = arith.mulf %442, %443 : vector<4x16x128xf32>
    %445 = arith.addf %441, %444 : vector<4x16x128xf32>
    %446 = vector.extract_strided_slice %437 {offsets = [2, 0, 0], sizes = [4, 16, 128], strides = [1, 1, 1]} : vector<6x16x128xf32> to vector<4x16x128xf32>
    %447 = vector.broadcast %27 : vector<1x1x128xf32> to vector<4x16x128xf32>
    %448 = arith.mulf %446, %447 : vector<4x16x128xf32>
    %449 = arith.addf %445, %448 : vector<4x16x128xf32>
    %c1_92 = arith.constant 1 : index
    %c12_93 = arith.constant 12 : index
    %c0_94 = arith.constant 0 : index
    %c0_95 = arith.constant 0 : index
    %450 = vector.load %arg5[%c1_92, %c12_93, %c0_94, %c0_95] : memref<2x16x16x128xf32, #tpu.memory_space<vmem>>, vector<1x4x16x128xf32>
    %451 = vector.shape_cast %450 : vector<1x4x16x128xf32> to vector<4x16x128xf32>
    %452 = vector.shape_cast %449 : vector<4x16x128xf32> to vector<1x4x16x128xf32>
    tpu.vector_store %arg5[%c1_92, %c12_93, %c0_94, %c0_95], %452 {strides = array<i32>} : memref<2x16x16x128xf32, #tpu.memory_space<vmem>>, vector<1x4x16x128xf32>,
    return
  }
  func.func @transform_0(%arg0: i32, %arg1: i32) -> (i32, i32, i32, i32) {
    %c0_i32 = arith.constant 0 : i32
    %c0_i32_0 = arith.constant 0 : i32
    %c0_i32_1 = arith.constant 0 : i32
    return %arg1, %c0_i32, %c0_i32_0, %arg0 : i32, i32, i32, i32
  }
  func.func @transform_1(%arg0: i32, %arg1: i32) -> (i32, i32, i32) {
    %c0_i32 = arith.constant 0 : i32
    %c0_i32_0 = arith.constant 0 : i32
    %c0_i32_1 = arith.constant 0 : i32
    return %c0_i32, %c0_i32_0, %arg0 : i32, i32, i32
  }
  func.func @transform_2(%arg0: i32, %arg1: i32) -> (i32, i32) {
    %c0_i32 = arith.constant 0 : i32
    %c0_i32_0 = arith.constant 0 : i32
    return %c0_i32, %arg0 : i32, i32
  }
  func.func @transform_3(%arg0: i32, %arg1: i32) -> (i32, i32, i32, i32) {
    %c0_i32 = arith.constant 0 : i32
    %c0_i32_0 = arith.constant 0 : i32
    %c0_i32_1 = arith.constant 0 : i32
    return %arg1, %c0_i32, %c0_i32_0, %arg0 : i32, i32, i32, i32
  }
}

</mosaic_0001>

<bundles_post_ra>
// kernel: tpu_custom_call.1
= control target key start
LH: loop header
LB: loop body
LE: loop exit
PB: predicated region body
PF: predicated region fallthrough
CT: control target
= control target key end

     0   :  { %s5091_s0 = inlined_call_operand.hbm [shape: f32[2,16,16,256], index: 0, kind: input, shape index: {}]   ;;  %s5092_s1 = inlined_call_operand.hbm [shape: f32[3,3,256], index: 1, kind: input, shape index: {}]   ;;  %s5093_s2 = inlined_call_operand.vmem [shape: f32[1,256], index: 2, kind: input, shape index: {}]   ;;  %s5094_s3 = inlined_call_operand.hbm [shape: f32[2,16,16,256], index: 3, kind: output, shape index: {}]  }
   0x1   :  { %5096 = sst [smem:[#allocation12_spill]] %s5091_s0 }
   0x2   :  { %8 = vsyncpa [#allocation3], 0 }
   0x3   :  { %10 = vsyncpa [#allocation3 + $0x1], 0 }
   0x4   :  { %11 = vsyncpa [#allocation6], 0 }
   0x5   :  { %13 = vsyncpa [#allocation6 + $0x1], 0 }
   0x6   :  { %14 = vsyncpa [#allocation4], 0 }
   0x7   :  { %16 = vsyncpa [#allocation4 + $0x1], 0  ;;  %s2693_s12 = smov 0   ;;  %s2695_s13 = smov 0  }
   0x8   :  { %s2697_s14 = smov 0   ;;  %s2699_s15 = smov 0  }
   0x9   :  { %s2701_s16 = smov 0   ;;  %s2703_s17 = smov 0  }
   0xa LB: > { %s2292_s18 = sadd.s32 4294967295, %s2660_s17   ;;  %s2293_s19 = sadd.s32 4294967294, %s2660_s17   ;;  %s2660_s17 = sphi %s2703_s17, %s22_s17   ;;  %s2656_s16 = sphi %s2701_s16, %s5110_s16   ;;  %s2652_s15 = sphi %s2699_s15, %s5109_s15   ;;  %s2648_s14 = sphi %s2697_s14, %s5108_s14   ;;  %s2644_s13 = sphi %s2695_s13, %s5107_s13   ;;  %s2640_s12 = sphi %s2693_s12, %s5106_s12  }
   0xb   : > { %s34_s20 = sadd.s32 1, %s2656_s16  ;;  %s43_s21 = sadd.s32 1, %s2648_s14 }
   0xc   : > { %p36_p0 = scmp.ge.s32.totalorder %s34_s20, 2  ;;  %p50_p1 = scmp.ne.s32.totalorder %s2648_s14, %s2644_s13 }
   0xd   : > { %p51_p2 = scmp.eq.s32.totalorder %s2660_s17, 0  ;;  %p56_p3 = scmp.ne.s32.totalorder %s2644_s13, %s2640_s12 }
   0xe   : > { %s5112_s20 = smov (%p36_p0, %s34_s20), 0  ;;  %p57_p5 = scmp.eq.s32.totalorder %s2292_s18, 0 }
   0xf   : > { %5097 = sst [smem:[#allocation11_spill]] %s5112_s20  ;;  %p2734_p4 = por %p51_p2, %p50_p1 }
  0x10   : > { %s39_s23 = ssub.s32 %s2656_s16, %s5112_s20  ;;  %p134_p6 = scmp.eq.s32.totalorder %s2292_s18, 1 }
  0x11   : > { %p41_p7 = scmp.eq.s32.totalorder %s39_s23, 0  ;;  %p2740_p8 = por %p57_p5, %p56_p3 }
  0x12   : > { %p2744_p9 = por %p134_p6, %p50_p1  ;;  %p140_p10 = scmp.eq.s32.totalorder %s2293_s19, 1 }
  0x13   : > { %s2749_s26 = scalar_select %p41_p7, %s2648_s14, %s43_s21  }
  0x14   : > { %p2751_p11 = por %p140_p10, %p56_p3  ;;  %p2295_p12 = scmp.ge.s32.totalorder %s2660_s17, 2 }
  0x15   : > { %p2460_p13 = scmp.lt.s32.totalorder %s2660_s17, 2  ;;  %s2758_s28 = sand.u32 1, %s2648_s14  }
  0x16   : > { %s2296_s29 = sshll.u32 %s2758_s28, 9  ;;  %s2297_s30 = sshll.u32 %s2656_s16, 7 }
  0x17   : > { %s5102_s0 = sld [smem:[#allocation12_spill]]  ;;  %s164_s7 = scalar_lea.vmem [#allocation2], %s2296_s29 }
  0x18   : > { %s173_s8 = sshll.u32 %s164_s7, 4  ;;  %p2767_p0 = pnand %p2460_p13, %p2734_p4  ;;  %s174_s8 = int_to_ptr.vmem [resolvable:$true] %s173_s8 }
  0x19   : > { %s161_s10 = scalar_lea.sflag [#allocation3], %s2758_s28  ;;  %s2533_s11 = scalar_lea.vmem %s174_s8, 8192 }
  0x1a   : > { %p2522_p1 = pneg %p2767_p0  ;;  %p2534_p2 = scmp.ne.s32.totalorder %s174_s8, %s2533_s11 }
  0x1b   : > { %s2662_s18 = smov [#allocation2]  }
  0x1c   : > { %p2536_p3 = pnand %p2534_p2, %p2522_p1  ;;  %s2538_s19 = sshll.u32 %s2662_s18, 4  ;;  %s2539_s19 = int_to_ptr.vmem [resolvable:$false] %s2538_s19 }
  0x1d   : > { %s172_s6 = scalar_lea.hbm %s5102_s0, %s2297_s30  ;;  %s2540_s21 = scalar_lea.vmem %s2539_s19, 16384 }
  0x1e   : > { %p2537_p5 = pneg %p2536_p3  ;;  %p2541_p6 = scmp.lt.s32.totalorder %s174_s8, %s2539_s19 }
  0x1f   : > { %p2542_p4 = scmp.lt.s32.totalorder %s2540_s21, %s2533_s11 }
  0x21   : > { %p2543_p7 = por %p2542_p4, %p2541_p6 }
  0x23   : > { %p2544_p10 = pnand %p2543_p7, %p2537_p5 }
  0x25   : > { %2547 = shalt.err (!%p2544_p10)
}
  0x26   : > { %s2663_s22 = smov 256   ;;  %s2664_s23 = smov 128  }
  0x27   : > { %s2665_s29 = smov 8   ;;  %p2299_p13 = scmp.ge.s32.totalorder %s2660_s17, 1 }
  0x28   : > { %2452 = dma.hbm_to_vmem [thread:$0]  (!%p2767_p0), %s172_s6, 8192, %s174_s8, %s161_s10, %s2663_s22, %s2664_s23, %s2665_s29  }
  0x29   : > { %p207_p2 = scmp.lt.s32.totalorder %s2660_s17, 3  ;;  %s2441_s30 = smul.u32 12, %s2758_s28 }
  0x2a   : > { %s2298_s5 = sshll.u32 %s2656_s16, 6  ;;  %s184_s0 = scalar_lea.sflag [#allocation6], %s2758_s28 }
  0x2b   : > { %p2783_p3 = pnand %p2299_p13, %p207_p2  ;;  %s192_s18 = scalar_lea.hbm %s5092_s1, %s2298_s5 }
  0x2c   : > { %s187_s19 = scalar_lea.vmem [#allocation5], %s2441_s30  ;;  %s2666_s6 = smov [#allocation5]  }
  0x2d   : > { %s193_s21 = sshll.u32 %s187_s19, 4  ;;  %s2566_s8 = sshll.u32 %s2666_s6, 4  ;;  %s194_s21 = int_to_ptr.vmem [resolvable:$true] %s193_s21  ;;  %s2567_s8 = int_to_ptr.vmem [resolvable:$false] %s2566_s8 }
  0x2e   : > { %s2561_s20 = scalar_lea.vmem %s194_s21, 192  ;;  %s2568_s10 = scalar_lea.vmem %s2567_s8, 384 }
  0x2f   : > { %p2562_p5 = scmp.ne.s32.totalorder %s194_s21, %s2561_s20  ;;  %p2569_p7 = scmp.lt.s32.totalorder %s194_s21, %s2567_s8 }
  0x30   : > { %p2570_p10 = scmp.lt.s32.totalorder %s2568_s10, %s2561_s20 }
  0x31   : > { %p2564_p6 = pnand %p2562_p5, %p2522_p1 }
  0x32   : > { %p2571_p13 = por %p2570_p10, %p2569_p7 }
  0x33   : > { %p2565_p4 = pneg %p2564_p6 }
  0x35   : > { %p2572_p2 = pnand %p2571_p13, %p2565_p4 }
  0x37   : > { %2575 = shalt.err (!%p2572_p2)
}
  0x38   : > { %s2667_s22 = smov 64   ;;  %s2668_s29 = smov 4  }
  0x39   : > { %2455 = dma.hbm_to_vmem [thread:$0]  (!%p2767_p0), %s192_s18, 192, %s194_s21, %s184_s0, %s2664_s23, %s2667_s22, %s2668_s29  }
  0x3a   : > { %211 = sbr.rel (%p2783_p3) target bundleno = 462 (0x1ce), region = 32  ;;  %s2801_s28 = sand.u32 (!%p2783_p3), 1, %s2644_s13  }
  0x3b   : > { %s2300_s20 = sshll.u32 (!%p2783_p3), %s2801_s28, 9  ;;  %s214_s30 = scalar_lea.sflag (!%p2783_p3), [#allocation3], %s2801_s28 }
  0x3c   : > { %s2807_s5 = scalar_lea.vmem (!%p2783_p3), [#allocation2], %s2300_s20 }
  0x3f   : > { %2627 = dma.done.wait (%p2740_p8), %s214_s30, 8192  }
  0x40   : > { %2629 = vsyncadd (%p2740_p8), %s214_s30, 4294959104  ;;  %s2442_s0 = smul.u32 12, %s2801_s28  ;;  %s223_s9 = scalar_lea.sflag [#allocation6], %s2801_s28 }
  0x42   : > { %s226_s23 = scalar_lea.vmem [#allocation5], %s2442_s0 }
  0x43   : > { %2631 = dma.done.wait (%p2740_p8), %s223_s9, 192  }
  0x44   : > { %2633 = vsyncadd (%p2740_p8), %s223_s9, 4294967104  ;;  %p258_p0 = scmp.lt.s32.totalorder %s2652_s15, 1  ;;  %v272_v0 = vlaneseq  ;;  %v262_v4 = vld [vmem:[%s226_s23] sm:$0x7]  ;;  %v263_v5 = vld [vmem:[%s226_s23 + $0x4] sm:$0x7] }
  0x45   : > { %v264_v6 = vld [vmem:[%s226_s23 + $0x8] sm:$0x7]  ;;  %v2833_v7 = vld [vmem:[%s2807_s5] sm:$0xff]  ;;  %v2852_v14 = vld [vmem:[%s2807_s5 + $0x18] sm:$0xff]  ;;  %s3008_s24 = scalar_lea.vmem [#allocation7], %s2300_s20  ;;  %s2438_s19 = sshll.u32 %s2652_s15, 7 }
  0x46   : > { %s259_s4 = scalar_select %p258_p0, %s2652_s15, 1  ;;  %v2821_v1 = vshrl.u32 %v272_v0, 7  ;;  %v2836_v8 = vld [vmem:[%s2807_s5 + $0x8] sm:$0xff]  ;;  %v2849_v13 = vld [vmem:[%s2807_s5 + $0x10] sm:$0xff]  ;;  %v289_v15 = vrot.slane %v2833_v7, 7  ;;  %v295_v20 = vrot.slane %v2852_v14, 7 }
  0x47   : > { %v294_v16 = vrot.slane %v2836_v8, 7  ;;  %v290_v19 = vrot.slane %v2849_v13, 7  ;;  %v445_v26 = vrot.slane %v2833_v7, 1  ;;  %v446_v30 = vrot.slane %v2849_v13, 1  ;;  %v2921_v50 = vld [vmem:[%s2807_s5 + $0x20] sm:$0xff]  ;;  %v2924_v51 = vld [vmem:[%s2807_s5 + $0x28] sm:$0xff]  ;;  %s5038_s10 = scalar_lea.hbm %s5094_s3, %s2438_s19 }
  0x48   : > { %v328_v2 = vsub.s32 0, %v2821_v1  ;;  %s2827_s18 = scalar_lea.vmem %s5093_s2, %s259_s4  ;;  %vm275_vm0 = vcmp.ge.s32.totalorder %v2821_v1, 1  ;;  %vm299_vm1 = vcmp.lt.s32.totalorder %v2821_v1, 1  ;;  %v388_v3 = vsub.s32 1, %v2821_v1  ;;  %s2175_s21 = sshll.u32 %s3008_s24, 4  ;;  %s5041_s21 = int_to_ptr.vmem [resolvable:$true] %s2175_s21 }
  0x49   : > { %vm455_vm2 = vcmp.lt.s32.totalorder %v2821_v1, 7  ;;  %v484_v10 = vsub.s32 2, %v2821_v1  ;;  %v2843_v11 = vadd.s32 8, %v2821_v1  ;;  %v2846_v12 = vld [vmem:[%s2827_s18] ss:$0 sm:$0xff]  ;;  %v305_v23 = vsel %vm299_vm1, %v294_v16, %v289_v15  ;;  %s2160_s15 = scalar_lea.sflag [#allocation4], %s2801_s28 }
  0x4a   : > { %v2838_v9 = vrot.slane %v262_v4, %v328_v2  ;;  %v2856_v17 = vrot.slane %v263_v5, %v328_v2  ;;  %v2858_v18 = vrot.slane %v264_v6, %v328_v2  ;;  %v2863_v22 = vrot.slane %v262_v4, %v388_v3  ;;  %s2576_s22 = scalar_lea.vmem %s5041_s21, 8192  ;;  %s2669_s29 = smov [#allocation7]  }
  0x4b   : > { %v2867_v24 = vrot.slane %v263_v5, %v388_v3  ;;  %v2869_v25 = vrot.slane %v264_v6, %v388_v3  ;;  %v306_v27 = vsel %vm299_vm1, %v295_v20, %v290_v19  ;;  %v316_v28 = vsel %vm275_vm0, %v305_v23, 0.0  ;;  %p2577_p8 = scmp.ne.s32.totalorder %s5041_s21, %s2576_s22  ;;  %s2580_s20 = sshll.u32 %s2669_s29, 4  ;;  %s2581_s20 = int_to_ptr.vmem [resolvable:$false] %s2580_s20 }
  0x4c   : > { %v330_v21 = vmul.f32 0.0, %v2838_v9  ;;  %v2882_v31 = vsel %vm275_vm0, %v306_v27, 0.0  ;;  %v350_v32 = vmul.f32 %v2856_v17, %v316_v28  ;;  %v450_v33 = vrot.slane %v2836_v8, 1  ;;  %s2582_s30 = scalar_lea.vmem %s2581_s20, 16384  ;;  %p2583_p5 = scmp.lt.s32.totalorder %s5041_s21, %s2581_s20 }
  0x4d   : > { %v451_v34 = vrot.slane %v2852_v14, 1  ;;  %v370_v35 = vmul.f32 %v2858_v18, %v2882_v31  ;;  %v2890_v36 = vmul.f32 0.0, %v2863_v22  ;;  %v2892_v37 = vrot.slane %v262_v4, %v484_v10  ;;  %p2578_p1 = pnand %p2577_p8, %p2744_p9  ;;  %p2584_p6 = scmp.lt.s32.totalorder %s2582_s30, %s2576_s22 }
  0x4e   : > { %v2877_v29 = vadd.f32 %v2846_v12, %v330_v21  ;;  %v2894_v38 = vrot.slane %v263_v5, %v484_v10  ;;  %v409_v40 = vmul.f32 %v2867_v24, %v2833_v7  ;;  %v429_v41 = vmul.f32 %v2869_v25, %v2849_v13 }
  0x4f   : > { %v2901_v42 = vrot.slane %v264_v6, %v484_v10  ;;  %v456_v43 = vsel %vm455_vm2, %v445_v26, %v450_v33  ;;  %v2907_v44 = vsel %vm455_vm2, %v446_v30, %v451_v34  ;;  %vm278_vm3 = vcmp.lt.s32.totalorder %v2843_v11, 15  ;;  %p2579_p3 = pneg %p2578_p1  ;;  %p2585_p4 = por %p2584_p6, %p2583_p5 }
  0x50   : > { %v358_v39 = vadd.f32 %v350_v32, %v2877_v29  ;;  %v300_v45 = vsel %vm299_vm1, %v289_v15, %v294_v16  ;;  %v2913_v47 = vmul.f32 0.0, %v2892_v37  ;;  %v2917_v48 = vsel %vm299_vm1, %v290_v19, %v295_v20 }
  0x51   : > { %v351_v49 = vmul.f32 %v2856_v17, %v300_v45  ;;  %v506_v52 = vmul.f32 %v2894_v38, %v456_v43  ;;  %v371_v53 = vmul.f32 %v2858_v18, %v2917_v48  ;;  %v461_v54 = vsel %vm455_vm2, %v450_v33, %v445_v26  ;;  %p2586_p7 = pnand %p2585_p4, %p2579_p3 }
  0x52   : > { %v378_v46 = vadd.f32 %v370_v35, %v358_v39  ;;  %v462_v55 = vsel %vm455_vm2, %v451_v34, %v446_v30  ;;  %v526_v57 = vmul.f32 %v2901_v42, %v2907_v44  ;;  %v410_v59 = vmul.f32 %v2867_v24, %v2836_v8 }
  0x53   : > { %v359_v58 = vadd.f32 %v351_v49, %v2877_v29  ;;  %v473_v60 = vsel %vm278_vm3, %v461_v54, 0.0  ;;  %v2943_v61 = vsel %vm278_vm3, %v462_v55, 0.0  ;;  %v291_v62 = vrot.slane %v2921_v50, 7 }
  0x54   : > { %v397_v56 = vadd.f32 %v2890_v36, %v378_v46  ;;  %v296_v63 = vrot.slane %v2924_v51, 7  ;;  %v332_v3 = vmul.f32 %v2838_v9, %v316_v28  ;;  %v352_v4 = vmul.f32 %v2856_v17, %v2882_v31 }
  0x55   : > { %v379_v2 = vadd.f32 %v371_v53, %v359_v58  ;;  %v430_v5 = vmul.f32 %v2869_v25, %v2852_v14  ;;  %v507_v6 = vmul.f32 %v2894_v38, %v473_v60  ;;  %v527_v10 = vmul.f32 %v2901_v42, %v2943_v61 }
  0x56   : > { %v417_v0 = vadd.f32 %v409_v40, %v397_v56  ;;  %v307_v15 = vsel %vm299_vm1, %v296_v63, %v291_v62  ;;  %v340_v21 = vadd.f32 %v2846_v12, %v332_v3  ;;  %v391_v26 = vmul.f32 %v2863_v22, %v2833_v7 }
  0x57   : > { %v398_v19 = vadd.f32 %v2890_v36, %v379_v2  ;;  %v2960_v20 = vsel %vm275_vm0, %v307_v15, 0.0  ;;  %v447_v27 = vrot.slane %v2921_v50, 1  ;;  %v452_v28 = vrot.slane %v2924_v51, 1 }
  0x58   : > { %v437_v16 = vadd.f32 %v429_v41, %v417_v0  ;;  %v372_v23 = vmul.f32 %v2858_v18, %v2960_v20  ;;  %v360_v33 = vadd.f32 %v352_v4, %v340_v21  ;;  %v411_v34 = vmul.f32 %v2867_v24, %v2849_v13 }
  0x59   : > { %v418_v32 = vadd.f32 %v410_v59, %v398_v19  ;;  %v431_v35 = vmul.f32 %v2869_v25, %v2921_v50  ;;  %v488_v39 = vmul.f32 %v2892_v37, %v456_v43  ;;  %v333_v7 = vmul.f32 %v2838_v9, %v300_v45 }
  0x5a   : > { %v494_v30 = vadd.f32 %v2913_v47, %v437_v16  ;;  %v353_v40 = vmul.f32 %v2856_v17, %v2917_v48  ;;  %v380_v49 = vadd.f32 %v372_v23, %v360_v33  ;;  %v2980_v53 = vsel %vm299_vm1, %v291_v62, %v296_v63  ;;  %v2998_v63 = vld [vmem:[%s2807_s5 + $0x38] sm:$0xff] }
  0x5b   : > { %v438_v46 = vadd.f32 %v430_v5, %v418_v32  ;;  %v2984_v54 = vsel %vm455_vm2, %v447_v27, %v452_v28  ;;  %v508_v43 = vmul.f32 %v2894_v38, %v2907_v44  ;;  %v341_v45 = vadd.f32 %v2846_v12, %v333_v7 }
  0x5c   : > { %v514_v41 = vadd.f32 %v506_v52, %v494_v30  ;;  %v373_v55 = vmul.f32 %v2858_v18, %v2980_v53  ;;  %v2992_v52 = vld [vmem:[%s2807_s5 + $0x30] sm:$0xff]  ;;  %v399_v59 = vadd.f32 %v391_v26, %v380_v49  ;;  %v528_v62 = vmul.f32 %v2901_v42, %v2984_v54 }
  0x5d   : > { %v495_v58 = vadd.f32 %v2913_v47, %v438_v46  ;;  %v361_v0 = vadd.f32 %v353_v40, %v341_v45  ;;  %v392_v2 = vmul.f32 %v2863_v22, %v2836_v8  ;;  %v412_v3 = vmul.f32 %v2867_v24, %v2852_v14 }
  0x5e   : > { %v534_v56 = vadd.f32 %v526_v57, %v514_v41  ;;  %v432_v4 = vmul.f32 %v2869_v25, %v2924_v51  ;;  %v419_v5 = vadd.f32 %v411_v34, %v399_v59  ;;  %v463_v15 = vsel %vm455_vm2, %v452_v28, %v447_v27 }
  0x5f   : > { %v515_v57 = vadd.f32 %v507_v6, %v495_v58  ;;  %v292_v16 = vrot.slane %v2992_v52, 7  ;;  %v381_v8 = vadd.f32 %v373_v55, %v361_v0  ;;  %v489_v19 = vmul.f32 %v2892_v37, %v473_v60 }
  0x60   : > { %542 = vst [vmem:[%s3008_s24] sm:$0xff] %v534_v56  ;;  %v297_v21 = vrot.slane %v2998_v63, 7  ;;  %v334_v23 = vmul.f32 %v2838_v9, %v2882_v31  ;;  %v439_v30 = vadd.f32 %v431_v35, %v419_v5  ;;  %v509_v6 = vmul.f32 %v2894_v38, %v2943_v61 }
  0x61   : > { %v535_v26 = vadd.f32 %v527_v10, %v515_v57  ;;  %v354_v32 = vmul.f32 %v2856_v17, %v2960_v20  ;;  %v400_v33 = vadd.f32 %v392_v2, %v381_v8  ;;  %v3024_v27 = vsel %vm278_vm3, %v463_v15, 0.0 }
  0x62   : > { %v308_v60 = vsel %vm299_vm1, %v297_v21, %v292_v16  ;;  %v342_v28 = vadd.f32 %v2846_v12, %v334_v23  ;;  %v496_v31 = vadd.f32 %v488_v39, %v439_v30  ;;  %v393_v34 = vmul.f32 %v2863_v22, %v2849_v13 }
  0x63   : > { %543 = vst [vmem:[%s3008_s24 + $0x8] sm:$0xff] %v535_v26  ;;  %v3032_v10 = vsel %vm275_vm0, %v308_v60, 0.0  ;;  %v448_v35 = vrot.slane %v2992_v52, 1  ;;  %v420_v7 = vadd.f32 %v412_v3, %v400_v33  ;;  %v453_v46 = vrot.slane %v2998_v63, 1 }
  0x64   : > { %v362_v40 = vadd.f32 %v354_v32, %v342_v28  ;;  %v374_v41 = vmul.f32 %v2858_v18, %v3032_v10  ;;  %v516_v49 = vadd.f32 %v508_v43, %v496_v31  ;;  %v529_v39 = vmul.f32 %v2901_v42, %v3024_v27 }
  0x65   : > { %v413_v45 = vmul.f32 %v2867_v24, %v2921_v50  ;;  %v433_v13 = vmul.f32 %v2869_v25, %v2992_v52  ;;  %v440_v55 = vadd.f32 %v432_v4, %v420_v7  ;;  %v490_v58 = vmul.f32 %v2892_v37, %v2907_v44 }
  0x66   : > { %v382_v56 = vadd.f32 %v374_v41, %v362_v40  ;;  %v335_v43 = vmul.f32 %v2838_v9, %v2917_v48  ;;  %v536_v59 = vadd.f32 %v528_v62, %v516_v49  ;;  %v3052_v0 = vsel %vm455_vm2, %v448_v35, %v453_v46  ;;  %v3064_v48 = vld [vmem:[%s2807_s5 + $0x40] sm:$0xff]  ;;  %v3067_v62 = vld [vmem:[%s2807_s5 + $0x48] sm:$0xff] }
  0x67   : > { %v3056_v2 = vsel %vm299_vm1, %v292_v16, %v297_v21  ;;  %v355_v3 = vmul.f32 %v2856_v17, %v2980_v53  ;;  %v497_v4 = vadd.f32 %v489_v19, %v440_v55  ;;  %v510_v15 = vmul.f32 %v2894_v38, %v2984_v54 }
  0x68   : > { %v401_v57 = vadd.f32 %v393_v34, %v382_v56  ;;  %v343_v5 = vadd.f32 %v2846_v12, %v335_v43  ;;  %v375_v44 = vmul.f32 %v2858_v18, %v3056_v2  ;;  %544 = vst [vmem:[%s3008_s24 + $0x10] sm:$0xff] %v536_v59  ;;  %v530_v16 = vmul.f32 %v2901_v42, %v3052_v0 }
  0x69   : > { %v394_v8 = vmul.f32 %v2863_v22, %v2852_v14  ;;  %v414_v19 = vmul.f32 %v2867_v24, %v2924_v51  ;;  %v517_v21 = vadd.f32 %v509_v6, %v497_v4  ;;  %v464_v30 = vsel %vm455_vm2, %v453_v46, %v448_v35 }
  0x6a   : > { %v421_v23 = vadd.f32 %v413_v45, %v401_v57  ;;  %v363_v26 = vadd.f32 %v355_v3, %v343_v5  ;;  %v434_v32 = vmul.f32 %v2869_v25, %v2998_v63  ;;  %v491_v33 = vmul.f32 %v2892_v37, %v2943_v61 }
  0x6b   : > { %v293_v60 = vrot.slane %v3064_v48, 7  ;;  %v298_v14 = vrot.slane %v3067_v62, 7  ;;  %v537_v28 = vadd.f32 %v529_v39, %v517_v21  ;;  %v336_v6 = vmul.f32 %v2838_v9, %v2960_v20 }
  0x6c   : > { %v441_v31 = vadd.f32 %v433_v13, %v421_v23  ;;  %v383_v34 = vadd.f32 %v375_v44, %v363_v26  ;;  %v3090_v7 = vsel %vm278_vm3, %v464_v30, 0.0  ;;  %v511_v35 = vmul.f32 %v2894_v38, %v3024_v27 }
  0x6d   : > { %v309_v61 = vsel %vm299_vm1, %v298_v14, %v293_v60  ;;  %v356_v40 = vmul.f32 %v2856_v17, %v3032_v10  ;;  %545 = vst [vmem:[%s3008_s24 + $0x18] sm:$0xff] %v537_v28  ;;  %v344_v20 = vadd.f32 %v2846_v12, %v336_v6  ;;  %v531_v39 = vmul.f32 %v2901_v42, %v3090_v7 }
  0x6e   : > { %v498_v41 = vadd.f32 %v490_v58, %v441_v31  ;;  %v402_v46 = vadd.f32 %v394_v8, %v383_v34  ;;  %v3101_v49 = vsel %vm275_vm0, %v309_v61, 0.0  ;;  %v449_v13 = vrot.slane %v3064_v48, 1 }
  0x6f   : > { %v376_v45 = vmul.f32 %v2858_v18, %v3101_v49  ;;  %v454_v55 = vrot.slane %v3067_v62, 1  ;;  %v364_v43 = vadd.f32 %v356_v40, %v344_v20  ;;  %v395_v59 = vmul.f32 %v2863_v22, %v2921_v50 }
  0x70   : > { %v518_v56 = vadd.f32 %v510_v15, %v498_v41  ;;  %v422_v58 = vadd.f32 %v414_v19, %v402_v46  ;;  %v415_v3 = vmul.f32 %v2867_v24, %v2992_v52  ;;  %v435_v4 = vmul.f32 %v2869_v25, %v3064_v48 }
  0x71   : > { %v492_v57 = vmul.f32 %v2892_v37, %v2984_v54  ;;  %v337_v5 = vmul.f32 %v2838_v9, %v2980_v53  ;;  %v384_v8 = vadd.f32 %v376_v45, %v364_v43  ;;  %v3122_v19 = vsel %vm299_vm1, %v293_v60, %v298_v14  ;;  %v3134_v53 = vld [vmem:[%s2807_s5 + $0x50] sm:$0xff]  ;;  %v3142_v60 = vld [vmem:[%s2807_s5 + $0x58] sm:$0xff] }
  0x72   : > { %v538_v44 = vadd.f32 %v530_v16, %v518_v56  ;;  %v442_v15 = vadd.f32 %v434_v32, %v422_v58  ;;  %v3126_v50 = vsel %vm455_vm2, %v449_v13, %v454_v55  ;;  %v357_v54 = vmul.f32 %v2856_v17, %v3056_v2 }
  0x73   : > { %v345_v21 = vadd.f32 %v2846_v12, %v337_v5  ;;  %v377_v23 = vmul.f32 %v2858_v18, %v3122_v19  ;;  %v403_v26 = vadd.f32 %v395_v59, %v384_v8  ;;  %v512_v30 = vmul.f32 %v2894_v38, %v3052_v0 }
  0x74   : > { %546 = vst [vmem:[%s3008_s24 + $0x20] sm:$0xff] %v538_v44  ;;  %v499_v16 = vadd.f32 %v491_v33, %v442_v15  ;;  %v532_v32 = vmul.f32 %v2901_v42, %v3126_v50  ;;  %v396_v28 = vmul.f32 %v2863_v22, %v2924_v51  ;;  %v416_v31 = vmul.f32 %v2867_v24, %v2998_v63 }
  0x75   : > { %v365_v14 = vadd.f32 %v357_v54, %v345_v21  ;;  %v436_v34 = vmul.f32 %v2869_v25, %v3067_v62  ;;  %v423_v6 = vadd.f32 %v415_v3, %v403_v26  ;;  %v465_v61 = vsel %vm455_vm2, %v454_v55, %v449_v13 }
  0x76   : > { %v519_v33 = vadd.f32 %v511_v35, %v499_v16  ;;  %v565_v40 = vrot.slane %v3134_v53, 7  ;;  %v493_v46 = vmul.f32 %v2892_v37, %v3024_v27  ;;  %v571_v51 = vrot.slane %v3142_v60, 7 }
  0x77   : > { %v385_v41 = vadd.f32 %v377_v23, %v365_v14  ;;  %v599_v20 = vmul.f32 %v2838_v9, %v3032_v10  ;;  %v443_v56 = vadd.f32 %v435_v4, %v423_v6  ;;  %v513_v35 = vmul.f32 %v2894_v38, %v3090_v7 }
  0x78   : > { %v539_v45 = vadd.f32 %v531_v39, %v519_v33  ;;  %v615_v58 = vmul.f32 %v2856_v17, %v3101_v49  ;;  %v3164_v55 = vsel %vm278_vm3, %v465_v61, 0.0  ;;  %v583_v27 = vsel %vm299_vm1, %v571_v51, %v565_v40 }
  0x79   : > { %v404_v13 = vadd.f32 %v396_v28, %v385_v41  ;;  %v607_v43 = vadd.f32 %v2846_v12, %v599_v20  ;;  %v500_v10 = vadd.f32 %v492_v57, %v443_v56  ;;  %v3172_v39 = vsel %vm275_vm0, %v583_v27, 0.0 }
  0x7a   : > { %547 = vst [vmem:[%s3008_s24 + $0x28] sm:$0xff] %v539_v45  ;;  %v647_v59 = vmul.f32 %v2863_v22, %v2992_v52  ;;  %v697_v3 = vrot.slane %v3134_v53, 1  ;;  %v631_v44 = vmul.f32 %v3172_v39, %v2858_v18  ;;  %v703_v15 = vrot.slane %v3142_v60, 1 }
  0x7b   : > { %v424_v4 = vadd.f32 %v416_v31, %v404_v13  ;;  %v623_v5 = vadd.f32 %v615_v58, %v607_v43  ;;  %v520_v8 = vadd.f32 %v512_v30, %v500_v10  ;;  %v533_v57 = vmul.f32 %v2901_v42, %v3164_v55 }
  0x7c   : > { %v663_v21 = vmul.f32 %v2867_v24, %v3064_v48  ;;  %v679_v52 = vmul.f32 %v3134_v53, %v2869_v25  ;;  %v731_v16 = vmul.f32 %v2892_v37, %v3052_v0  ;;  %v600_v26 = vmul.f32 %v2838_v9, %v3056_v2  ;;  %v3204_v2 = vld [vmem:[%s2807_s5 + $0x60] sm:$0xff] }
  0x7d   : > { %v444_v54 = vadd.f32 %v436_v34, %v424_v4  ;;  %v639_v23 = vadd.f32 %v631_v44, %v623_v5  ;;  %v540_v30 = vadd.f32 %v532_v32, %v520_v8  ;;  %v3192_v14 = vsel %vm455_vm2, %v697_v3, %v703_v15  ;;  %v3207_v32 = vld [vmem:[%s2807_s5 + $0x68] sm:$0xff] }
  0x7e   : > { %v3196_v28 = vsel %vm299_vm1, %v565_v40, %v571_v51  ;;  %v616_v31 = vmul.f32 %v2856_v17, %v3122_v19  ;;  %v608_v6 = vadd.f32 %v2846_v12, %v600_v26  ;;  %v747_v61 = vmul.f32 %v2894_v38, %v3126_v50 }
  0x7f   : > { %v501_v34 = vadd.f32 %v493_v46, %v444_v54  ;;  %v655_v33 = vadd.f32 %v647_v59, %v639_v23  ;;  %v632_v0 = vmul.f32 %v3196_v28, %v2858_v18  ;;  %548 = vst [vmem:[%s3008_s24 + $0x30] sm:$0xff] %v540_v30  ;;  %v763_v40 = vmul.f32 %v3192_v14, %v2901_v42 }
  0x80   : > { %v648_v41 = vmul.f32 %v2863_v22, %v2998_v63  ;;  %v664_v46 = vmul.f32 %v2867_v24, %v3067_v62  ;;  %v624_v45 = vadd.f32 %v616_v31, %v608_v6  ;;  %v715_v56 = vsel %vm455_vm2, %v703_v15, %v697_v3 }
  0x81   : > { %v521_v51 = vadd.f32 %v513_v35, %v501_v34  ;;  %v671_v20 = vadd.f32 %v663_v21, %v655_v33  ;;  %v680_v58 = vmul.f32 %v3142_v60, %v2869_v25  ;;  %v732_v13 = vmul.f32 %v2892_v37, %v3090_v7 }
  0x82   : > { %v566_v27 = vrot.slane %v3204_v2, 7  ;;  %v572_v63 = vrot.slane %v3207_v32, 7  ;;  %v640_v59 = vadd.f32 %v632_v0, %v624_v45  ;;  %v601_v35 = vmul.f32 %v2838_v9, %v3101_v49 }
  0x83   : > { %v541_v43 = vadd.f32 %v533_v57, %v521_v51  ;;  %v687_v10 = vadd.f32 %v679_v52, %v671_v20  ;;  %v3230_v4 = vsel %vm278_vm3, %v715_v56, 0.0  ;;  %v748_v3 = vmul.f32 %v2894_v38, %v3164_v55 }
  0x84   : > { %v584_v7 = vsel %vm299_vm1, %v572_v63, %v566_v27  ;;  %v617_v5 = vmul.f32 %v3172_v39, %v2856_v17  ;;  %v656_v15 = vadd.f32 %v648_v41, %v640_v59  ;;  %v609_v49 = vadd.f32 %v2846_v12, %v601_v35 }
  0x85   : > { %549 = vst [vmem:[%s3008_s24 + $0x38] sm:$0xff] %v541_v43  ;;  %v739_v44 = vadd.f32 %v731_v16, %v687_v10  ;;  %v3241_v8 = vsel %vm275_vm0, %v584_v7, 0.0  ;;  %v764_v57 = vmul.f32 %v3230_v4, %v2901_v42  ;;  %v698_v52 = vrot.slane %v3204_v2, 1 }
  0x86   : > { %v633_v21 = vmul.f32 %v3241_v8, %v2858_v18  ;;  %v704_v54 = vrot.slane %v3207_v32, 1  ;;  %v672_v16 = vadd.f32 %v664_v46, %v656_v15  ;;  %v625_v26 = vadd.f32 %v617_v5, %v609_v49 }
  0x87   : > { %v755_v23 = vadd.f32 %v747_v61, %v739_v44  ;;  %v649_v30 = vmul.f32 %v2863_v22, %v3064_v48  ;;  %v665_v31 = vmul.f32 %v3134_v53, %v2867_v24  ;;  %v681_v34 = vmul.f32 %v3204_v2, %v2869_v25 }
  0x88   : > { %v733_v33 = vmul.f32 %v2892_v37, %v3126_v50  ;;  %v602_v6 = vmul.f32 %v2838_v9, %v3122_v19  ;;  %v688_v61 = vadd.f32 %v680_v58, %v672_v16  ;;  %v641_v41 = vadd.f32 %v633_v21, %v625_v26  ;;  %v3274_v19 = vld [vmem:[%s2807_s5 + $0x70] sm:$0xff] }
  0x89   : > { %v771_v0 = vadd.f32 %v763_v40, %v755_v23  ;;  %v3262_v46 = vsel %vm299_vm1, %v566_v27, %v572_v63  ;;  %v3266_v48 = vsel %vm455_vm2, %v698_v52, %v704_v54  ;;  %v618_v50 = vmul.f32 %v3196_v28, %v2856_v17  ;;  %v3282_v27 = vld [vmem:[%s2807_s5 + $0x78] sm:$0xff] }
  0x8a   : > { %v610_v51 = vadd.f32 %v2846_v12, %v602_v6  ;;  %v634_v20 = vmul.f32 %v3262_v46, %v2858_v18  ;;  %v740_v40 = vadd.f32 %v732_v13, %v688_v61  ;;  %v657_v45 = vadd.f32 %v649_v30, %v641_v41 }
  0x8b   : > { %2315 = vst [vmem:[%s3008_s24 + $0x40] sm:$0xff] %v771_v0  ;;  %v749_v56 = vmul.f32 %v3192_v14, %v2894_v38  ;;  %v765_v58 = vmul.f32 %v3266_v48, %v2901_v42  ;;  %v650_v43 = vmul.f32 %v2863_v22, %v3067_v62  ;;  %v666_v10 = vmul.f32 %v3142_v60, %v2867_v24 }
  0x8c   : > { %v626_v63 = vadd.f32 %v618_v50, %v610_v51  ;;  %v682_v59 = vmul.f32 %v3207_v32, %v2869_v25  ;;  %v756_v13 = vadd.f32 %v748_v3, %v740_v40  ;;  %v673_v35 = vadd.f32 %v665_v31, %v657_v45 }
  0x8d   : > { %v716_v7 = vsel %vm455_vm2, %v704_v54, %v698_v52  ;;  %v567_v5 = vrot.slane %v3274_v19, 7  ;;  %v734_v15 = vmul.f32 %v2892_v37, %v3164_v55  ;;  %v573_v62 = vrot.slane %v3282_v27, 7 }
  0x8e   : > { %v642_v44 = vadd.f32 %v634_v20, %v626_v63  ;;  %v603_v49 = vmul.f32 %v3172_v39, %v2838_v9  ;;  %v772_v21 = vadd.f32 %v764_v57, %v756_v13  ;;  %v689_v23 = vadd.f32 %v681_v34, %v673_v35 }
  0x8f   : > { %v750_v3 = vmul.f32 %v3230_v4, %v2894_v38  ;;  %v619_v16 = vmul.f32 %v3241_v8, %v2856_v17  ;;  %v3304_v54 = vsel %vm278_vm3, %v716_v7, 0.0  ;;  %v585_v55 = vsel %vm299_vm1, %v573_v62, %v567_v5 }
  0x90   : > { %v658_v52 = vadd.f32 %v650_v43, %v642_v44  ;;  %v611_v26 = vadd.f32 %v2846_v12, %v603_v49  ;;  %2316 = vst [vmem:[%s3008_s24 + $0x48] sm:$0xff] %v772_v21  ;;  %v741_v39 = vadd.f32 %v733_v33, %v689_v23  ;;  %v3312_v57 = vsel %vm275_vm0, %v585_v55, 0.0 }
  0x91   : > { %v651_v30 = vmul.f32 %v3134_v53, %v2863_v22  ;;  %v699_v31 = vrot.slane %v3274_v19, 1  ;;  %v635_v0 = vmul.f32 %v3312_v57, %v2858_v18  ;;  %v705_v61 = vrot.slane %v3282_v27, 1 }
  0x92   : > { %v674_v34 = vadd.f32 %v666_v10, %v658_v52  ;;  %v627_v6 = vadd.f32 %v619_v16, %v611_v26  ;;  %v757_v41 = vadd.f32 %v749_v56, %v741_v39  ;;  %v766_v33 = vmul.f32 %v3304_v54, %v2901_v42 }
  0x93   : > { %v667_v51 = vmul.f32 %v3204_v2, %v2867_v24  ;;  %v683_v53 = vmul.f32 %v3274_v19, %v2869_v25  ;;  %v735_v40 = vmul.f32 %v3192_v14, %v2892_v37  ;;  %v604_v45 = vmul.f32 %v3196_v28, %v2838_v9  ;;  %v3344_v28 = vld [vmem:[%s2807_s5 + $0x80] sm:$0xff] }
  0x94   : > { %v690_v50 = vadd.f32 %v682_v59, %v674_v34  ;;  %v643_v20 = vadd.f32 %v635_v0, %v627_v6  ;;  %v773_v56 = vadd.f32 %v765_v58, %v757_v41  ;;  %v3332_v63 = vsel %vm455_vm2, %v699_v31, %v705_v61  ;;  %v3347_v58 = vld [vmem:[%s2807_s5 + $0x88] sm:$0xff] }
  0x95   : > { %v3336_v43 = vsel %vm299_vm1, %v567_v5, %v573_v62  ;;  %v620_v10 = vmul.f32 %v3262_v46, %v2856_v17  ;;  %v612_v35 = vadd.f32 %v2846_v12, %v604_v45  ;;  %v751_v7 = vmul.f32 %v3266_v48, %v2894_v38 }
  0x96   : > { %v742_v59 = vadd.f32 %v734_v15, %v690_v50  ;;  %v659_v13 = vadd.f32 %v651_v30, %v643_v20  ;;  %v636_v14 = vmul.f32 %v3336_v43, %v2858_v18  ;;  %2317 = vst [vmem:[%s3008_s24 + $0x50] sm:$0xff] %v773_v56  ;;  %v767_v5 = vmul.f32 %v3332_v63, %v2901_v42 }
  0x97   : > { %v652_v44 = vmul.f32 %v3142_v60, %v2863_v22  ;;  %v668_v15 = vmul.f32 %v3207_v32, %v2867_v24  ;;  %v628_v21 = vadd.f32 %v620_v10, %v612_v35  ;;  %v717_v23 = vsel %vm455_vm2, %v705_v61, %v699_v31 }
  0x98   : > { %v758_v62 = vadd.f32 %v750_v3, %v742_v59  ;;  %v675_v49 = vadd.f32 %v667_v51, %v659_v13  ;;  %v684_v16 = vmul.f32 %v3282_v27, %v2869_v25  ;;  %v736_v52 = vmul.f32 %v3230_v4, %v2892_v37 }
  0x99   : > { %v568_v55 = vrot.slane %v3344_v28, 7  ;;  %v574_v60 = vrot.slane %v3347_v58, 7  ;;  %v644_v30 = vadd.f32 %v636_v14, %v628_v21  ;;  %v605_v3 = vmul.f32 %v3241_v8, %v2838_v9 }
  0x9a   : > { %v774_v26 = vadd.f32 %v766_v33, %v758_v62  ;;  %v691_v39 = vadd.f32 %v683_v53, %v675_v49  ;;  %v3370_v34 = vsel %vm278_vm3, %v717_v23, 0.0  ;;  %v752_v31 = vmul.f32 %v3304_v54, %v2894_v38 }
  0x9b   : > { %v586_v4 = vsel %vm299_vm1, %v574_v60, %v568_v55  ;;  %v621_v6 = vmul.f32 %v3312_v57, %v2856_v17  ;;  %v660_v61 = vadd.f32 %v652_v44, %v644_v30  ;;  %v613_v8 = vadd.f32 %v2846_v12, %v605_v3 }
  0x9c   : > { %2318 = vst [vmem:[%s3008_s24 + $0x58] sm:$0xff] %v774_v26  ;;  %v743_v0 = vadd.f32 %v735_v40, %v691_v39  ;;  %v3381_v41 = vsel %vm275_vm0, %v586_v4, 0.0  ;;  %v768_v33 = vmul.f32 %v3370_v34, %v2901_v42  ;;  %v700_v53 = vrot.slane %v3344_v28, 1 }
  0x9d   : > { %v637_v51 = vmul.f32 %v3381_v41, %v2858_v18  ;;  %v706_v50 = vrot.slane %v3347_v58, 1  ;;  %v676_v40 = vadd.f32 %v668_v15, %v660_v61  ;;  %v629_v45 = vadd.f32 %v621_v6, %v613_v8 }
  0x9e   : > { %v759_v20 = vadd.f32 %v751_v7, %v743_v0  ;;  %v653_v56 = vmul.f32 %v3204_v2, %v2863_v22  ;;  %v669_v10 = vmul.f32 %v3274_v19, %v2867_v24  ;;  %v685_v59 = vmul.f32 %v3344_v28, %v2869_v25 }
  0x9f   : > { %v737_v13 = vmul.f32 %v3266_v48, %v2892_v37  ;;  %v606_v35 = vmul.f32 %v3262_v46, %v2838_v9  ;;  %v692_v7 = vadd.f32 %v684_v16, %v676_v40  ;;  %v645_v44 = vadd.f32 %v637_v51, %v629_v45  ;;  %v3414_v46 = vld [vmem:[%s2807_s5 + $0x90] sm:$0xff] }
  0xa0   : > { %v775_v14 = vadd.f32 %v767_v5, %v759_v20  ;;  %v3402_v15 = vsel %vm299_vm1, %v568_v55, %v574_v60  ;;  %v3406_v2 = vsel %vm455_vm2, %v700_v53, %v706_v50  ;;  %v622_v48 = vmul.f32 %v3336_v43, %v2856_v17  ;;  %v3422_v55 = vld [vmem:[%s2807_s5 + $0x98] sm:$0xff] }
  0xa1   : > { %v614_v62 = vadd.f32 %v2846_v12, %v606_v35  ;;  %v638_v49 = vmul.f32 %v3402_v15, %v2858_v18  ;;  %v744_v5 = vadd.f32 %v736_v52, %v692_v7  ;;  %v661_v21 = vadd.f32 %v653_v56, %v645_v44 }
  0xa2   : > { %2319 = vst [vmem:[%s3008_s24 + $0x60] sm:$0xff] %v775_v14  ;;  %v753_v23 = vmul.f32 %v3332_v63, %v2894_v38  ;;  %v769_v16 = vmul.f32 %v3406_v2, %v2901_v42  ;;  %v654_v26 = vmul.f32 %v3207_v32, %v2863_v22  ;;  %v670_v39 = vmul.f32 %v3282_v27, %v2867_v24 }
  0xa3   : > { %v630_v60 = vadd.f32 %v622_v48, %v614_v62  ;;  %v686_v30 = vmul.f32 %v3347_v58, %v2869_v25  ;;  %v760_v52 = vadd.f32 %v752_v31, %v744_v5  ;;  %v677_v3 = vadd.f32 %v669_v10, %v661_v21 }
  0xa4   : > { %v718_v4 = vsel %vm455_vm2, %v706_v50, %v700_v53  ;;  %v803_v6 = vrot.slane %v3414_v46, 7  ;;  %v738_v61 = vmul.f32 %v3304_v54, %v2892_v37  ;;  %v809_v32 = vrot.slane %v3422_v55, 7 }
  0xa5   : > { %v646_v0 = vadd.f32 %v638_v49, %v630_v60  ;;  %v837_v8 = vmul.f32 %v3312_v57, %v2838_v9  ;;  %v776_v51 = vadd.f32 %v768_v33, %v760_v52  ;;  %v693_v20 = vadd.f32 %v685_v59, %v677_v3 }
  0xa6   : > { %v754_v31 = vmul.f32 %v3370_v34, %v2894_v38  ;;  %v853_v40 = vmul.f32 %v3381_v41, %v2856_v17  ;;  %v3444_v50 = vsel %vm278_vm3, %v718_v4, 0.0  ;;  %v821_v54 = vsel %vm299_vm1, %v809_v32, %v803_v6 }
  0xa7   : > { %v662_v53 = vadd.f32 %v654_v26, %v646_v0  ;;  %v845_v45 = vadd.f32 %v2846_v12, %v837_v8  ;;  %2320 = vst [vmem:[%s3008_s24 + $0x68] sm:$0xff] %v776_v51  ;;  %v745_v57 = vadd.f32 %v737_v13, %v693_v20  ;;  %v3452_v33 = vsel %vm275_vm0, %v821_v54, 0.0 }
  0xa8   : > { %v885_v56 = vmul.f32 %v3274_v19, %v2863_v22  ;;  %v935_v10 = vrot.slane %v3414_v46, 1  ;;  %v869_v14 = vmul.f32 %v3452_v33, %v2858_v18  ;;  %v941_v7 = vrot.slane %v3422_v55, 1 }
  0xa9   : > { %v678_v59 = vadd.f32 %v670_v39, %v662_v53  ;;  %v861_v35 = vadd.f32 %v853_v40, %v845_v45  ;;  %v761_v44 = vadd.f32 %v753_v23, %v745_v57  ;;  %v770_v13 = vmul.f32 %v3444_v50, %v2901_v42 }
  0xaa   : > { %v901_v62 = vmul.f32 %v3344_v28, %v2867_v24  ;;  %v917_v19 = vmul.f32 %v3414_v46, %v2869_v25  ;;  %v969_v5 = vmul.f32 %v3332_v63, %v2892_v37  ;;  %v838_v21 = vmul.f32 %v3336_v43, %v2838_v9  ;;  %v3484_v43 = vld [vmem:[%s2807_s5 + $0xa0] sm:$0xff] }
  0xab   : > { %v694_v48 = vadd.f32 %v686_v30, %v678_v59  ;;  %v877_v49 = vadd.f32 %v869_v14, %v861_v35  ;;  %v777_v23 = vadd.f32 %v769_v16, %v761_v44  ;;  %v3472_v60 = vsel %vm455_vm2, %v935_v10, %v941_v7  ;;  %v3487_v16 = vld [vmem:[%s2807_s5 + $0xa8] sm:$0xff] }
  0xac   : > { %v3476_v26 = vsel %vm299_vm1, %v803_v6, %v809_v32  ;;  %v854_v39 = vmul.f32 %v3402_v15, %v2856_v17  ;;  %v846_v3 = vadd.f32 %v2846_v12, %v838_v21  ;;  %v985_v4 = vmul.f32 %v3406_v2, %v2894_v38 }
  0xad   : > { %v746_v30 = vadd.f32 %v738_v61, %v694_v48  ;;  %v893_v52 = vadd.f32 %v885_v56, %v877_v49  ;;  %v870_v63 = vmul.f32 %v3476_v26, %v2858_v18  ;;  %2321 = vst [vmem:[%s3008_s24 + $0x70] sm:$0xff] %v777_v23  ;;  %v1001_v6 = vmul.f32 %v3472_v60, %v2901_v42 }
  0xae   : > { %v886_v0 = vmul.f32 %v3282_v27, %v2863_v22  ;;  %v902_v61 = vmul.f32 %v3347_v58, %v2867_v24  ;;  %v862_v51 = vadd.f32 %v854_v39, %v846_v3  ;;  %v953_v20 = vsel %vm455_vm2, %v941_v7, %v935_v10 }
  0xaf   : > { %v762_v32 = vadd.f32 %v754_v31, %v746_v30  ;;  %v909_v8 = vadd.f32 %v901_v62, %v893_v52  ;;  %v918_v40 = vmul.f32 %v3422_v55, %v2869_v25  ;;  %v970_v53 = vmul.f32 %v3370_v34, %v2892_v37 }
  0xb0   : > { %v804_v54 = vrot.slane %v3484_v43, 7  ;;  %v810_v27 = vrot.slane %v3487_v16, 7  ;;  %v878_v56 = vadd.f32 %v870_v63, %v862_v51  ;;  %v839_v31 = vmul.f32 %v3381_v41, %v2838_v9 }
  0xb1   : > { %v778_v45 = vadd.f32 %v770_v13, %v762_v32  ;;  %v925_v57 = vadd.f32 %v917_v19, %v909_v8  ;;  %v3510_v59 = vsel %vm278_vm3, %v953_v20, 0.0  ;;  %v986_v10 = vmul.f32 %v3444_v50, %v2894_v38 }
  0xb2   : > { %v822_v34 = vsel %vm299_vm1, %v810_v27, %v804_v54  ;;  %v855_v35 = vmul.f32 %v3452_v33, %v2856_v17  ;;  %v894_v7 = vadd.f32 %v886_v0, %v878_v56  ;;  %v847_v41 = vadd.f32 %v2846_v12, %v839_v31 }
  0xb3   : > { %2322 = vst [vmem:[%s3008_s24 + $0x78] sm:$0xff] %v778_v45  ;;  %v977_v14 = vadd.f32 %v969_v5, %v925_v57  ;;  %v3521_v44 = vsel %vm275_vm0, %v822_v34, 0.0  ;;  %v1002_v13 = vmul.f32 %v3510_v59, %v2901_v42  ;;  %v936_v19 = vrot.slane %v3484_v43, 1 }
  0xb4   : > { %v871_v62 = vmul.f32 %v3521_v44, %v2858_v18  ;;  %v942_v48 = vrot.slane %v3487_v16, 1  ;;  %v910_v5 = vadd.f32 %v902_v61, %v894_v7  ;;  %v863_v21 = vadd.f32 %v855_v35, %v847_v41 }
  0xb5   : > { %v993_v49 = vadd.f32 %v985_v4, %v977_v14  ;;  %v887_v23 = vmul.f32 %v3344_v28, %v2863_v22  ;;  %v903_v39 = vmul.f32 %v3414_v46, %v2867_v24  ;;  %v919_v30 = vmul.f32 %v3484_v43, %v2869_v25 }
  0xb6   : > { %v971_v52 = vmul.f32 %v3406_v2, %v2892_v37  ;;  %v840_v3 = vmul.f32 %v3402_v15, %v2838_v9  ;;  %v926_v4 = vadd.f32 %v918_v40, %v910_v5  ;;  %v879_v0 = vadd.f32 %v871_v62, %v863_v21  ;;  %v3554_v15 = vld [vmem:[%s2807_s5 + $0xb0] sm:$0xff]  ;;  %v3589_v5 = vld [vmem:[%s2827_s18] ss:$0 sm:$0xff] }
  0xb7   : > { %v1009_v63 = vadd.f32 %v1001_v6, %v993_v49  ;;  %v3542_v61 = vsel %vm299_vm1, %v804_v54, %v810_v27  ;;  %v3546_v28 = vsel %vm455_vm2, %v936_v19, %v942_v48  ;;  %v856_v2 = vmul.f32 %v3476_v26, %v2856_v17  ;;  %v3562_v54 = vld [vmem:[%s2807_s5 + $0xb8] sm:$0xff] }
  0xb8   : > { %v848_v32 = vadd.f32 %v2846_v12, %v840_v3  ;;  %v872_v8 = vmul.f32 %v3542_v61, %v2858_v18  ;;  %v978_v6 = vadd.f32 %v970_v53, %v926_v4  ;;  %v895_v51 = vadd.f32 %v887_v23, %v879_v0 }
  0xb9   : > { %2335 = vst [vmem:[%s3008_s24 + $0x80] sm:$0xff] %v1009_v63  ;;  %v987_v20 = vmul.f32 %v3472_v60, %v2894_v38  ;;  %v1003_v40 = vmul.f32 %v3546_v28, %v2901_v42  ;;  %v888_v27 = vmul.f32 %v3347_v58, %v2863_v22  ;;  %v904_v45 = vmul.f32 %v3422_v55, %v2867_v24 }
  0xba   : > { %v864_v12 = vadd.f32 %v856_v2, %v848_v32  ;;  %v920_v57 = vmul.f32 %v3487_v16, %v2869_v25  ;;  %v994_v53 = vadd.f32 %v986_v10, %v978_v6  ;;  %v911_v56 = vadd.f32 %v903_v39, %v895_v51 }
  0xbb   : > { %v954_v31 = vsel %vm455_vm2, %v942_v48, %v936_v19  ;;  %v805_v34 = vrot.slane %v3554_v15, 7  ;;  %v972_v14 = vmul.f32 %v3444_v50, %v2892_v37  ;;  %v811_v58 = vrot.slane %v3562_v54, 7 }
  0xbc   : > { %v880_v35 = vadd.f32 %v872_v8, %v864_v12  ;;  %v841_v7 = vmul.f32 %v3452_v33, %v2838_v9  ;;  %v1010_v41 = vadd.f32 %v1002_v13, %v994_v53  ;;  %v927_v62 = vadd.f32 %v919_v30, %v911_v56 }
  0xbd   : > { %v988_v10 = vmul.f32 %v3510_v59, %v2894_v38  ;;  %v857_v49 = vmul.f32 %v3521_v44, %v2856_v17  ;;  %v3584_v48 = vsel %vm278_vm3, %v954_v31, 0.0  ;;  %v823_v50 = vsel %vm299_vm1, %v811_v58, %v805_v34 }
  0xbe   : > { %v896_v19 = vadd.f32 %v888_v27, %v880_v35  ;;  %v849_v33 = vadd.f32 %v3589_v5, %v841_v7  ;;  %2336 = vst [vmem:[%s3008_s24 + $0x88] sm:$0xff] %v1010_v41  ;;  %v979_v13 = vadd.f32 %v971_v52, %v927_v62  ;;  %v3595_v21 = vsel %vm275_vm0, %v823_v50, 0.0 }
  0xbf   : > { %v889_v23 = vmul.f32 %v3414_v46, %v2863_v22  ;;  %v937_v39 = vrot.slane %v3554_v15, 1  ;;  %v873_v63 = vmul.f32 %v3595_v21, %v2858_v18  ;;  %v943_v4 = vrot.slane %v3562_v54, 1 }
  0xc0   : > { %v912_v30 = vadd.f32 %v904_v45, %v896_v19  ;;  %v865_v3 = vadd.f32 %v857_v49, %v849_v33  ;;  %v995_v0 = vadd.f32 %v987_v20, %v979_v13  ;;  %v1004_v52 = vmul.f32 %v3584_v48, %v2901_v42 }
  0xc1   : > { %v905_v32 = vmul.f32 %v3484_v43, %v2867_v24  ;;  %v921_v46 = vmul.f32 %v3554_v15, %v2869_v25  ;;  %v973_v6 = vmul.f32 %v3472_v60, %v2892_v37  ;;  %v842_v51 = vmul.f32 %v3476_v26, %v2838_v9  ;;  %v3627_v26 = vld [vmem:[%s2807_s5 + $0xc0] sm:$0xff] }
  0xc2   : > { %v928_v2 = vadd.f32 %v920_v57, %v912_v30  ;;  %v881_v8 = vadd.f32 %v873_v63, %v865_v3  ;;  %v1011_v20 = vadd.f32 %v1003_v40, %v995_v0  ;;  %v3615_v12 = vsel %vm455_vm2, %v937_v39, %v943_v4  ;;  %v3630_v40 = vld [vmem:[%s2807_s5 + $0xc8] sm:$0xff] }
  0xc3   : > { %v3619_v27 = vsel %vm299_vm1, %v805_v34, %v811_v58  ;;  %v858_v45 = vmul.f32 %v3542_v61, %v2856_v17  ;;  %v850_v56 = vadd.f32 %v3589_v5, %v842_v51  ;;  %v989_v31 = vmul.f32 %v3546_v28, %v2894_v38 }
  0xc4   : > { %v980_v57 = vadd.f32 %v972_v14, %v928_v2  ;;  %v897_v53 = vadd.f32 %v889_v23, %v881_v8  ;;  %v874_v60 = vmul.f32 %v3619_v27, %v2858_v18  ;;  %2337 = vst [vmem:[%s3008_s24 + $0x90] sm:$0xff] %v1011_v20  ;;  %v1005_v34 = vmul.f32 %v3615_v12, %v2901_v42 }
  0xc5   : > { %v890_v35 = vmul.f32 %v3422_v55, %v2863_v22  ;;  %v906_v14 = vmul.f32 %v3487_v16, %v2867_v24  ;;  %v866_v41 = vadd.f32 %v858_v45, %v850_v56  ;;  %v955_v62 = vsel %vm455_vm2, %v943_v4, %v937_v39 }
  0xc6   : > { %v996_v58 = vadd.f32 %v988_v10, %v980_v57  ;;  %v913_v7 = vadd.f32 %v905_v32, %v897_v53  ;;  %v922_v49 = vmul.f32 %v3562_v54, %v2869_v25  ;;  %v974_v19 = vmul.f32 %v3510_v59, %v2892_v37 }
  0xc7   : > { %v806_v50 = vrot.slane %v3627_v26, 7  ;;  %v812_v55 = vrot.slane %v3630_v40, 7  ;;  %v882_v23 = vadd.f32 %v874_v60, %v866_v41  ;;  %v843_v10 = vmul.f32 %v3521_v44, %v2838_v9 }
  0xc8   : > { %v1012_v33 = vadd.f32 %v1004_v52, %v996_v58  ;;  %v929_v13 = vadd.f32 %v921_v46, %v913_v7  ;;  %v3653_v30 = vsel %vm278_vm3, %v955_v62, 0.0  ;;  %v990_v39 = vmul.f32 %v3584_v48, %v2894_v38 }
  0xc9   : > { %v824_v59 = vsel %vm299_vm1, %v812_v55, %v806_v50  ;;  %v859_v3 = vmul.f32 %v3595_v21, %v2856_v17  ;;  %v898_v4 = vadd.f32 %v890_v35, %v882_v23  ;;  %v851_v44 = vadd.f32 %v3589_v5, %v843_v10 }
  0xca   : > { %2338 = vst [vmem:[%s3008_s24 + $0x98] sm:$0xff] %v1012_v33  ;;  %v981_v63 = vadd.f32 %v973_v6, %v929_v13  ;;  %v3664_v0 = vsel %vm275_vm0, %v824_v59, 0.0  ;;  %v1006_v52 = vmul.f32 %v3653_v30, %v2901_v42  ;;  %v938_v46 = vrot.slane %v3627_v26, 1 }
  0xcb   : > { %v875_v32 = vmul.f32 %v3664_v0, %v2858_v18  ;;  %v944_v2 = vrot.slane %v3630_v40, 1  ;;  %v914_v6 = vadd.f32 %v906_v14, %v898_v4  ;;  %v867_v51 = vadd.f32 %v859_v3, %v851_v44 }
  0xcc   : > { %v997_v8 = vadd.f32 %v989_v31, %v981_v63  ;;  %v891_v20 = vmul.f32 %v3484_v43, %v2863_v22  ;;  %v907_v45 = vmul.f32 %v3554_v15, %v2867_v24  ;;  %v923_v57 = vmul.f32 %v3627_v26, %v2869_v25 }
  0xcd   : > { %v975_v53 = vmul.f32 %v3546_v28, %v2892_v37  ;;  %v844_v56 = vmul.f32 %v3542_v61, %v2838_v9  ;;  %v930_v31 = vadd.f32 %v922_v49, %v914_v6  ;;  %v883_v35 = vadd.f32 %v875_v32, %v867_v51  ;;  %v3697_v61 = vld [vmem:[%s2807_s5 + $0xd0] sm:$0xff] }
  0xce   : > { %v1013_v60 = vadd.f32 %v1005_v34, %v997_v8  ;;  %v3685_v14 = vsel %vm299_vm1, %v806_v50, %v812_v55  ;;  %v3689_v43 = vsel %vm455_vm2, %v938_v46, %v944_v2  ;;  %v860_v28 = vmul.f32 %v3619_v27, %v2856_v17  ;;  %v3705_v50 = vld [vmem:[%s2807_s5 + $0xd8] sm:$0xff] }
  0xcf   : > { %v852_v58 = vadd.f32 %v3589_v5, %v844_v56  ;;  %v876_v7 = vmul.f32 %v3685_v14, %v2858_v18  ;;  %v982_v34 = vadd.f32 %v974_v19, %v930_v31  ;;  %v899_v41 = vadd.f32 %v891_v20, %v883_v35 }
  0xd0   : > { %2339 = vst [vmem:[%s3008_s24 + $0xa0] sm:$0xff] %v1013_v60  ;;  %v991_v62 = vmul.f32 %v3615_v12, %v2894_v38  ;;  %v1007_v49 = vmul.f32 %v3689_v43, %v2901_v42  ;;  %v892_v33 = vmul.f32 %v3487_v16, %v2863_v22  ;;  %v908_v13 = vmul.f32 %v3562_v54, %v2867_v24 }
  0xd1   : > { %v868_v55 = vadd.f32 %v860_v28, %v852_v58  ;;  %v924_v23 = vmul.f32 %v3630_v40, %v2869_v25  ;;  %v998_v19 = vadd.f32 %v990_v39, %v982_v34  ;;  %v915_v10 = vadd.f32 %v907_v45, %v899_v41 }
  0xd2   : > { %v956_v59 = vsel %vm455_vm2, %v944_v2, %v938_v46  ;;  %v1039_v3 = vrot.slane %v3697_v61, 7  ;;  %v976_v4 = vmul.f32 %v3584_v48, %v2892_v37  ;;  %v1044_v16 = vrot.slane %v3705_v50, 7 }
  0xd3   : > { %v884_v63 = vadd.f32 %v876_v7, %v868_v55  ;;  %v1067_v44 = vmul.f32 %v3595_v21, %v2838_v9  ;;  %v1014_v32 = vadd.f32 %v1006_v52, %v998_v19  ;;  %v931_v8 = vadd.f32 %v923_v57, %v915_v10 }
  0xd4   : > { %v992_v39 = vmul.f32 %v3653_v30, %v2894_v38  ;;  %v1083_v6 = vmul.f32 %v3664_v0, %v2856_v17  ;;  %v3727_v2 = vsel %vm278_vm3, %v956_v59, 0.0  ;;  %v1054_v48 = vsel %vm299_vm1, %v1044_v16, %v1039_v3 }
  0xd5   : > { %v900_v46 = vadd.f32 %v892_v33, %v884_v63  ;;  %v1075_v51 = vadd.f32 %v3589_v5, %v1067_v44  ;;  %2340 = vst [vmem:[%s3008_s24 + $0xa8] sm:$0xff] %v1014_v32  ;;  %v983_v21 = vadd.f32 %v975_v53, %v931_v8  ;;  %v3735_v52 = vsel %vm275_vm0, %v1054_v48, 0.0 }
  0xd6   : > { %v1115_v20 = vmul.f32 %v3554_v15, %v2863_v22  ;;  %v1164_v45 = vrot.slane %v3697_v61, 1  ;;  %v1099_v60 = vmul.f32 %v3735_v52, %v2858_v18  ;;  %v1169_v31 = vrot.slane %v3705_v50, 1 }
  0xd7   : > { %v916_v57 = vadd.f32 %v908_v13, %v900_v46  ;;  %v1091_v56 = vadd.f32 %v1083_v6, %v1075_v51  ;;  %v999_v35 = vadd.f32 %v991_v62, %v983_v21  ;;  %v1008_v53 = vmul.f32 %v3727_v2, %v2901_v42 }
  0xd8   : > { %v1131_v58 = vmul.f32 %v3627_v26, %v2867_v24  ;;  %v1147_v15 = vmul.f32 %v3697_v61, %v2869_v25  ;;  %v1192_v34 = vmul.f32 %v3615_v12, %v2892_v37  ;;  %v1068_v41 = vmul.f32 %v3619_v27, %v2838_v9  ;;  %v3767_v27 = vld [vmem:[%s2807_s5 + $0xe0] sm:$0xff] }
  0xd9   : > { %v932_v28 = vadd.f32 %v924_v23, %v916_v57  ;;  %v1107_v7 = vadd.f32 %v1099_v60, %v1091_v56  ;;  %v1015_v62 = vadd.f32 %v1007_v49, %v999_v35  ;;  %v3755_v55 = vsel %vm455_vm2, %v1164_v45, %v1169_v31  ;;  %v3770_v49 = vld [vmem:[%s2807_s5 + $0xe8] sm:$0xff] }
  0xda   : > { %v3759_v33 = vsel %vm299_vm1, %v1039_v3, %v1044_v16  ;;  %v1084_v13 = vmul.f32 %v3685_v14, %v2856_v17  ;;  %v1076_v10 = vadd.f32 %v3589_v5, %v1068_v41  ;;  %v1208_v59 = vmul.f32 %v3689_v43, %v2894_v38 }
  0xdb   : > { %v984_v23 = vadd.f32 %v976_v4, %v932_v28  ;;  %v1123_v19 = vadd.f32 %v1115_v20, %v1107_v7  ;;  %v1100_v12 = vmul.f32 %v3759_v33, %v2858_v18  ;;  %2341 = vst [vmem:[%s3008_s24 + $0xb0] sm:$0xff] %v1015_v62  ;;  %v1224_v3 = vmul.f32 %v3755_v55, %v2901_v42 }
  0xdc   : > { %v1116_v63 = vmul.f32 %v3562_v54, %v2863_v22  ;;  %v1132_v4 = vmul.f32 %v3630_v40, %v2867_v24  ;;  %v1092_v32 = vadd.f32 %v1084_v13, %v1076_v10  ;;  %v1179_v8 = vsel %vm455_vm2, %v1169_v31, %v1164_v45 }
  0xdd   : > { %v1000_v16 = vadd.f32 %v992_v39, %v984_v23  ;;  %v1139_v44 = vadd.f32 %v1131_v58, %v1123_v19  ;;  %v1148_v6 = vmul.f32 %v3705_v50, %v2869_v25  ;;  %v1193_v46 = vmul.f32 %v3653_v30, %v2892_v37 }
  0xde   : > { %v1040_v48 = vrot.slane %v3767_v27, 7  ;;  %v1045_v54 = vrot.slane %v3770_v49, 7  ;;  %v1108_v20 = vadd.f32 %v1100_v12, %v1092_v32  ;;  %v1069_v39 = vmul.f32 %v3664_v0, %v2838_v9 }
  0xdf   : > { %v1016_v51 = vadd.f32 %v1008_v53, %v1000_v16  ;;  %v1154_v21 = vadd.f32 %v1147_v15, %v1139_v44  ;;  %v3793_v57 = vsel %vm278_vm3, %v1179_v8, 0.0  ;;  %v1209_v45 = vmul.f32 %v3727_v2, %v2894_v38 }
  0xe0   : > { %v1055_v30 = vsel %vm299_vm1, %v1045_v54, %v1040_v48  ;;  %v1085_v56 = vmul.f32 %v3735_v52, %v2856_v17  ;;  %v1124_v31 = vadd.f32 %v1116_v63, %v1108_v20  ;;  %v1077_v0 = vadd.f32 %v3589_v5, %v1069_v39 }
  0xe1   : > { %2342 = vst [vmem:[%s3008_s24 + $0xb8] sm:$0xff] %v1016_v51  ;;  %v1200_v60 = vadd.f32 %v1192_v34, %v1154_v21  ;;  %v3804_v35 = vsel %vm275_vm0, %v1055_v30, 0.0  ;;  %v1225_v53 = vmul.f32 %v3793_v57, %v2901_v42  ;;  %v1165_v15 = vrot.slane %v3767_v27, 1 }
  0xe2   : > { %v1101_v58 = vmul.f32 %v3804_v35, %v2858_v18  ;;  %v1170_v28 = vrot.slane %v3770_v49, 1  ;;  %v1140_v34 = vadd.f32 %v1132_v4, %v1124_v31  ;;  %v1093_v41 = vadd.f32 %v1085_v56, %v1077_v0 }
  0xe3   : > { %v1216_v7 = vadd.f32 %v1208_v59, %v1200_v60  ;;  %v1117_v62 = vmul.f32 %v3627_v26, %v2863_v22  ;;  %v1133_v13 = vmul.f32 %v3697_v61, %v2867_v24  ;;  %v1149_v23 = vmul.f32 %v3767_v27, %v2869_v25 }
  0xe4   : > { %v1194_v19 = vmul.f32 %v3689_v43, %v2892_v37  ;;  %v1070_v10 = vmul.f32 %v3685_v14, %v2838_v9  ;;  %v1155_v59 = vadd.f32 %v1148_v6, %v1140_v34  ;;  %v1109_v63 = vadd.f32 %v1101_v58, %v1093_v41  ;;  %v3837_v14 = vld [vmem:[%s2807_s5 + $0xf0] sm:$0xff] }
  0xe5   : > { %v1232_v12 = vadd.f32 %v1224_v3, %v1216_v7  ;;  %v3825_v4 = vsel %vm299_vm1, %v1040_v48, %v1045_v54  ;;  %v3829_v26 = vsel %vm455_vm2, %v1165_v15, %v1170_v28  ;;  %v1086_v43 = vmul.f32 %v3759_v33, %v2856_v17  ;;  %v3845_v48 = vld [vmem:[%s2807_s5 + $0xf8] sm:$0xff] }
  0xe6   : > { %v1078_v16 = vadd.f32 %v3589_v5, %v1070_v10  ;;  %v1102_v44 = vmul.f32 %v3825_v4, %v2858_v18  ;;  %v1201_v3 = vadd.f32 %v1193_v46, %v1155_v59  ;;  %v1125_v32 = vadd.f32 %v1117_v62, %v1109_v63 }
  0xe7   : > { %2353 = vst [vmem:[%s3008_s24 + $0xc0] sm:$0xff] %v1232_v12  ;;  %v1210_v8 = vmul.f32 %v3755_v55, %v2894_v38  ;;  %v1226_v6 = vmul.f32 %v3829_v26, %v2901_v42  ;;  %v1118_v51 = vmul.f32 %v3630_v40, %v2863_v22  ;;  %v1134_v21 = vmul.f32 %v3705_v50, %v2867_v24 }
  0xe8   : > { %v1094_v54 = vadd.f32 %v1086_v43, %v1078_v16  ;;  %v1150_v20 = vmul.f32 %v3770_v49, %v2869_v25  ;;  %v1217_v46 = vadd.f32 %v1209_v45, %v1201_v3  ;;  %v1141_v39 = vadd.f32 %v1133_v13, %v1125_v32 }
  0xe9   : > { %v1180_v30 = vsel %vm455_vm2, %v1170_v28, %v1165_v15  ;;  %v1041_v56 = vrot.slane %v3837_v14, 7  ;;  %v1195_v31 = vmul.f32 %v3727_v2, %v2892_v37  ;;  %v1046_v40 = vrot.slane %v3845_v48, 7 }
  0xea   : > { %v1110_v60 = vadd.f32 %v1102_v44, %v1094_v54  ;;  %v1071_v0 = vmul.f32 %v3735_v52, %v2838_v9  ;;  %v1233_v58 = vadd.f32 %v1225_v53, %v1217_v46  ;;  %v1156_v7 = vadd.f32 %v1149_v23, %v1141_v39 }
  0xeb   : > { %v1211_v45 = vmul.f32 %v3793_v57, %v2894_v38  ;;  %v1087_v34 = vmul.f32 %v3804_v35, %v2856_v17  ;;  %v3867_v28 = vsel %vm278_vm3, %v1180_v30, 0.0  ;;  %v1056_v2 = vsel %vm299_vm1, %v1046_v40, %v1041_v56 }
  0xec   : > { %v1126_v15 = vadd.f32 %v1118_v51, %v1110_v60  ;;  %v1079_v41 = vadd.f32 %v3589_v5, %v1071_v0  ;;  %2354 = vst [vmem:[%s3008_s24 + $0xc8] sm:$0xff] %v1233_v58  ;;  %v1202_v52 = vadd.f32 %v1194_v19, %v1156_v7  ;;  %v1065_v53 = vsel %vm275_vm0, %v1056_v2, 0.0 }
  0xed   : > { %v1119_v62 = vmul.f32 %v3697_v61, %v2863_v22  ;;  %v1166_v13 = vrot.slane %v3837_v14, 1  ;;  %v1103_v12 = vmul.f32 %v1065_v53, %v2858_v18  ;;  %v1171_v59 = vrot.slane %v3845_v48, 1 }
  0xee   : > { %v1142_v23 = vadd.f32 %v1134_v21, %v1126_v15  ;;  %v1095_v10 = vadd.f32 %v1087_v34, %v1079_v41  ;;  %v1218_v63 = vadd.f32 %v1210_v8, %v1202_v52  ;;  %v1227_v16 = vmul.f32 %v3867_v28, %v2901_v42 }
  0xef   : > { %v1135_v19 = vmul.f32 %v3767_v27, %v2867_v24  ;;  %v1151_v43 = vmul.f32 %v3837_v14, %v2869_v25  ;;  %v1196_v3 = vmul.f32 %v3755_v55, %v2892_v37  ;;  %v1072_v32 = vmul.f32 %v3759_v33, %v2838_v9 }
  0xf0   : > { %v1157_v61 = vadd.f32 %v1150_v20, %v1142_v23  ;;  %v1111_v44 = vadd.f32 %v1103_v12, %v1095_v10  ;;  %v1234_v54 = vadd.f32 %v1226_v6, %v1218_v63  ;;  %v1176_v8 = vsel %vm455_vm2, %v1166_v13, %v1171_v59 }
  0xf1   : > { %v1051_v51 = vsel %vm299_vm1, %v1041_v56, %v1046_v40  ;;  %v1088_v21 = vmul.f32 %v3825_v4, %v2856_v17  ;;  %v1080_v20 = vadd.f32 %v3589_v5, %v1072_v32  ;;  %v1212_v55 = vmul.f32 %v3829_v26, %v2894_v38  ;;  %v3948_v32 = vld [vmem:[%s2807_s5 + $0x118] sm:$0xff] }
  0xf2   : > { %v1203_v46 = vadd.f32 %v1195_v31, %v1157_v61  ;;  %v1127_v39 = vadd.f32 %v1119_v62, %v1111_v44  ;;  %v1104_v30 = vmul.f32 %v1051_v51, %v2858_v18  ;;  %2355 = vst [vmem:[%s3008_s24 + $0xd0] sm:$0xff] %v1234_v54  ;;  %v1228_v33 = vmul.f32 %v1176_v8, %v2901_v42 }
  0xf3   : > { %v1120_v6 = vmul.f32 %v3705_v50, %v2863_v22  ;;  %v1181_v56 = vsel %vm455_vm2, %v1171_v59, %v1166_v13  ;;  %v1096_v40 = vadd.f32 %v1088_v21, %v1080_v20  ;;  %v1136_v0 = vmul.f32 %v3770_v49, %v2867_v24 }
  0xf4   : > { %v1219_v60 = vadd.f32 %v1211_v45, %v1203_v46  ;;  %v1143_v31 = vadd.f32 %v1135_v19, %v1127_v39  ;;  %v1152_v58 = vmul.f32 %v3845_v48, %v2869_v25  ;;  %v1197_v7 = vmul.f32 %v3793_v57, %v2892_v37  ;;  %v3936_v19 = vld [vmem:[%s2807_s5 + $0x100] sm:$0xff] }
  0xf5   : > { %v1073_v34 = vmul.f32 %v3804_v35, %v2838_v9  ;;  %v1089_v50 = vmul.f32 %v1065_v53, %v2856_v17  ;;  %v1112_v45 = vadd.f32 %v1104_v30, %v1096_v40  ;;  %v1191_v41 = vsel %vm278_vm3, %v1181_v56, 0.0 }
  0xf6   : > { %v1235_v15 = vadd.f32 %v1227_v16, %v1219_v60  ;;  %v1158_v2 = vadd.f32 %v1151_v43, %v1143_v31  ;;  %v1213_v52 = vmul.f32 %v3867_v28, %v2894_v38  ;;  %v1229_v62 = vmul.f32 %v1191_v41, %v2901_v42  ;;  %v3939_v43 = vld [vmem:[%s2807_s5 + $0x110] sm:$0xff] }
  0xf7   : > { %v1081_v57 = vadd.f32 %v3589_v5, %v1073_v34  ;;  %v3922_v13 = vmul.f32 0.0, %v2858_v18  ;;  %v1128_v53 = vadd.f32 %v1120_v6, %v1112_v45  ;;  %v1121_v23 = vmul.f32 %v3767_v27, %v2863_v22 }
  0xf8   : > { %2356 = vst [vmem:[%s3008_s24 + $0xd8] sm:$0xff] %v1235_v15  ;;  %v1204_v35 = vadd.f32 %v1196_v3, %v1158_v2  ;;  %v1137_v10 = vmul.f32 %v3837_v14, %v2867_v24  ;;  %v3930_v59 = vmul.f32 0.0, %v2869_v25  ;;  %v1074_v63 = vmul.f32 %v3825_v4, %v2838_v9  ;;  %v3945_v3 = vld [vmem:[%s2807_s5 + $0x108] sm:$0xff] }
  0xf9   : > { %v1097_v12 = vadd.f32 %v1089_v50, %v1081_v57  ;;  %v1090_v16 = vmul.f32 %v1051_v51, %v2856_v17  ;;  %v1144_v44 = vadd.f32 %v1136_v0, %v1128_v53  ;;  %v1198_v27 = vmul.f32 %v3829_v26, %v2892_v37 }
  0xfa   : > { %v1220_v61 = vadd.f32 %v1212_v55, %v1204_v35  ;;  %v1214_v14 = vmul.f32 %v1176_v8, %v2894_v38  ;;  %v3952_v54 = vmul.f32 0.0, %v2901_v42  ;;  %v1082_v51 = vadd.f32 %v3589_v5, %v1074_v63 }
  0xfb   : > { %v1113_v4 = vadd.f32 %v3922_v13, %v1097_v12  ;;  %v1122_v21 = vmul.f32 %v3770_v49, %v2863_v22  ;;  %v1159_v39 = vadd.f32 %v1152_v58, %v1144_v44  ;;  %v1260_v26 = vrot.slane %v3936_v19, 7 }
  0xfc   : > { %v1236_v46 = vadd.f32 %v1228_v33, %v1220_v61  ;;  %v1261_v8 = vrot.slane %v3939_v43, 7  ;;  %v1098_v30 = vadd.f32 %v1090_v16, %v1082_v51  ;;  %v1265_v55 = vrot.slane %v3945_v3, 7 }
  0xfd   : > { %v1129_v20 = vadd.f32 %v1121_v23, %v1113_v4  ;;  %v1266_v6 = vrot.slane %v3948_v32, 7  ;;  %v1205_v56 = vadd.f32 %v1197_v7, %v1159_v39  ;;  %v1138_v60 = vmul.f32 %v3845_v48, %v2867_v24 }
  0xfe   : > { %2357 = vst [vmem:[%s3008_s24 + $0xe0] sm:$0xff] %v1236_v46  ;;  %v1199_v49 = vmul.f32 %v3867_v28, %v2892_v37  ;;  %v1380_v33 = vrot.slane %v3936_v19, 1  ;;  %v1114_v40 = vadd.f32 %v3922_v13, %v1098_v30  ;;  %v1275_v0 = vsel %vm299_vm1, %v1265_v55, %v1260_v26  ;;  %v4003_v46 = vld [vmem:[%s2807_s5 + $0x120] sm:$0xff] }
  0xff   : > { %v1145_v31 = vadd.f32 %v1137_v10, %v1129_v20  ;;  %v1276_v58 = vsel %vm299_vm1, %v1266_v6, %v1261_v8  ;;  %v1221_v34 = vadd.f32 %v1213_v52, %v1205_v56  ;;  %v1280_v7 = vsel %vm275_vm0, %v1275_v0, 0.0 }
 0x100   : > { %v3976_v48 = vsel %vm275_vm0, %v1276_v58, 0.0  ;;  %v1381_v28 = vrot.slane %v3939_v43, 1  ;;  %v1130_v15 = vadd.f32 %v1122_v21, %v1114_v40  ;;  %v1302_v2 = vmul.f32 %v1280_v7, %v2856_v17 }
 0x101   : > { %v1160_v50 = vadd.f32 %v3930_v59, %v1145_v31  ;;  %v1318_v45 = vmul.f32 %v3976_v48, %v2858_v18  ;;  %v1237_v57 = vadd.f32 %v1229_v62, %v1221_v34  ;;  %v1385_v52 = vrot.slane %v3945_v3, 1 }
 0x102   : > { %v1386_v35 = vrot.slane %v3948_v32, 1  ;;  %v1270_v53 = vsel %vm299_vm1, %v1260_v26, %v1265_v55  ;;  %v1146_v10 = vadd.f32 %v1138_v60, %v1130_v15  ;;  %v1310_v12 = vadd.f32 %v1302_v2, %v2877_v29 }
 0x103   : > { %v1206_v23 = vadd.f32 %v1198_v27, %v1160_v50  ;;  %v3990_v63 = vsel %vm299_vm1, %v1261_v8, %v1266_v6  ;;  %2358 = vst [vmem:[%s3008_s24 + $0xe8] sm:$0xff] %v1237_v57  ;;  %v1215_v16 = vmul.f32 %v1191_v41, %v2894_v38  ;;  %v1348_v62 = vmul.f32 %v3936_v19, %v2867_v24  ;;  %v4018_v6 = vld [vmem:[%s2807_s5 + $0x128] sm:$0xff] }
 0x104   : > { %v1303_v61 = vmul.f32 %v1270_v53, %v2856_v17  ;;  %v1319_v44 = vmul.f32 %v3990_v63, %v2858_v18  ;;  %v1161_v4 = vadd.f32 %v3930_v59, %v1146_v10  ;;  %v1326_v51 = vadd.f32 %v1318_v45, %v1310_v12 }
 0x105   : > { %v1222_v27 = vadd.f32 %v1214_v14, %v1206_v23  ;;  %v1390_v21 = vsel %vm455_vm2, %v1380_v33, %v1385_v52  ;;  %v1364_v41 = vmul.f32 %v3939_v43, %v2869_v25  ;;  %v4009_v39 = vsel %vm455_vm2, %v1381_v28, %v1386_v35 }
 0x106   : > { %v1424_v26 = vmul.f32 %v1390_v21, %v2894_v38  ;;  %v1311_v14 = vadd.f32 %v1303_v61, %v2877_v29  ;;  %v1207_v20 = vadd.f32 %v1199_v49, %v1161_v4  ;;  %v1340_v30 = vadd.f32 %v1326_v51, %v2890_v36 }
 0x107   : > { %v1238_v8 = vadd.f32 %v3952_v54, %v1222_v27  ;;  %v1395_v55 = vsel %vm455_vm2, %v1385_v52, %v1380_v33  ;;  %v1349_v60 = vmul.f32 %v3945_v3, %v2867_v24  ;;  %v1396_v31 = vsel %vm455_vm2, %v1386_v35, %v1381_v28 }
 0x108   : > { %v1327_v56 = vadd.f32 %v1319_v44, %v1311_v14  ;;  %v1262_v40 = vrot.slane %v4003_v46, 7  ;;  %v1223_v29 = vadd.f32 %v1215_v16, %v1207_v20  ;;  %v1356_v49 = vadd.f32 %v1348_v62, %v1340_v30 }
 0x109   : > { %2359 = vst [vmem:[%s3008_s24 + $0xf0] sm:$0xff] %v1238_v8  ;;  %v1440_v0 = vmul.f32 %v4009_v39, %v2901_v42  ;;  %v1365_v33 = vmul.f32 %v3948_v32, %v2869_v25  ;;  %v1401_v34 = vsel %vm278_vm3, %v1395_v55, 0.0  ;;  %v1267_v50 = vrot.slane %v4018_v6, 7 }
 0x10a   : > { %v1341_v58 = vadd.f32 %v1327_v56, %v2890_v36  ;;  %v1290_v28 = vmul.f32 %v1280_v7, %v2838_v9  ;;  %v1239_v15 = vadd.f32 %v3952_v54, %v1223_v29  ;;  %v1372_v2 = vadd.f32 %v1364_v41, %v1356_v49  ;;  %v4083_v49 = vld [vmem:[%s2807_s5 + $0x138] sm:$0xff] }
 0x10b   : > { %v4038_v45 = vsel %vm278_vm3, %v1396_v31, 0.0  ;;  %v1304_v57 = vmul.f32 %v3976_v48, %v2856_v17  ;;  %v1425_v36 = vmul.f32 %v1401_v34, %v2894_v38  ;;  %v1277_v35 = vsel %vm299_vm1, %v1267_v50, %v1262_v40 }
 0x10c   : > { %v1357_v52 = vadd.f32 %v1349_v60, %v1341_v58  ;;  %v1296_v23 = vadd.f32 %v3589_v5, %v1290_v28  ;;  %2360 = vst [vmem:[%s3008_s24 + $0xf8] sm:$0xff] %v1239_v15  ;;  %v1416_v7 = vadd.f32 %v1372_v2, %v2913_v47  ;;  %v4050_v10 = vsel %vm275_vm0, %v1277_v35, 0.0 }
 0x10d   : > { %v1334_v12 = vmul.f32 %v3936_v19, %v2863_v22  ;;  %v1382_v16 = vrot.slane %v4003_v46, 1  ;;  %v1320_v44 = vmul.f32 %v4050_v10, %v2858_v18  ;;  %v1387_v27 = vrot.slane %v4018_v6, 1 }
 0x10e   : > { %v1373_v62 = vadd.f32 %v1365_v33, %v1357_v52  ;;  %v1312_v61 = vadd.f32 %v1304_v57, %v1296_v23  ;;  %v1432_v4 = vadd.f32 %v1424_v26, %v1416_v7  ;;  %v1441_v51 = vmul.f32 %v4038_v45, %v2901_v42 }
 0x10f   : > { %v1350_v41 = vmul.f32 %v3939_v43, %v2867_v24  ;;  %v1366_v8 = vmul.f32 %v4003_v46, %v2869_v25  ;;  %v1291_v20 = vmul.f32 %v1270_v53, %v2838_v9  ;;  %v4068_v26 = vsel %vm455_vm2, %v1382_v16, %v1387_v27  ;;  %v4080_v53 = vld [vmem:[%s2807_s5 + $0x130] sm:$0xff] }
 0x110   : > { %v1417_v19 = vadd.f32 %v1373_v62, %v2913_v47  ;;  %v1328_v14 = vadd.f32 %v1320_v44, %v1312_v61  ;;  %v1448_v30 = vadd.f32 %v1440_v0, %v1432_v4  ;;  %v4072_v55 = vsel %vm299_vm1, %v1262_v40, %v1267_v50 }
 0x111   : > { %v1305_v56 = vmul.f32 %v3990_v63, %v2856_v17  ;;  %v1297_v31 = vadd.f32 %v3589_v5, %v1291_v20  ;;  %v1321_v29 = vmul.f32 %v4072_v55, %v2858_v18  ;;  %v1410_v0 = vmul.f32 %v1390_v21, %v2892_v37 }
 0x112   : > { %v1433_v60 = vadd.f32 %v1425_v36, %v1417_v19  ;;  %v1342_v47 = vadd.f32 %v1334_v12, %v1328_v14  ;;  %2371 = vst [vmem:[%s3008_s24 + $0x100] sm:$0xff] %v1448_v30  ;;  %v1426_v40 = vmul.f32 %v4009_v39, %v2894_v38  ;;  %v1442_v33 = vmul.f32 %v4068_v26, %v2901_v42 }
 0x113   : > { %v1335_v58 = vmul.f32 %v3945_v3, %v2863_v22  ;;  %v1313_v15 = vadd.f32 %v1305_v56, %v1297_v31  ;;  %v1397_v2 = vsel %vm455_vm2, %v1387_v27, %v1382_v16  ;;  %v1351_v57 = vmul.f32 %v3948_v32, %v2867_v24 }
 0x114   : > { %v1449_v50 = vadd.f32 %v1441_v51, %v1433_v60  ;;  %v1358_v28 = vadd.f32 %v1350_v41, %v1342_v47  ;;  %v1367_v21 = vmul.f32 %v4018_v6, %v2869_v25  ;;  %v1263_v52 = vrot.slane %v4080_v53, 7 }
 0x115   : > { %v1268_v36 = vrot.slane %v4083_v49, 7  ;;  %v1329_v23 = vadd.f32 %v1321_v29, %v1313_v15  ;;  %v1292_v3 = vmul.f32 %v3976_v48, %v2838_v9  ;;  %v1306_v7 = vmul.f32 %v4050_v10, %v2856_v17  ;;  %v4150_v15 = vld [vmem:[%s2807_s5 + $0x140] sm:$0xff] }
 0x116   : > { %2372 = vst [vmem:[%s3008_s24 + $0x108] sm:$0xff] %v1449_v50  ;;  %v1374_v35 = vadd.f32 %v1366_v8, %v1358_v28  ;;  %v4108_v12 = vsel %vm278_vm3, %v1397_v2, 0.0  ;;  %v1411_v16 = vmul.f32 %v1401_v34, %v2892_v37  ;;  %v1427_v62 = vmul.f32 %v4038_v45, %v2894_v38 }
 0x117   : > { %v1278_v61 = vsel %vm299_vm1, %v1268_v36, %v1263_v52  ;;  %v1343_v27 = vadd.f32 %v1335_v58, %v1329_v23  ;;  %v1298_v4 = vadd.f32 %v3589_v5, %v1292_v3  ;;  %v1443_v51 = vmul.f32 %v4108_v12, %v2901_v42 }
 0x118   : > { %v1418_v44 = vadd.f32 %v1410_v0, %v1374_v35  ;;  %v4117_v48 = vsel %vm275_vm0, %v1278_v61, 0.0  ;;  %v1383_v41 = vrot.slane %v4080_v53, 1  ;;  %v1388_v19 = vrot.slane %v4083_v49, 1 }
 0x119   : > { %v1322_v34 = vmul.f32 %v4117_v48, %v2858_v18  ;;  %v1359_v8 = vadd.f32 %v1351_v57, %v1343_v27  ;;  %v1314_v20 = vadd.f32 %v1306_v7, %v1298_v4  ;;  %v1336_v30 = vmul.f32 %v3939_v43, %v2863_v22 }
 0x11a   : > { %v1434_v14 = vadd.f32 %v1426_v40, %v1418_v44  ;;  %v1352_v56 = vmul.f32 %v4003_v46, %v2867_v24  ;;  %v1368_v60 = vmul.f32 %v4080_v53, %v2869_v25  ;;  %v1293_v47 = vmul.f32 %v3990_v63, %v2838_v9 }
 0x11b   : > { %v1307_v31 = vmul.f32 %v4072_v55, %v2856_v17  ;;  %v1375_v0 = vadd.f32 %v1367_v21, %v1359_v8  ;;  %v1330_v40 = vadd.f32 %v1322_v34, %v1314_v20  ;;  %v4138_v58 = vsel %vm299_vm1, %v1263_v52, %v1268_v36  ;;  %v4158_v52 = vld [vmem:[%s2807_s5 + $0x148] sm:$0xff] }
 0x11c   : > { %v1450_v29 = vadd.f32 %v1442_v33, %v1434_v14  ;;  %v4142_v43 = vsel %vm455_vm2, %v1383_v41, %v1388_v19  ;;  %v1412_v50 = vmul.f32 %v4009_v39, %v2892_v37  ;;  %v1299_v63 = vadd.f32 %v3589_v5, %v1293_v47 }
 0x11d   : > { %v1323_v28 = vmul.f32 %v4138_v58, %v2858_v18  ;;  %v1419_v33 = vadd.f32 %v1411_v16, %v1375_v0  ;;  %v1344_v2 = vadd.f32 %v1336_v30, %v1330_v40  ;;  %v1428_v57 = vmul.f32 %v4068_v26, %v2894_v38 }
 0x11e   : > { %2373 = vst [vmem:[%s3008_s24 + $0x110] sm:$0xff] %v1450_v29  ;;  %v1444_v21 = vmul.f32 %v4142_v43, %v2901_v42  ;;  %v1315_v36 = vadd.f32 %v1307_v31, %v1299_v63  ;;  %v1337_v39 = vmul.f32 %v3948_v32, %v2863_v22  ;;  %v1353_v35 = vmul.f32 %v4018_v6, %v2867_v24 }
 0x11f   : > { %v1398_v23 = vsel %vm455_vm2, %v1388_v19, %v1383_v41  ;;  %v1435_v3 = vadd.f32 %v1427_v62, %v1419_v33  ;;  %v1360_v7 = vadd.f32 %v1352_v56, %v1344_v2  ;;  %v1369_v16 = vmul.f32 %v4083_v49, %v2869_v25 }
 0x120   : > { %v1264_v61 = vrot.slane %v4150_v15, 7  ;;  %v1331_v44 = vadd.f32 %v1323_v28, %v1315_v36  ;;  %v1269_v27 = vrot.slane %v4158_v52, 7  ;;  %v1294_v32 = vmul.f32 %v4050_v10, %v2838_v9 }
 0x121   : > { %v1308_v4 = vmul.f32 %v4117_v48, %v2856_v17  ;;  %v1451_v34 = vadd.f32 %v1443_v51, %v1435_v3  ;;  %v1376_v14 = vadd.f32 %v1368_v60, %v1360_v7  ;;  %v4176_v62 = vsel %vm278_vm3, %v1398_v23, 0.0 }
 0x122   : > { %v1413_v41 = vmul.f32 %v4038_v45, %v2892_v37  ;;  %v1345_v19 = vadd.f32 %v1337_v39, %v1331_v44  ;;  %v1429_v8 = vmul.f32 %v4108_v12, %v2894_v38  ;;  %v1279_v20 = vsel %vm299_vm1, %v1269_v27, %v1264_v61 }
 0x123   : > { %v1300_v10 = vadd.f32 %v3589_v5, %v1294_v32  ;;  %2374 = vst [vmem:[%s3008_s24 + $0x118] sm:$0xff] %v1451_v34  ;;  %v1420_v30 = vadd.f32 %v1412_v50, %v1376_v14  ;;  %v4188_v51 = vsel %vm275_vm0, %v1279_v20, 0.0  ;;  %v1384_v56 = vrot.slane %v4150_v15, 1 }
 0x124   : > { %v1389_v60 = vrot.slane %v4158_v52, 1  ;;  %v1361_v45 = vadd.f32 %v1353_v35, %v1345_v19  ;;  %v1324_v31 = vmul.f32 %v4188_v51, %v2858_v18  ;;  %v1338_v29 = vmul.f32 %v4003_v46, %v2863_v22 }
 0x125   : > { %v1316_v47 = vadd.f32 %v1308_v4, %v1300_v10  ;;  %v1436_v0 = vadd.f32 %v1428_v57, %v1420_v30  ;;  %v1445_v40 = vmul.f32 %v4176_v62, %v2901_v42  ;;  %v1354_v50 = vmul.f32 %v4080_v53, %v2867_v24 }
 0x126   : > { %v1370_v63 = vmul.f32 %v4150_v15, %v2869_v25  ;;  %v1377_v28 = vadd.f32 %v1369_v16, %v1361_v45  ;;  %v1414_v2 = vmul.f32 %v4068_v26, %v2892_v37  ;;  %v1295_v46 = vmul.f32 %v4072_v55, %v2838_v9  ;;  %v4220_v55 = vld [vmem:[%s2807_s5 + $0x150] sm:$0xff] }
 0x127   : > { %v1332_v33 = vadd.f32 %v1324_v31, %v1316_v47  ;;  %v1452_v57 = vadd.f32 %v1444_v21, %v1436_v0  ;;  %v4208_v36 = vsel %vm455_vm2, %v1384_v56, %v1389_v60  ;;  %v4212_v39 = vsel %vm299_vm1, %v1264_v61, %v1269_v27  ;;  %v4223_v21 = vld [vmem:[%s2807_s5 + $0x158] sm:$0xff] }
 0x128   : > { %v1309_v35 = vmul.f32 %v4138_v58, %v2856_v17  ;;  %v1421_v23 = vadd.f32 %v1413_v41, %v1377_v28  ;;  %v1301_v7 = vadd.f32 %v3589_v5, %v1295_v46  ;;  %v1325_v26 = vmul.f32 %v4212_v39, %v2858_v18 }
 0x129   : > { %v1346_v3 = vadd.f32 %v1338_v29, %v1332_v33  ;;  %2375 = vst [vmem:[%s3008_s24 + $0x120] sm:$0xff] %v1452_v57  ;;  %v1430_v16 = vmul.f32 %v4142_v43, %v2894_v38  ;;  %v1446_v61 = vmul.f32 %v4208_v36, %v2901_v42  ;;  %v1339_v44 = vmul.f32 %v4018_v6, %v2863_v22 }
 0x12a   : > { %v1355_v27 = vmul.f32 %v4083_v49, %v2867_v24  ;;  %v1437_v32 = vadd.f32 %v1429_v8, %v1421_v23  ;;  %v1317_v34 = vadd.f32 %v1309_v35, %v1301_v7  ;;  %v1399_v14 = vsel %vm455_vm2, %v1389_v60, %v1384_v56 }
 0x12b   : > { %v1362_v4 = vadd.f32 %v1354_v50, %v1346_v3  ;;  %v1371_v41 = vmul.f32 %v4158_v52, %v2869_v25  ;;  %v1480_v19 = vrot.slane %v4220_v55, 7  ;;  %v1486_v20 = vrot.slane %v4223_v21, 7 }
 0x12c   : > { %v1514_v6 = vmul.f32 %v4117_v48, %v2838_v9  ;;  %v1453_v10 = vadd.f32 %v1445_v40, %v1437_v32  ;;  %v1333_v45 = vadd.f32 %v1325_v26, %v1317_v34  ;;  %v1530_v8 = vmul.f32 %v4188_v51, %v2856_v17 }
 0x12d   : > { %v1378_v30 = vadd.f32 %v1370_v63, %v1362_v4  ;;  %v4246_v47 = vsel %vm278_vm3, %v1399_v14, 0.0  ;;  %v1415_v56 = vmul.f32 %v4108_v12, %v2892_v37  ;;  %v1498_v60 = vsel %vm299_vm1, %v1486_v20, %v1480_v19 }
 0x12e   : > { %v1522_v31 = vadd.f32 %v3589_v5, %v1514_v6  ;;  %2376 = vst [vmem:[%s3008_s24 + $0x128] sm:$0xff] %v1453_v10  ;;  %v1347_v29 = vadd.f32 %v1339_v44, %v1333_v45  ;;  %v4256_v0 = vsel %vm275_vm0, %v1498_v60, 0.0  ;;  %v1562_v40 = vmul.f32 %v4080_v53, %v2863_v22 }
 0x12f   : > { %v1422_v48 = vadd.f32 %v1414_v2, %v1378_v30  ;;  %v1546_v63 = vmul.f32 %v4256_v0, %v2858_v18  ;;  %v1612_v12 = vrot.slane %v4220_v55, 1  ;;  %v1618_v28 = vrot.slane %v4223_v21, 1 }
 0x130   : > { %v1538_v50 = vadd.f32 %v1530_v8, %v1522_v31  ;;  %v1363_v46 = vadd.f32 %v1355_v27, %v1347_v29  ;;  %v1431_v2 = vmul.f32 %v4176_v62, %v2894_v38  ;;  %v1447_v57 = vmul.f32 %v4246_v47, %v2901_v42 }
 0x131   : > { %v1438_v33 = vadd.f32 %v1430_v16, %v1422_v48  ;;  %v1578_v53 = vmul.f32 %v4150_v15, %v2867_v24  ;;  %v1594_v23 = vmul.f32 %v4220_v55, %v2869_v25  ;;  %v1515_v3 = vmul.f32 %v4138_v58, %v2838_v9  ;;  %v4288_v58 = vld [vmem:[%s2807_s5 + $0x160] sm:$0xff] }
 0x132   : > { %v1554_v35 = vadd.f32 %v1546_v63, %v1538_v50  ;;  %v1379_v26 = vadd.f32 %v1371_v41, %v1363_v46  ;;  %v4276_v16 = vsel %vm299_vm1, %v1480_v19, %v1486_v20  ;;  %v1531_v44 = vmul.f32 %v4212_v39, %v2856_v17  ;;  %v4298_v20 = vld [vmem:[%s2807_s5 + $0x168] sm:$0xff]  ;;  %v4323_v46 = vld [vmem:[%s2827_s18] ss:$0 sm:$0xff] }
 0x133   : > { %v1454_v7 = vadd.f32 %v1446_v61, %v1438_v33  ;;  %v4282_v32 = vsel %vm455_vm2, %v1612_v12, %v1618_v28  ;;  %v1523_v4 = vadd.f32 %v3589_v5, %v1515_v3  ;;  %v1547_v34 = vmul.f32 %v4276_v16, %v2858_v18 }
 0x134   : > { %v1570_v27 = vadd.f32 %v1562_v40, %v1554_v35  ;;  %v1423_v61 = vadd.f32 %v1415_v56, %v1379_v26  ;;  %v1646_v14 = vmul.f32 %v4142_v43, %v2892_v37  ;;  %v1662_v41 = vmul.f32 %v4208_v36, %v2894_v38 }
 0x135   : > { %2377 = vst [vmem:[%s3008_s24 + $0x130] sm:$0xff] %v1454_v7  ;;  %v1678_v19 = vmul.f32 %v4282_v32, %v2901_v42  ;;  %v1539_v5 = vadd.f32 %v1531_v44, %v1523_v4  ;;  %v1563_v10 = vmul.f32 %v4083_v49, %v2863_v22  ;;  %v1630_v30 = vsel %vm455_vm2, %v1618_v28, %v1612_v12 }
 0x136   : > { %v1586_v6 = vadd.f32 %v1578_v53, %v1570_v27  ;;  %v1439_v45 = vadd.f32 %v1431_v2, %v1423_v61  ;;  %v1579_v43 = vmul.f32 %v4158_v52, %v2867_v24  ;;  %v1595_v8 = vmul.f32 %v4223_v21, %v2869_v25 }
 0x137   : > { %v1481_v56 = vrot.slane %v4288_v58, 7  ;;  %v1555_v31 = vadd.f32 %v1547_v34, %v1539_v5  ;;  %v1487_v48 = vrot.slane %v4298_v20, 7  ;;  %v1516_v49 = vmul.f32 %v4188_v51, %v2838_v9 }
 0x138   : > { %v1602_v60 = vadd.f32 %v1594_v23, %v1586_v6  ;;  %v1455_v29 = vadd.f32 %v1447_v57, %v1439_v45  ;;  %v4314_v40 = vsel %vm278_vm3, %v1630_v30, 0.0  ;;  %v1647_v50 = vmul.f32 %v4176_v62, %v2892_v37  ;;  %v4358_v30 = vld [vmem:[%s2807_s5 + $0x170] sm:$0xff] }
 0x139   : > { %v1532_v63 = vmul.f32 %v4256_v0, %v2856_v17  ;;  %v1571_v28 = vadd.f32 %v1563_v10, %v1555_v31  ;;  %v1499_v33 = vsel %vm299_vm1, %v1487_v48, %v1481_v56  ;;  %v1524_v51 = vadd.f32 %v4323_v46, %v1516_v49 }
 0x13a   : > { %v1654_v12 = vadd.f32 %v1646_v14, %v1602_v60  ;;  %2378 = vst [vmem:[%s3008_s24 + $0x138] sm:$0xff] %v1455_v29  ;;  %v4329_v2 = vsel %vm275_vm0, %v1499_v33, 0.0  ;;  %v1564_v62 = vmul.f32 %v4150_v15, %v2863_v22  ;;  %v1613_v57 = vrot.slane %v4288_v58, 1 }
 0x13b   : > { %v1619_v35 = vrot.slane %v4298_v20, 1  ;;  %v1587_v23 = vadd.f32 %v1579_v43, %v1571_v28  ;;  %v1540_v3 = vadd.f32 %v1532_v63, %v1524_v51  ;;  %v1548_v7 = vmul.f32 %v4329_v2, %v2858_v18 }
 0x13c   : > { %v1670_v53 = vadd.f32 %v1662_v41, %v1654_v12  ;;  %v1663_v26 = vmul.f32 %v4246_v47, %v2894_v38  ;;  %v1679_v44 = vmul.f32 %v4314_v40, %v2901_v42  ;;  %v1580_v15 = vmul.f32 %v4220_v55, %v2867_v24 }
 0x13d   : > { %v1596_v27 = vmul.f32 %v4288_v58, %v2869_v25  ;;  %v1603_v34 = vadd.f32 %v1595_v8, %v1587_v23  ;;  %v1556_v61 = vadd.f32 %v1548_v7, %v1540_v3  ;;  %v4347_v14 = vsel %vm455_vm2, %v1613_v57, %v1619_v35  ;;  %v4368_v8 = vld [vmem:[%s2807_s5 + $0x178] sm:$0xff] }
 0x13e   : > { %v1686_v4 = vadd.f32 %v1678_v19, %v1670_v53  ;;  %v1648_v41 = vmul.f32 %v4208_v36, %v2892_v37  ;;  %v1664_v6 = vmul.f32 %v4282_v32, %v2894_v38  ;;  %v1517_v5 = vmul.f32 %v4212_v39, %v2838_v9 }
 0x13f   : > { %v1533_v10 = vmul.f32 %v4276_v16, %v2856_v17  ;;  %v1655_v19 = vadd.f32 %v1647_v50, %v1603_v34  ;;  %v1572_v45 = vadd.f32 %v1564_v62, %v1556_v61  ;;  %v1680_v43 = vmul.f32 %v4347_v14, %v2901_v42 }
 0x140   : > { %2391 = vst [vmem:[%s3008_s24 + $0x140] sm:$0xff] %v1686_v4  ;;  %v4365_v36 = vsel %vm299_vm1, %v1481_v56, %v1487_v48  ;;  %v1525_v60 = vadd.f32 %v4323_v46, %v1517_v5  ;;  %v1565_v31 = vmul.f32 %v4158_v52, %v2863_v22  ;;  %v1581_v49 = vmul.f32 %v4223_v21, %v2867_v24 }
 0x141   : > { %v1549_v39 = vmul.f32 %v4365_v36, %v2858_v18  ;;  %v1671_v29 = vadd.f32 %v1663_v26, %v1655_v19  ;;  %v1588_v50 = vadd.f32 %v1580_v15, %v1572_v45  ;;  %v1631_v56 = vsel %vm455_vm2, %v1619_v35, %v1613_v57 }
 0x142   : > { %v1482_v48 = vrot.slane %v4358_v30, 7  ;;  %v1541_v63 = vadd.f32 %v1533_v10, %v1525_v60  ;;  %v1597_v12 = vmul.f32 %v4298_v20, %v2869_v25  ;;  %v1488_v28 = vrot.slane %v4368_v8, 7 }
 0x143   : > { %v1518_v52 = vmul.f32 %v4256_v0, %v2838_v9  ;;  %v1687_v33 = vadd.f32 %v1679_v44, %v1671_v29  ;;  %v1604_v51 = vadd.f32 %v1596_v27, %v1588_v50  ;;  %v1649_v62 = vmul.f32 %v4246_v47, %v2892_v37 }
 0x144   : > { %v1534_v53 = vmul.f32 %v4329_v2, %v2856_v17  ;;  %v1557_v57 = vadd.f32 %v1549_v39, %v1541_v63  ;;  %v4391_v35 = vsel %vm278_vm3, %v1631_v56, 0.0  ;;  %v1500_v23 = vsel %vm299_vm1, %v1488_v28, %v1482_v48 }
 0x145   : > { %v1526_v3 = vadd.f32 %v4323_v46, %v1518_v52  ;;  %2392 = vst [vmem:[%s3008_s24 + $0x148] sm:$0xff] %v1687_v33  ;;  %v1656_v0 = vadd.f32 %v1648_v41, %v1604_v51  ;;  %v4399_v7 = vsel %vm275_vm0, %v1500_v23, 0.0  ;;  %v1566_v47 = vmul.f32 %v4220_v55, %v2863_v22 }
 0x146   : > { %v1614_v26 = vrot.slane %v4358_v30, 1  ;;  %v1573_v44 = vadd.f32 %v1565_v31, %v1557_v57  ;;  %v1550_v27 = vmul.f32 %v4399_v7, %v2858_v18  ;;  %v1620_v4 = vrot.slane %v4368_v8, 1 }
 0x147   : > { %v1542_v15 = vadd.f32 %v1534_v53, %v1526_v3  ;;  %v1672_v34 = vadd.f32 %v1664_v6, %v1656_v0  ;;  %v1665_v61 = vmul.f32 %v4314_v40, %v2894_v38  ;;  %v1681_v41 = vmul.f32 %v4391_v35, %v2901_v42 }
 0x148   : > { %v1582_v55 = vmul.f32 %v4288_v58, %v2867_v24  ;;  %v1589_v5 = vadd.f32 %v1581_v49, %v1573_v44  ;;  %v1598_v19 = vmul.f32 %v4358_v30, %v2869_v25  ;;  %v1519_v6 = vmul.f32 %v4276_v16, %v2838_v9  ;;  %v4431_v16 = vld [vmem:[%s2807_s5 + $0x180] sm:$0xff] }
 0x149   : > { %v1558_v10 = vadd.f32 %v1550_v27, %v1542_v15  ;;  %v1688_v45 = vadd.f32 %v1680_v43, %v1672_v34  ;;  %v4419_v60 = vsel %vm455_vm2, %v1614_v26, %v1620_v4  ;;  %v4423_v39 = vsel %vm299_vm1, %v1482_v48, %v1488_v28  ;;  %v4434_v43 = vld [vmem:[%s2807_s5 + $0x188] sm:$0xff] }
 0x14a   : > { %v1535_v31 = vmul.f32 %v4365_v36, %v2856_v17  ;;  %v1605_v49 = vadd.f32 %v1597_v12, %v1589_v5  ;;  %v1527_v50 = vadd.f32 %v4323_v46, %v1519_v6  ;;  %v1551_v56 = vmul.f32 %v4423_v39, %v2858_v18 }
 0x14b   : > { %v1574_v29 = vadd.f32 %v1566_v47, %v1558_v10  ;;  %2393 = vst [vmem:[%s3008_s24 + $0x150] sm:$0xff] %v1688_v45  ;;  %v1650_v63 = vmul.f32 %v4282_v32, %v2892_v37  ;;  %v1666_v48 = vmul.f32 %v4347_v14, %v2894_v38  ;;  %v1682_v12 = vmul.f32 %v4419_v60, %v2901_v42 }
 0x14c   : > { %v1567_v28 = vmul.f32 %v4223_v21, %v2863_v22  ;;  %v1657_v52 = vadd.f32 %v1649_v62, %v1605_v49  ;;  %v1543_v51 = vadd.f32 %v1535_v31, %v1527_v50  ;;  %v1632_v53 = vsel %vm455_vm2, %v1620_v4, %v1614_v26 }
 0x14d   : > { %v1590_v33 = vadd.f32 %v1582_v55, %v1574_v29  ;;  %v1583_v57 = vmul.f32 %v4298_v20, %v2867_v24  ;;  %v1599_v32 = vmul.f32 %v4368_v8, %v2869_v25  ;;  %v1483_v23 = vrot.slane %v4431_v16, 7 }
 0x14e   : > { %v1489_v3 = vrot.slane %v4434_v43, 7  ;;  %v1673_v0 = vadd.f32 %v1665_v61, %v1657_v52  ;;  %v1559_v21 = vadd.f32 %v1551_v56, %v1543_v51  ;;  %v1520_v62 = vmul.f32 %v4329_v2, %v2838_v9 }
 0x14f   : > { %v1606_v47 = vadd.f32 %v1598_v19, %v1590_v33  ;;  %v4457_v26 = vsel %vm278_vm3, %v1632_v53, 0.0  ;;  %v1651_v44 = vmul.f32 %v4314_v40, %v2892_v37  ;;  %v1536_v27 = vmul.f32 %v4399_v7, %v2856_v17  ;;  %v4497_v53 = vld [vmem:[%s2807_s5 + $0x190] sm:$0xff] }
 0x150   : > { %v1501_v15 = vsel %vm299_vm1, %v1489_v3, %v1483_v23  ;;  %v1689_v4 = vadd.f32 %v1681_v41, %v1673_v0  ;;  %v1575_v61 = vadd.f32 %v1567_v28, %v1559_v21  ;;  %v1667_v2 = vmul.f32 %v4391_v35, %v2894_v38 }
 0x151   : > { %v1658_v34 = vadd.f32 %v1650_v63, %v1606_v47  ;;  %v4467_v55 = vsel %vm275_vm0, %v1501_v15, 0.0  ;;  %v1683_v5 = vmul.f32 %v4457_v26, %v2901_v42  ;;  %v1528_v40 = vadd.f32 %v4323_v46, %v1520_v62 }
 0x152   : > { %v1552_v10 = vmul.f32 %v4467_v55, %v2858_v18  ;;  %2394 = vst [vmem:[%s3008_s24 + $0x158] sm:$0xff] %v1689_v4  ;;  %v1591_v41 = vadd.f32 %v1583_v57, %v1575_v61  ;;  %v1615_v6 = vrot.slane %v4431_v16, 1  ;;  %v1621_v45 = vrot.slane %v4434_v43, 1 }
 0x153   : > { %v1674_v19 = vadd.f32 %v1666_v48, %v1658_v34  ;;  %v1544_v31 = vadd.f32 %v1536_v27, %v1528_v40  ;;  %v1568_v49 = vmul.f32 %v4288_v58, %v2863_v22  ;;  %v1584_v29 = vmul.f32 %v4358_v30, %v2867_v24 }
 0x154   : > { %v1521_v50 = vmul.f32 %v4365_v36, %v2838_v9  ;;  %v1607_v63 = vadd.f32 %v1599_v32, %v1591_v41  ;;  %v4487_v48 = vsel %vm299_vm1, %v1483_v23, %v1489_v3  ;;  %v1537_v28 = vmul.f32 %v4423_v39, %v2856_v17  ;;  %v4509_v23 = vld [vmem:[%s2807_s5 + $0x198] sm:$0xff] }
 0x155   : > { %v1690_v56 = vadd.f32 %v1682_v12, %v1674_v19  ;;  %v1560_v52 = vadd.f32 %v1552_v10, %v1544_v31  ;;  %v1600_v58 = vmul.f32 %v4431_v16, %v2869_v25  ;;  %v1553_v51 = vmul.f32 %v4487_v48, %v2858_v18 }
 0x156   : > { %v1529_v33 = vadd.f32 %v4323_v46, %v1521_v50  ;;  %v1659_v36 = vadd.f32 %v1651_v44, %v1607_v63  ;;  %v4502_v12 = vsel %vm455_vm2, %v1615_v6, %v1621_v45  ;;  %v1652_v57 = vmul.f32 %v4347_v14, %v2892_v37 }
 0x157   : > { %2395 = vst [vmem:[%s3008_s24 + $0x160] sm:$0xff] %v1690_v56  ;;  %v1668_v32 = vmul.f32 %v4419_v60, %v2894_v38  ;;  %v1576_v3 = vadd.f32 %v1568_v49, %v1560_v52  ;;  %v1684_v0 = vmul.f32 %v4502_v12, %v2901_v42  ;;  %v1569_v21 = vmul.f32 %v4298_v20, %v2863_v22 }
 0x158   : > { %v1545_v47 = vadd.f32 %v1537_v28, %v1529_v33  ;;  %v1675_v62 = vadd.f32 %v1667_v2, %v1659_v36  ;;  %v1585_v44 = vmul.f32 %v4368_v8, %v2867_v24  ;;  %v1633_v14 = vsel %vm455_vm2, %v1621_v45, %v1615_v6 }
 0x159   : > { %v1718_v15 = vrot.slane %v4497_v53, 7  ;;  %v1592_v27 = vadd.f32 %v1584_v29, %v1576_v3  ;;  %v1601_v34 = vmul.f32 %v4434_v43, %v2869_v25  ;;  %v1724_v61 = vrot.slane %v4509_v23, 7 }
 0x15a   : > { %v1561_v4 = vadd.f32 %v1553_v51, %v1545_v47  ;;  %v1691_v40 = vadd.f32 %v1683_v5, %v1675_v62  ;;  %v1653_v20 = vmul.f32 %v4391_v35, %v2892_v37  ;;  %v1752_v2 = vmul.f32 %v4399_v7, %v2838_v9 }
 0x15b   : > { %v1768_v10 = vmul.f32 %v4467_v55, %v2856_v17  ;;  %v1608_v19 = vadd.f32 %v1600_v58, %v1592_v27  ;;  %v4531_v6 = vsel %vm278_vm3, %v1633_v14, 0.0  ;;  %v1736_v45 = vsel %vm299_vm1, %v1724_v61, %v1718_v15 }
 0x15c   : > { %v1577_v41 = vadd.f32 %v1569_v21, %v1561_v4  ;;  %2396 = vst [vmem:[%s3008_s24 + $0x168] sm:$0xff] %v1691_v40  ;;  %v1669_v5 = vmul.f32 %v4457_v26, %v2894_v38  ;;  %v4540_v35 = vsel %vm275_vm0, %v1736_v45, 0.0  ;;  %v1760_v7 = vadd.f32 %v4323_v46, %v1752_v2 }
 0x15d   : > { %v1850_v31 = vrot.slane %v4497_v53, 1  ;;  %v1660_v49 = vadd.f32 %v1652_v57, %v1608_v19  ;;  %v1784_v50 = vmul.f32 %v4540_v35, %v2858_v18  ;;  %v1856_v56 = vrot.slane %v4509_v23, 1 }
 0x15e   : > { %v1593_v29 = vadd.f32 %v1585_v44, %v1577_v41  ;;  %v1685_v63 = vmul.f32 %v4531_v6, %v2901_v42  ;;  %v1776_v28 = vadd.f32 %v1768_v10, %v1760_v7  ;;  %v1800_v52 = vmul.f32 %v4358_v30, %v2863_v22 }
 0x15f   : > { %v1816_v58 = vmul.f32 %v4431_v16, %v2867_v24  ;;  %v1676_v33 = vadd.f32 %v1668_v32, %v1660_v49  ;;  %v1832_v36 = vmul.f32 %v4497_v53, %v2869_v25  ;;  %v1753_v57 = vmul.f32 %v4423_v39, %v2838_v9  ;;  %v4571_v39 = vld [vmem:[%s2807_s5 + $0x1a0] sm:$0xff] }
 0x160   : > { %v1609_v51 = vadd.f32 %v1601_v34, %v1593_v29  ;;  %v1792_v3 = vadd.f32 %v1784_v50, %v1776_v28  ;;  %v4559_v47 = vsel %vm455_vm2, %v1850_v31, %v1856_v56  ;;  %v4563_v30 = vsel %vm299_vm1, %v1718_v15, %v1724_v61  ;;  %v4580_v61 = vld [vmem:[%s2807_s5 + $0x1a8] sm:$0xff] }
 0x161   : > { %v1769_v32 = vmul.f32 %v4487_v48, %v2856_v17  ;;  %v1692_v21 = vadd.f32 %v1684_v0, %v1676_v33  ;;  %v1761_v44 = vadd.f32 %v4323_v46, %v1753_v57  ;;  %v1785_v14 = vmul.f32 %v4563_v30, %v2858_v18 }
 0x162   : > { %v1661_v62 = vadd.f32 %v1653_v20, %v1609_v51  ;;  %v1808_v27 = vadd.f32 %v1800_v52, %v1792_v3  ;;  %v1884_v4 = vmul.f32 %v4419_v60, %v2892_v37  ;;  %v1900_v15 = vmul.f32 %v4502_v12, %v2894_v38 }
 0x163   : > { %v1916_v34 = vmul.f32 %v4559_v47, %v2901_v42  ;;  %2397 = vst [vmem:[%s3008_s24 + $0x170] sm:$0xff] %v1692_v21  ;;  %v1777_v40 = vadd.f32 %v1769_v32, %v1761_v44  ;;  %v1801_v20 = vmul.f32 %v4368_v8, %v2863_v22  ;;  %v1868_v2 = vsel %vm455_vm2, %v1856_v56, %v1850_v31 }
 0x164   : > { %v1677_v0 = vadd.f32 %v1669_v5, %v1661_v62  ;;  %v1824_v10 = vadd.f32 %v1816_v58, %v1808_v27  ;;  %v1817_v60 = vmul.f32 %v4434_v43, %v2867_v24  ;;  %v1833_v19 = vmul.f32 %v4509_v23, %v2869_v25 }
 0x165   : > { %v1719_v41 = vrot.slane %v4571_v39, 7  ;;  %v1793_v7 = vadd.f32 %v1785_v14, %v1777_v40  ;;  %v1725_v5 = vrot.slane %v4580_v61, 7  ;;  %v1754_v49 = vmul.f32 %v4467_v55, %v2838_v9 }
 0x166   : > { %v1693_v45 = vadd.f32 %v1685_v63, %v1677_v0  ;;  %v1840_v8 = vadd.f32 %v1832_v36, %v1824_v10  ;;  %v4597_v31 = vsel %vm278_vm3, %v1868_v2, 0.0  ;;  %v1885_v29 = vmul.f32 %v4457_v26, %v2892_v37 }
 0x167   : > { %v1770_v50 = vmul.f32 %v4540_v35, %v2856_v17  ;;  %v1809_v56 = vadd.f32 %v1801_v20, %v1793_v7  ;;  %v1901_v63 = vmul.f32 %v4531_v6, %v2894_v38  ;;  %v1737_v28 = vsel %vm299_vm1, %v1725_v5, %v1719_v41 }
 0x168   : > { %2398 = vst [vmem:[%s3008_s24 + $0x178] sm:$0xff] %v1693_v45  ;;  %v1762_v55 = vadd.f32 %v4323_v46, %v1754_v49  ;;  %v1892_v52 = vadd.f32 %v1884_v4, %v1840_v8  ;;  %v4611_v58 = vsel %vm275_vm0, %v1737_v28, 0.0  ;;  %v1851_v26 = vrot.slane %v4571_v39, 1 }
 0x169   : > { %v1857_v33 = vrot.slane %v4580_v61, 1  ;;  %v1825_v51 = vadd.f32 %v1817_v60, %v1809_v56  ;;  %v1786_v57 = vmul.f32 %v4611_v58, %v2858_v18  ;;  %v1802_v3 = vmul.f32 %v4431_v16, %v2863_v22 }
 0x16a   : > { %v1778_v36 = vadd.f32 %v1770_v50, %v1762_v55  ;;  %v1908_v32 = vadd.f32 %v1900_v15, %v1892_v52  ;;  %v1917_v21 = vmul.f32 %v4597_v31, %v2901_v42  ;;  %v1818_v62 = vmul.f32 %v4497_v53, %v2867_v24 }
 0x16b   : > { %v1834_v44 = vmul.f32 %v4571_v39, %v2869_v25  ;;  %v1841_v14 = vadd.f32 %v1833_v19, %v1825_v51  ;;  %v1886_v4 = vmul.f32 %v4502_v12, %v2892_v37  ;;  %v1755_v16 = vmul.f32 %v4487_v48, %v2838_v9  ;;  %v4643_v48 = vld [vmem:[%s2807_s5 + $0x1b0] sm:$0xff] }
 0x16c   : > { %v1794_v27 = vadd.f32 %v1786_v57, %v1778_v36  ;;  %v1924_v15 = vadd.f32 %v1916_v34, %v1908_v32  ;;  %v4631_v0 = vsel %vm455_vm2, %v1851_v26, %v1857_v33  ;;  %v4635_v40 = vsel %vm299_vm1, %v1719_v41, %v1725_v5  ;;  %v4646_v34 = vld [vmem:[%s2807_s5 + $0x1b8] sm:$0xff] }
 0x16d   : > { %v1771_v20 = vmul.f32 %v4563_v30, %v2856_v17  ;;  %v1893_v2 = vadd.f32 %v1885_v29, %v1841_v14  ;;  %v1763_v60 = vadd.f32 %v4323_v46, %v1755_v16  ;;  %v1787_v12 = vmul.f32 %v4635_v40, %v2858_v18 }
 0x16e   : > { %v1810_v10 = vadd.f32 %v1802_v3, %v1794_v27  ;;  %2411 = vst [vmem:[%s3008_s24 + $0x180] sm:$0xff] %v1924_v15  ;;  %v1902_v19 = vmul.f32 %v4559_v47, %v2894_v38  ;;  %v1918_v41 = vmul.f32 %v4631_v0, %v2901_v42  ;;  %v1803_v45 = vmul.f32 %v4434_v43, %v2863_v22 }
 0x16f   : > { %v1819_v7 = vmul.f32 %v4509_v23, %v2867_v24  ;;  %v1909_v5 = vadd.f32 %v1901_v63, %v1893_v2  ;;  %v1779_v8 = vadd.f32 %v1771_v20, %v1763_v60  ;;  %v1869_v29 = vsel %vm455_vm2, %v1857_v33, %v1851_v26 }
 0x170   : > { %v1826_v49 = vadd.f32 %v1818_v62, %v1810_v10  ;;  %v1835_v50 = vmul.f32 %v4580_v61, %v2869_v25  ;;  %v1720_v56 = vrot.slane %v4643_v48, 7  ;;  %v1726_v28 = vrot.slane %v4646_v34, 7 }
 0x171   : > { %v1756_v43 = vmul.f32 %v4540_v35, %v2838_v9  ;;  %v1925_v55 = vadd.f32 %v1917_v21, %v1909_v5  ;;  %v1795_v51 = vadd.f32 %v1787_v12, %v1779_v8  ;;  %v1772_v63 = vmul.f32 %v4611_v58, %v2856_v17 }
 0x172   : > { %v1842_v52 = vadd.f32 %v1834_v44, %v1826_v49  ;;  %v4669_v36 = vsel %vm278_vm3, %v1869_v29, 0.0  ;;  %v1887_v26 = vmul.f32 %v4531_v6, %v2892_v37  ;;  %v1738_v33 = vsel %vm299_vm1, %v1726_v28, %v1720_v56 }
 0x173   : > { %v1764_v57 = vadd.f32 %v4323_v46, %v1756_v43  ;;  %2412 = vst [vmem:[%s3008_s24 + $0x188] sm:$0xff] %v1925_v55  ;;  %v1811_v3 = vadd.f32 %v1803_v45, %v1795_v51  ;;  %v4679_v32 = vsel %vm275_vm0, %v1738_v33, 0.0  ;;  %v1804_v21 = vmul.f32 %v4497_v53, %v2863_v22 }
 0x174   : > { %v1894_v35 = vadd.f32 %v1886_v4, %v1842_v52  ;;  %v1788_v44 = vmul.f32 %v4679_v32, %v2858_v18  ;;  %v1852_v6 = vrot.slane %v4643_v48, 1  ;;  %v1858_v14 = vrot.slane %v4646_v34, 1 }
 0x175   : > { %v1780_v62 = vadd.f32 %v1772_v63, %v1764_v57  ;;  %v1827_v16 = vadd.f32 %v1819_v7, %v1811_v3  ;;  %v1903_v4 = vmul.f32 %v4597_v31, %v2894_v38  ;;  %v1919_v15 = vmul.f32 %v4669_v36, %v2901_v42 }
 0x176   : > { %v1910_v27 = vadd.f32 %v1902_v19, %v1894_v35  ;;  %v1820_v53 = vmul.f32 %v4571_v39, %v2867_v24  ;;  %v1836_v2 = vmul.f32 %v4643_v48, %v2869_v25  ;;  %v1757_v10 = vmul.f32 %v4563_v30, %v2838_v9  ;;  %v4711_v30 = vld [vmem:[%s2807_s5 + $0x1c0] sm:$0xff] }
 0x177   : > { %v1796_v20 = vadd.f32 %v1788_v44, %v1780_v62  ;;  %v1843_v12 = vadd.f32 %v1835_v50, %v1827_v16  ;;  %v4699_v19 = vsel %vm299_vm1, %v1720_v56, %v1726_v28  ;;  %v1773_v45 = vmul.f32 %v4635_v40, %v2856_v17  ;;  %v4721_v28 = vld [vmem:[%s2807_s5 + $0x1c8] sm:$0xff] }
 0x178   : > { %v1926_v60 = vadd.f32 %v1918_v41, %v1910_v27  ;;  %v4705_v5 = vsel %vm455_vm2, %v1852_v6, %v1858_v14  ;;  %v1765_v49 = vadd.f32 %v4323_v46, %v1757_v10  ;;  %v1789_v8 = vmul.f32 %v4699_v19, %v2858_v18 }
 0x179   : > { %v1812_v7 = vadd.f32 %v1804_v21, %v1796_v20  ;;  %v1895_v41 = vadd.f32 %v1887_v26, %v1843_v12  ;;  %v1888_v29 = vmul.f32 %v4559_v47, %v2892_v37  ;;  %v1904_v50 = vmul.f32 %v4631_v0, %v2894_v38 }
 0x17a   : > { %2413 = vst [vmem:[%s3008_s24 + $0x190] sm:$0xff] %v1926_v60  ;;  %v1920_v56 = vmul.f32 %v4705_v5, %v2901_v42  ;;  %v1781_v55 = vadd.f32 %v1773_v45, %v1765_v49  ;;  %v1805_v52 = vmul.f32 %v4509_v23, %v2863_v22  ;;  %v1870_v51 = vsel %vm455_vm2, %v1858_v14, %v1852_v6 }
 0x17b   : > { %v1828_v43 = vadd.f32 %v1820_v53, %v1812_v7  ;;  %v1911_v63 = vadd.f32 %v1903_v4, %v1895_v41  ;;  %v1821_v47 = vmul.f32 %v4580_v61, %v2867_v24  ;;  %v1837_v26 = vmul.f32 %v4646_v34, %v2869_v25 }
 0x17c   : > { %v1721_v33 = vrot.slane %v4711_v30, 7  ;;  %v1797_v35 = vadd.f32 %v1789_v8, %v1781_v55  ;;  %v1727_v3 = vrot.slane %v4721_v28, 7  ;;  %v1758_v23 = vmul.f32 %v4611_v58, %v2838_v9  ;;  %v4774_v55 = vld [vmem:[%s2807_s5 + $0x1d0] sm:$0xff] }
 0x17d   : > { %v1844_v57 = vadd.f32 %v1836_v2, %v1828_v43  ;;  %v1927_v21 = vadd.f32 %v1919_v15, %v1911_v63  ;;  %v4737_v62 = vsel %vm278_vm3, %v1870_v51, 0.0  ;;  %v1889_v44 = vmul.f32 %v4597_v31, %v2892_v37 }
 0x17e   : > { %v1774_v6 = vmul.f32 %v4679_v32, %v2856_v17  ;;  %v1813_v27 = vadd.f32 %v1805_v52, %v1797_v35  ;;  %v1739_v16 = vsel %vm299_vm1, %v1727_v3, %v1721_v33  ;;  %v1766_v4 = vadd.f32 %v4323_v46, %v1758_v23 }
 0x17f   : > { %v1896_v14 = vadd.f32 %v1888_v29, %v1844_v57  ;;  %2414 = vst [vmem:[%s3008_s24 + $0x198] sm:$0xff] %v1927_v21  ;;  %v4749_v58 = vsel %vm275_vm0, %v1739_v16, 0.0  ;;  %v1806_v15 = vmul.f32 %v4571_v39, %v2863_v22  ;;  %v1853_v31 = vrot.slane %v4711_v30, 1 }
 0x180   : > { %v1859_v20 = vrot.slane %v4721_v28, 1  ;;  %v1829_v2 = vadd.f32 %v1821_v47, %v1813_v27  ;;  %v1782_v10 = vadd.f32 %v1774_v6, %v1766_v4  ;;  %v1790_v60 = vmul.f32 %v4749_v58, %v2858_v18  ;;  %v4784_v47 = vld [vmem:[%s2807_s5 + $0x1d8] sm:$0xff] }
 0x181   : > { %v1912_v53 = vadd.f32 %v1904_v50, %v1896_v14  ;;  %v1905_v12 = vmul.f32 %v4669_v36, %v2894_v38  ;;  %v1921_v45 = vmul.f32 %v4737_v62, %v2901_v42  ;;  %v1822_v8 = vmul.f32 %v4643_v48, %v2867_v24 }
 0x182   : > { %v1845_v7 = vadd.f32 %v1837_v26, %v1829_v2  ;;  %v1798_v49 = vadd.f32 %v1790_v60, %v1782_v10  ;;  %v1838_v41 = vmul.f32 %v4711_v30, %v2869_v25  ;;  %v4767_v29 = vsel %vm455_vm2, %v1853_v31, %v1859_v20 }
 0x183   : > { %v1928_v39 = vadd.f32 %v1920_v56, %v1912_v53  ;;  %v1759_v50 = vmul.f32 %v4635_v40, %v2838_v9  ;;  %v1775_v43 = vmul.f32 %v4699_v19, %v2856_v17  ;;  %v1890_v51 = vmul.f32 %v4631_v0, %v2892_v37 }
 0x184   : > { %v1897_v56 = vadd.f32 %v1889_v44, %v1845_v7  ;;  %v1814_v52 = vadd.f32 %v1806_v15, %v1798_v49  ;;  %v4781_v63 = vsel %vm299_vm1, %v1721_v33, %v1727_v3  ;;  %v1906_v40 = vmul.f32 %v4705_v5, %v2894_v38 }
 0x185   : > { %2415 = vst [vmem:[%s3008_s24 + $0x1a0] sm:$0xff] %v1928_v39  ;;  %v1922_v26 = vmul.f32 %v4767_v29, %v2901_v42  ;;  %v1767_v57 = vadd.f32 %v4323_v46, %v1759_v50  ;;  %v1791_v35 = vmul.f32 %v4781_v63, %v2858_v18  ;;  %v1807_v33 = vmul.f32 %v4580_v61, %v2863_v22 }
 0x186   : > { %v1913_v23 = vadd.f32 %v1905_v12, %v1897_v56  ;;  %v1830_v0 = vadd.f32 %v1822_v8, %v1814_v52  ;;  %v1954_v3 = vrot.slane %v4774_v55, 7  ;;  %v1823_v44 = vmul.f32 %v4646_v34, %v2867_v24 }
 0x187   : > { %v1783_v21 = vadd.f32 %v1775_v43, %v1767_v57  ;;  %v1959_v6 = vrot.slane %v4784_v47, 7  ;;  %v1982_v14 = vmul.f32 %v4679_v32, %v2838_v9  ;;  %v1839_v4 = vmul.f32 %v4721_v28, %v2869_v25 }
 0x188   : > { %v1929_v27 = vadd.f32 %v1921_v45, %v1913_v23  ;;  %v1846_v16 = vadd.f32 %v1838_v41, %v1830_v0  ;;  %v1998_v15 = vmul.f32 %v4749_v58, %v2856_v17  ;;  %v1871_v53 = vsel %vm455_vm2, %v1859_v20, %v1853_v31 }
 0x189   : > { %v1799_v61 = vadd.f32 %v1791_v35, %v1783_v21  ;;  %v1969_v2 = vsel %vm299_vm1, %v1959_v6, %v1954_v3  ;;  %v1990_v10 = vadd.f32 %v4323_v46, %v1982_v14  ;;  %v1891_v32 = vmul.f32 %v4669_v36, %v2892_v37  ;;  %v4845_v21 = vld [vmem:[%s2807_s5 + $0x1e0] sm:$0xff] }
 0x18a   : > { %2416 = vst [vmem:[%s3008_s24 + $0x1a8] sm:$0xff] %v1929_v27  ;;  %v1898_v60 = vadd.f32 %v1890_v51, %v1846_v16  ;;  %v1907_v12 = vmul.f32 %v4737_v62, %v2894_v38  ;;  %v4817_v45 = vsel %vm275_vm0, %v1969_v2, 0.0  ;;  %v2028_v20 = vmul.f32 %v4643_v48, %v2863_v22 }
 0x18b   : > { %v1815_v39 = vadd.f32 %v1807_v33, %v1799_v61  ;;  %v2006_v7 = vadd.f32 %v1998_v15, %v1990_v10  ;;  %v2014_v31 = vmul.f32 %v4817_v45, %v2858_v18  ;;  %v4825_v36 = vsel %vm278_vm3, %v1871_v53, 0.0 }
 0x18c   : > { %v1914_v49 = vadd.f32 %v1906_v40, %v1898_v60  ;;  %v2076_v8 = vrot.slane %v4774_v55, 1  ;;  %v2081_v41 = vrot.slane %v4784_v47, 1  ;;  %v2044_v56 = vmul.f32 %v4711_v30, %v2867_v24 }
 0x18d   : > { %v1831_v50 = vadd.f32 %v1823_v44, %v1815_v39  ;;  %v2020_v43 = vadd.f32 %v2014_v31, %v2006_v7  ;;  %v1983_v48 = vmul.f32 %v4699_v19, %v2838_v9  ;;  %v2060_v51 = vmul.f32 %v4774_v55, %v2869_v25  ;;  %v4848_v19 = vld [vmem:[%s2807_s5 + $0x1e8] sm:$0xff] }
 0x18e   : > { %v1930_v52 = vadd.f32 %v1922_v26, %v1914_v49  ;;  %v4837_v40 = vsel %vm299_vm1, %v1954_v3, %v1959_v6  ;;  %v1999_v57 = vmul.f32 %v4781_v63, %v2856_v17  ;;  %v1923_v26 = vmul.f32 %v4825_v36, %v2901_v42 }
 0x18f   : > { %v1847_v35 = vadd.f32 %v1839_v4, %v1831_v50  ;;  %v2036_v23 = vadd.f32 %v2028_v20, %v2020_v43  ;;  %v1991_v0 = vadd.f32 %v4323_v46, %v1983_v48  ;;  %v2015_v33 = vmul.f32 %v4837_v40, %v2858_v18 }
 0x190   : > { %2417 = vst [vmem:[%s3008_s24 + $0x1b0] sm:$0xff] %v1930_v52  ;;  %v4855_v3 = vsel %vm455_vm2, %v2076_v8, %v2081_v41  ;;  %v2104_v44 = vmul.f32 %v4705_v5, %v2892_v37  ;;  %v2120_v6 = vmul.f32 %v4767_v29, %v2894_v38  ;;  %v2029_v4 = vmul.f32 %v4646_v34, %v2863_v22 }
 0x191   : > { %v1899_v14 = vadd.f32 %v1891_v32, %v1847_v35  ;;  %v2052_v27 = vadd.f32 %v2044_v56, %v2036_v23  ;;  %v2007_v16 = vadd.f32 %v1999_v57, %v1991_v0  ;;  %v2045_v15 = vmul.f32 %v4721_v28, %v2867_v24 }
 0x192   : > { %v2091_v61 = vsel %vm455_vm2, %v2081_v41, %v2076_v8  ;;  %v1955_v53 = vrot.slane %v4845_v21, 7  ;;  %v1960_v2 = vrot.slane %v4848_v19, 7  ;;  %v1984_v32 = vmul.f32 %v4749_v58, %v2838_v9 }
 0x193   : > { %v1915_v5 = vadd.f32 %v1907_v12, %v1899_v14  ;;  %v2066_v10 = vadd.f32 %v2060_v51, %v2052_v27  ;;  %v2021_v60 = vadd.f32 %v2015_v33, %v2007_v16  ;;  %v2136_v34 = vmul.f32 %v4855_v3, %v2901_v42  ;;  %v4913_v16 = vld [vmem:[%s2807_s5 + $0x1f0] sm:$0xff] }
 0x194   : > { %v2061_v39 = vmul.f32 %v4784_v47, %v2869_v25  ;;  %v1970_v7 = vsel %vm299_vm1, %v1960_v2, %v1955_v53  ;;  %v2000_v31 = vmul.f32 %v4817_v45, %v2856_v17  ;;  %v4885_v58 = vsel %vm278_vm3, %v2091_v61, 0.0  ;;  %v4921_v61 = vld [vmem:[%s2807_s5 + $0x1f8] sm:$0xff] }
 0x195   : > { %v1931_v20 = vadd.f32 %v1923_v26, %v1915_v5  ;;  %v2112_v12 = vadd.f32 %v2104_v44, %v2066_v10  ;;  %v2037_v49 = vadd.f32 %v2029_v4, %v2021_v60  ;;  %v4881_v8 = vsel %vm275_vm0, %v1970_v7, 0.0 }
 0x196   : > { %v2105_v41 = vmul.f32 %v4737_v62, %v2892_v37  ;;  %v1992_v50 = vadd.f32 %v4323_v46, %v1984_v32  ;;  %v2016_v43 = vmul.f32 %v4881_v8, %v2858_v18  ;;  %v2121_v52 = vmul.f32 %v4825_v36, %v2894_v38 }
 0x197   : > { %2418 = vst [vmem:[%s3008_s24 + $0x1b8] sm:$0xff] %v1931_v20  ;;  %v2128_v56 = vadd.f32 %v2120_v6, %v2112_v12  ;;  %v2053_v48 = vadd.f32 %v2045_v15, %v2037_v49  ;;  %v2030_v51 = vmul.f32 %v4711_v30, %v2863_v22  ;;  %v2077_v35 = vrot.slane %v4845_v21, 1 }
 0x198   : > { %v2008_v57 = vadd.f32 %v2000_v31, %v1992_v50  ;;  %v2082_v62 = vrot.slane %v4848_v19, 1  ;;  %v1985_v23 = vmul.f32 %v4781_v63, %v2838_v9  ;;  %v4903_v26 = vsel %vm299_vm1, %v1955_v53, %v1960_v2 }
 0x199   : > { %v2142_v0 = vadd.f32 %v2136_v34, %v2128_v56  ;;  %v2067_v33 = vadd.f32 %v2061_v39, %v2053_v48  ;;  %v2001_v44 = vmul.f32 %v4837_v40, %v2856_v17  ;;  %v2046_v30 = vmul.f32 %v4774_v55, %v2867_v24 }
 0x19a   : > { %v2022_v6 = vadd.f32 %v2016_v43, %v2008_v57  ;;  %v1993_v14 = vadd.f32 %v4323_v46, %v1985_v23  ;;  %v2017_v27 = vmul.f32 %v4903_v26, %v2858_v18  ;;  %v2137_v4 = vmul.f32 %v4885_v58, %v2901_v42 }
 0x19b   : > { %2429 = vst [vmem:[%s3008_s24 + $0x1c0] sm:$0xff] %v2142_v0  ;;  %v2113_v63 = vadd.f32 %v2105_v41, %v2067_v33  ;;  %v2062_v15 = vmul.f32 %v4845_v21, %v2869_v25  ;;  %v2106_v2 = vmul.f32 %v4767_v29, %v2892_v37  ;;  %v2031_v10 = vmul.f32 %v4721_v28, %v2863_v22 }
 0x19c   : > { %v2038_v53 = vadd.f32 %v2030_v51, %v2022_v6  ;;  %v2009_v5 = vadd.f32 %v2001_v44, %v1993_v14  ;;  %v4929_v32 = vsel %vm455_vm2, %v2077_v35, %v2082_v62  ;;  %v2122_v34 = vmul.f32 %v4855_v3, %v2894_v38 }
 0x19d   : > { %v2129_v60 = vadd.f32 %v2121_v52, %v2113_v63  ;;  %v1956_v39 = vrot.slane %v4913_v16, 7  ;;  %v2047_v29 = vmul.f32 %v4784_v47, %v2867_v24  ;;  %v1961_v20 = vrot.slane %v4921_v61, 7 }
 0x19e   : > { %v2054_v7 = vadd.f32 %v2046_v30, %v2038_v53  ;;  %v2023_v31 = vadd.f32 %v2017_v27, %v2009_v5  ;;  %v2063_v28 = vmul.f32 %v4848_v19, %v2869_v25  ;;  %v1986_v49 = vmul.f32 %v4817_v45, %v2838_v9 }
 0x19f   : > { %v2143_v12 = vadd.f32 %v2137_v4, %v2129_v60  ;;  %v2002_v41 = vmul.f32 %v4881_v8, %v2856_v17  ;;  %v2092_v56 = vsel %vm455_vm2, %v2082_v62, %v2077_v35  ;;  %v1971_v48 = vsel %vm299_vm1, %v1961_v20, %v1956_v39 }
 0x1a0   : > { %v2068_v50 = vadd.f32 %v2062_v15, %v2054_v7  ;;  %v2039_v43 = vadd.f32 %v2031_v10, %v2023_v31  ;;  %v2138_v52 = vmul.f32 %v4929_v32, %v2901_v42  ;;  %v1980_v51 = vsel %vm275_vm0, %v1971_v48, 0.0 }
 0x1a1   : > { %2430 = vst [vmem:[%s3008_s24 + $0x1c8] sm:$0xff] %v2143_v12  ;;  %v1994_v45 = vadd.f32 %v4323_v46, %v1986_v49  ;;  %v2107_v0 = vmul.f32 %v4825_v36, %v2892_v37  ;;  %v2018_v33 = vmul.f32 %v1980_v51, %v2858_v18  ;;  %v4958_v35 = vsel %vm278_vm3, %v2092_v56, 0.0 }
 0x1a2   : > { %v2114_v57 = vadd.f32 %v2106_v2, %v2068_v50  ;;  %v2055_v23 = vadd.f32 %v2047_v29, %v2039_v43  ;;  %v2123_v62 = vmul.f32 %v4885_v58, %v2894_v38  ;;  %v2032_v6 = vmul.f32 %v4774_v55, %v2863_v22 }
 0x1a3   : > { %v2010_v44 = vadd.f32 %v2002_v41, %v1994_v45  ;;  %v2139_v27 = vmul.f32 %v4958_v35, %v2901_v42  ;;  %v1987_v36 = vmul.f32 %v4837_v40, %v2838_v9  ;;  %v2048_v4 = vmul.f32 %v4845_v21, %v2867_v24 }
 0x1a4   : > { %v2130_v30 = vadd.f32 %v2122_v34, %v2114_v57  ;;  %v2069_v14 = vadd.f32 %v2063_v28, %v2055_v23  ;;  %v1966_v15 = vsel %vm299_vm1, %v1956_v39, %v1961_v20  ;;  %v2003_v53 = vmul.f32 %v4903_v26, %v2856_v17 }
 0x1a5   : > { %v2024_v63 = vadd.f32 %v2018_v33, %v2010_v44  ;;  %v1995_v5 = vadd.f32 %v4323_v46, %v1987_v36  ;;  %v2019_v10 = vmul.f32 %v1966_v15, %v2858_v18  ;;  %v2064_v40 = vmul.f32 %v4913_v16, %v2869_v25 }
 0x1a6   : > { %v2144_v55 = vadd.f32 %v2138_v52, %v2130_v30  ;;  %v2115_v2 = vadd.f32 %v2107_v0, %v2069_v14  ;;  %v2078_v34 = vrot.slane %v4913_v16, 1  ;;  %v2083_v7 = vrot.slane %v4921_v61, 1 }
 0x1a7   : > { %v2040_v60 = vadd.f32 %v2032_v6, %v2024_v63  ;;  %v2011_v31 = vadd.f32 %v2003_v53, %v1995_v5  ;;  %v2033_v29 = vmul.f32 %v4784_v47, %v2863_v22  ;;  %v2108_v12 = vmul.f32 %v4855_v3, %v2892_v37 }
 0x1a8   : > { %2431 = vst [vmem:[%s3008_s24 + $0x1d0] sm:$0xff] %v2144_v55  ;;  %v2131_v39 = vadd.f32 %v2123_v62, %v2115_v2  ;;  %v1988_v18 = vmul.f32 %v4881_v8, %v2838_v9  ;;  %v2049_v41 = vmul.f32 %v4848_v19, %v2867_v24  ;;  %v2004_v50 = vmul.f32 %v1980_v51, %v2856_v17 }
 0x1a9   : > { %v2056_v20 = vadd.f32 %v2048_v4, %v2040_v60  ;;  %v2025_v49 = vadd.f32 %v2019_v10, %v2011_v31  ;;  %v2088_v56 = vsel %vm455_vm2, %v2078_v34, %v2083_v7  ;;  %v2124_v47 = vmul.f32 %v4929_v32, %v2894_v38 }
 0x1aa   : > { %v2145_v28 = vadd.f32 %v2139_v27, %v2131_v39  ;;  %v1996_v48 = vadd.f32 %v4323_v46, %v1988_v18  ;;  %v2065_v8 = vmul.f32 %v4921_v61, %v2869_v25  ;;  %v1989_v52 = vmul.f32 %v4903_v26, %v2838_v9 }
 0x1ab   : > { %v2070_v43 = vadd.f32 %v2064_v40, %v2056_v20  ;;  %v2041_v3 = vadd.f32 %v2033_v29, %v2025_v49  ;;  %v2005_v45 = vmul.f32 %v1966_v15, %v2856_v17  ;;  %v2140_v57 = vmul.f32 %v2088_v56, %v2901_v42 }
 0x1ac   : > { %2432 = vst [vmem:[%s3008_s24 + $0x1d8] sm:$0xff] %v2145_v28  ;;  %v2012_v23 = vadd.f32 %v2004_v50, %v1996_v48  ;;  %v2034_v0 = vmul.f32 %v4845_v21, %v2863_v22  ;;  %v2093_v62 = vsel %vm455_vm2, %v2083_v7, %v2078_v34  ;;  %v2109_v44 = vmul.f32 %v4885_v58, %v2892_v37 }
 0x1ad   : > { %v2116_v51 = vadd.f32 %v2108_v12, %v2070_v43  ;;  %v2057_v33 = vadd.f32 %v2049_v41, %v2041_v3  ;;  %v1997_v25 = vadd.f32 %v4323_v46, %v1989_v52  ;;  %v2050_v26 = vmul.f32 %v4913_v16, %v2867_v24 }
 0x1ae   : > { %v2026_v17 = vadd.f32 %v2012_v23, %v3922_v13  ;;  %v2125_v21 = vmul.f32 %v4958_v35, %v2894_v38  ;;  %v2035_v1 = vmul.f32 %v4848_v19, %v2863_v22  ;;  %v2103_v58 = vsel %vm278_vm3, %v2093_v62, 0.0 }
 0x1af   : > { %v2132_v9 = vadd.f32 %v2124_v47, %v2116_v51  ;;  %v2071_v6 = vadd.f32 %v2065_v8, %v2057_v33  ;;  %v2013_v30 = vadd.f32 %v2005_v45, %v1997_v25  ;;  %v2141_v36 = vmul.f32 %v2103_v58, %v2901_v42 }
 0x1b0   : > { %v2042_v27 = vadd.f32 %v2034_v0, %v2026_v17  ;;  %v2051_v16 = vmul.f32 %v4921_v61, %v2867_v24  ;;  %v2110_v22 = vmul.f32 %v4929_v32, %v2892_v37  ;;  %v2126_v53 = vmul.f32 %v2088_v56, %v2894_v38 }
 0x1b1   : > { %v2146_v14 = vadd.f32 %v2140_v57, %v2132_v9  ;;  %v2117_v46 = vadd.f32 %v2109_v44, %v2071_v6  ;;  %v2027_v63 = vadd.f32 %v2013_v30, %v3922_v13  ;;  %v2111_v24 = vmul.f32 %v4958_v35, %v2892_v37 }
 0x1b2   : > { %v2058_v4 = vadd.f32 %v2050_v26, %v2042_v27  ;;  %v2127_v32 = vmul.f32 %v2103_v58, %v2894_v38 }
 0x1b3   : > { %2433 = vst [vmem:[%s3008_s24 + $0x1e0] sm:$0xff] %v2146_v14  ;;  %v2133_v19 = vadd.f32 %v2125_v21, %v2117_v46  ;;  %v2043_v11 = vadd.f32 %v2035_v1, %v2027_v63 }
 0x1b4   : > { %v2072_v15 = vadd.f32 %v2058_v4, %v3930_v59 }
 0x1b5   : > { %v2147_v42 = vadd.f32 %v2141_v36, %v2133_v19  ;;  %v2059_v55 = vadd.f32 %v2051_v16, %v2043_v11 }
 0x1b6   : > { %v2118_v13 = vadd.f32 %v2110_v22, %v2072_v15 }
 0x1b7   : > { %2434 = vst [vmem:[%s3008_s24 + $0x1e8] sm:$0xff] %v2147_v42  ;;  %v2073_v61 = vadd.f32 %v2059_v55, %v3930_v59 }
 0x1b8   : > { %v2134_v2 = vadd.f32 %v2126_v53, %v2118_v13 }
 0x1b9   : > { %v2119_v5 = vadd.f32 %v2111_v24, %v2073_v61 }
 0x1ba   : > { %v2148_v10 = vadd.f32 %v2134_v2, %v3952_v54 }
 0x1bb   : > { %v2135_v60 = vadd.f32 %v2127_v32, %v2119_v5 }
 0x1bc   : > { %2435 = vst [vmem:[%s3008_s24 + $0x1f0] sm:$0xff] %v2148_v10 }
 0x1bd   : > { %v2149_v37 = vadd.f32 %v2135_v60, %v3952_v54 }
 0x1bf   : > { %2436 = vst [vmem:[%s3008_s24 + $0x1f8] sm:$0xff] %v2149_v37 }
 0x1c0   : > { %2589 = shalt.err (!%p2586_p7)
}
 0x1c1   : > { %s2590_s5 = scalar_lea.hbm %s5038_s10, 8192  ;;  %s2594_s23 = scalar_lea.hbm %s5094_s3, 16384 }
 0x1c2   : > { %p2591_p10 = scmp.ne.s32.totalorder %s5038_s10, %s2590_s5  ;;  %p2595_p0 = scmp.lt.s32.totalorder %s5038_s10, %s5094_s3 }
 0x1c3   : > { %p2596_p8 = scmp.lt.s32.totalorder %s2594_s23, %s2590_s5 }
 0x1c4   : > { %p2592_p13 = pnand %p2591_p10, %p2744_p9 }
 0x1c5   : > { %p2597_p1 = por %p2596_p8, %p2595_p0 }
 0x1c6   : > { %p2593_p2 = pneg %p2592_p13 }
 0x1c8   : > { %p2598_p3 = pnand %p2597_p1, %p2593_p2 }
 0x1ca   : > { %2601 = shalt.err (!%p2598_p3)
}
 0x1cb   : > { %s2670_s11 = smov 128   ;;  %s2671_s18 = smov 256  }
 0x1cc   : > { %s2672_s24 = smov 8  }
 0x1cd   : > { %2447 = dma.vmem_to_hbm [thread:$0]  (%p2744_p9), %s5041_s21, 8192, %s5038_s10, %s2160_s15, %s2670_s11, %s2671_s18, %s2672_s24  }
 0x1ce PF: > { %s2190_s19 = sand.u32 1, %s2640_s12   ;;  %p2457_p5 = pnand %p2295_p12, %p2751_p11 }
 0x1cf   : > { %s2191_s6 = scalar_lea.sflag [#allocation4], %s2190_s19 }
 0x1d0   : > { %p2458_p6 = pneg %p2457_p5 }
 0x1d2   : > { %2635 = dma.done.wait (%p2458_p6), %s2191_s6, 8192  }
 0x1d3   : > { %2637 = vsyncadd (%p2458_p6), %s2191_s6, 4294959104  ;;  %s22_s17 = sadd.s32 1, %s2660_s17   ;;  %s5105_s25 = sld [smem:[#allocation11_spill]] }
 0x1d4   : > { %p19_p4 = scmp.ge.s32.totalorder %s22_s17, 4   ;;  %s5106_s12 = smov %s2644_s13 }
 0x1d5   : > { %s5107_s13 = smov %s2648_s14  ;;  %s5108_s14 = smov %s2749_s26 }
 0x1d6   : > { %s5109_s15 = smov %s2656_s16  ;;  %21 = sbr.rel (!%p19_p4) target bundleno = 10 (0xa), region = 107 }
 0x1d9   : > { %s5110_s16 = smov %s5105_s25 }
 0x1db   :  { %2196 = vsyncpa [#allocation3], 1 }
 0x1dc   :  { %2198 = vsyncpa [#allocation3 + $0x1], 1 }
 0x1dd   :  { %2199 = vsyncpa [#allocation6], 1 }
 0x1de   :  { %2201 = vsyncpa [#allocation6 + $0x1], 1 }
 0x1df   :  { %2202 = vsyncpa [#allocation4], 1 }
 0x1e0   :  { %2204 = vsyncpa [#allocation4 + $0x1], 1 }

</bundles_post_ra>
